<compile_context>
chip_gen: v6e
topology: v6e:2x2x1
jax: 0.10.0
libtpu: 0.0.40
codegen_flags: <defaults>
</compile_context>

<pallas_src>
import functools

import numpy as np
import jax
import jax.numpy as jnp
from jax import lax
from jax.experimental import pallas as pl
from jax.experimental.pallas import tpu as pltpu


# ----------------------------- in-kernel helpers (pure jnp on VMEM values) -----------------------------

_SQRT1_2 = 0.7071067811865476


def _erf_poly(z):
    """erf(z) via Abramowitz & Stegun 7.1.26 (|err| <= 1.5e-7); only abs/exp/FMA/select ops."""
    a1, a2, a3, a4, a5 = 0.254829592, -0.284496736, 1.421413741, -1.453152027, 1.061405429
    p = 0.3275911
    az = jnp.abs(z)
    t = 1.0 / (1.0 + p * az)
    poly = ((((a5 * t + a4) * t + a3) * t + a2) * t + a1) * t
    e = 1.0 - poly * jnp.exp(-az * az)
    return jnp.where(z < 0.0, -e, e)


def _gelu_exact(x):
    """Exact erf-GELU (matches torch F.gelu default) to ~1e-7."""
    return 0.5 * x * (1.0 + _erf_poly(x * _SQRT1_2))


def _mix(w, x, init=None):
    """1x1 conv as channel mixing: (O, Ci) x (Ci, HW) -> (O, HW), optionally + init (residual).

    Ci is tiny (4..16) here, so this is Ci unrolled VPU broadcast-FMAs; an MXU matmul of this
    size would run at <1% utilization and pay an MXU round-trip + relayout for nothing.
    `x` may be a (Ci, HW) array or a list of Ci (1, HW) rows.
    """
    rows = list(x) if isinstance(x, (list, tuple)) else [x[c:c + 1, :] for c in range(x.shape[0])]
    out = init
    for c, r in enumerate(rows):
        term = w[:, c:c + 1] * r
        out = term if out is None else out + term
    return out


def _layernorm(x, w, b):
    """WithBias LayerNorm over the channel axis (axis 0) for every spatial position."""
    mu = jnp.mean(x, axis=0, keepdims=True)
    xc = x - mu
    var = jnp.mean(xc * xc, axis=0, keepdims=True)
    return xc * lax.rsqrt(var + 1e-5) * w + b


def _dwconv3x3(x, w9, left_ok, right_ok, width):
    """Depthwise 3x3 conv (stride 1, zero pad 1) on a channels-flat (Cc, H*W) slab.

    w9: (Cc, 9) taps row-major over (dh, dw); left_ok/right_ok: (1, HW) {0,1} column-boundary
    masks.  Shifts are static lane shifts of a zero-extended slab (handles top/bottom rows);
    column wrap-around is masked once per dw-group (all three dh taps of a column share the
    same mask), never per tap.
    """
    cc, hw = x.shape
    zeros = jnp.zeros_like(x)
    x_hi = jnp.concatenate([x, zeros], axis=1)   # read with positive flat offsets
    x_lo = jnp.concatenate([zeros, x], axis=1)   # read with negative flat offsets

    def shifted(d):
        if d == 0:
            return x
        if d > 0:
            return x_hi[:, d:d + hw]
        return x_lo[:, hw + d:2 * hw + d]

    def col_sum(dw):
        acc = None
        for dh in (-1, 0, 1):
            idx = (dh + 1) * 3 + (dw + 1)
            term = shifted(dh * width + dw) * w9[:, idx:idx + 1]
            acc = term if acc is None else acc + term
        return acc

    out = col_sum(0)
    out = out + col_sum(-1) * left_ok
    out = out + col_sum(1) * right_ok
    return out


def _l2_normalize_rows(x):
    """torch.nn.functional.normalize(x, dim=-1): x / max(||x||_2, 1e-12) per row."""
    nrm = jnp.sqrt(jnp.sum(x * x, axis=1, keepdims=True))
    return x / jnp.maximum(nrm, 1e-12)


def _attention(x, y, w_qkv, w_qkv_dw, temp, w_proj, num_heads, left_ok, right_ok, width):
    """Restormer transposed (channel) attention on a (C, HW) slab; returns x + attn(y)."""
    c = y.shape[0]
    ch = c // num_heads
    qkv = _dwconv3x3(_mix(w_qkv, y), w_qkv_dw, left_ok, right_ok, width)   # (3C, HW)
    q, k, v = qkv[0:c], qkv[c:2 * c], qkv[2 * c:3 * c]
    o_rows = []                                   # attention-output channel rows, head-major
    for h in range(num_heads):
        qh = _l2_normalize_rows(q[h * ch:(h + 1) * ch])
        kh = _l2_normalize_rows(k[h * ch:(h + 1) * ch])
        vh = v[h * ch:(h + 1) * ch]
        t = temp[h:h + 1, 0:1]                    # per-head temperature, (1, 1)
        for i in range(ch):
            # attn[i, :] = temperature * <q_i, k_j>  (contraction over the HW lane axis)
            logits = jnp.sum(qh[i:i + 1, :] * kh, axis=1, keepdims=True) * t   # (ch, 1)
            m = jnp.max(logits, axis=0, keepdims=True)
            e = jnp.exp(logits - m)
            p = e / jnp.sum(e, axis=0, keepdims=True)                          # softmax over j
            o_rows.append(jnp.sum(p * vh, axis=0, keepdims=True))              # (1, HW)
    return _mix(w_proj, o_rows, init=x)           # project_out + residual folded in


def _ffn(x, y, w_pi, w_ffn_dw, w_po, left_ok, right_ok, width):
    """Gated-DConv FFN on a (C, HW) slab; returns x + ffn(y)."""
    f2 = w_pi.shape[0]
    f = f2 // 2
    u = _dwconv3x3(_mix(w_pi, y), w_ffn_dw, left_ok, right_ok, width)          # (2F, HW)
    g = _gelu_exact(u[0:f]) * u[f:f2]
    return _mix(w_po, g, init=x)                  # project_out + residual folded in


# ----------------------------- the fused kernel -----------------------------

def _transformer_block_kernel(x_ref, left_ref, right_ref,
                              ln1_w_ref, ln1_b_ref, w_qkv_ref, w_qkv_dw_ref,
                              temp_ref, w_proj_ref, ln2_w_ref, ln2_b_ref,
                              w_pi_ref, w_ffn_dw_ref, w_po_ref, out_ref,
                              *, num_heads, width):
    n_batch = x_ref.shape[0]
    # Hoisted loads (shared across batch / both depthwise convs).
    left_ok, right_ok = left_ref[...], right_ref[...]
    ln1_w, ln1_b = ln1_w_ref[...], ln1_b_ref[...]
    ln2_w, ln2_b = ln2_w_ref[...], ln2_b_ref[...]
    w_qkv, w_qkv_dw = w_qkv_ref[...], w_qkv_dw_ref[...]
    temp, w_proj = temp_ref[...], w_proj_ref[...]
    w_pi, w_ffn_dw, w_po = w_pi_ref[...], w_ffn_dw_ref[...], w_po_ref[...]

    for n in range(n_batch):                      # tiny static batch, unrolled; one kernel call
        x = x_ref[n]                              # (C, HW) — spatial on the lane axis
        x1 = _attention(x, _layernorm(x, ln1_w, ln1_b), w_qkv, w_qkv_dw, temp, w_proj,
                        num_heads, left_ok, right_ok, width)
        x2 = _ffn(x1, _layernorm(x1, ln2_w, ln2_b), w_pi, w_ffn_dw, w_po,
                  left_ok, right_ok, width)
        out_ref[n] = x2


# ----------------------------- wrapper -----------------------------

def transformer_block_pallas(x, params, *, num_heads):
    """x: (N, C, H, W) f32; params: PyTorch-layout weights (bias=False, WithBias LayerNorm).

    Returns (N, C, H, W). The wrapper does ONLY free reshapes — no transpose, no pad, no
    extra HBM passes around the kernel.
    """
    n, c, h, w = x.shape
    hw = h * w
    f = params["ffn_project_out_w"].shape[1]      # hidden features

    # Column-boundary validity masks for the 3x3 depthwise convs (trace-time constants).
    col = np.arange(hw, dtype=np.int32) % w
    left_ok = (col >= 1).astype(np.float32).reshape(1, hw)        # neighbor (.., w-1) exists
    right_ok = (col <= w - 2).astype(np.float32).reshape(1, hw)   # neighbor (.., w+1) exists

    args = (
        x.reshape(n, c, hw).astype(jnp.float32),
        jnp.asarray(left_ok), jnp.asarray(right_ok),
        params["norm1_w"].reshape(c, 1).astype(jnp.float32),
        params["norm1_b"].reshape(c, 1).astype(jnp.float32),
        params["attn_qkv_w"].reshape(3 * c, c).astype(jnp.float32),
        params["attn_qkv_dw_w"].reshape(3 * c, 9).astype(jnp.float32),
        params["attn_temperature"].reshape(num_heads, 1).astype(jnp.float32),
        params["attn_project_out_w"].reshape(c, c).astype(jnp.float32),
        params["norm2_w"].reshape(c, 1).astype(jnp.float32),
        params["norm2_b"].reshape(c, 1).astype(jnp.float32),
        params["ffn_project_in_w"].reshape(2 * f, c).astype(jnp.float32),
        params["ffn_dw_w"].reshape(2 * f, 9).astype(jnp.float32),
        params["ffn_project_out_w"].reshape(c, f).astype(jnp.float32),
    )
    vmem = pl.BlockSpec(memory_space=pltpu.MemorySpace.VMEM)      # whole arrays, single pass
    out_flat = pl.pallas_call(
        functools.partial(_transformer_block_kernel, num_heads=num_heads, width=w),
        out_shape=jax.ShapeDtypeStruct((n, c, hw), jnp.float32),
        in_specs=[vmem] * len(args),
        out_specs=vmem,
    )(*args)
    return out_flat.reshape(n, c, h, w)


# ----------------------------- pure-JAX reference (mirrors the PyTorch module) -----------------------------

def transformer_block_reference(x, params, *, num_heads):
    n, c, h, w = x.shape
    hi = lax.Precision.HIGHEST

    def layernorm(x4, weight, bias):
        mu = jnp.mean(x4, axis=1, keepdims=True)
        var = jnp.mean((x4 - mu) ** 2, axis=1, keepdims=True)
        return (x4 - mu) / jnp.sqrt(var + 1e-5) * weight[None, :, None, None] + bias[None, :, None, None]

    def conv1x1(x4, weight):
        return lax.conv_general_dilated(x4, weight, (1, 1), ((0, 0), (0, 0)),
                                        dimension_numbers=("NCHW", "OIHW", "NCHW"), precision=hi)

    def dwconv3x3(x4, weight):
        return lax.conv_general_dilated(x4, weight, (1, 1), ((1, 1), (1, 1)),
                                        dimension_numbers=("NCHW", "OIHW", "NCHW"),
                                        feature_group_count=x4.shape[1], precision=hi)

    def l2norm(t):
        return t / jnp.maximum(jnp.sqrt(jnp.sum(t * t, axis=-1, keepdims=True)), 1e-12)

    # x = x + attn(norm1(x))
    y = layernorm(x, params["norm1_w"], params["norm1_b"])
    qkv = dwconv3x3(conv1x1(y, params["attn_qkv_w"]), params["attn_qkv_dw_w"])
    q, k, v = jnp.split(qkv, 3, axis=1)
    q = q.reshape(n, num_heads, c // num_heads, h * w)
    k = k.reshape(n, num_heads, c // num_heads, h * w)
    v = v.reshape(n, num_heads, c // num_heads, h * w)
    attn = jnp.einsum("bhcf,bhdf->bhcd", l2norm(q), l2norm(k), precision=hi)
    attn = attn * params["attn_temperature"][None, :, :, :]
    attn = jax.nn.softmax(attn, axis=-1)
    o = jnp.einsum("bhcd,bhdf->bhcf", attn, v, precision=hi).reshape(n, c, h, w)
    x1 = x + conv1x1(o, params["attn_project_out_w"])

    # x = x + ffn(norm2(x))
    y2 = layernorm(x1, params["norm2_w"], params["norm2_b"])
    u = dwconv3x3(conv1x1(y2, params["ffn_project_in_w"]), params["ffn_dw_w"])
    u1, u2 = jnp.split(u, 2, axis=1)
    g = jax.nn.gelu(u1, approximate=False) * u2      # exact erf-GELU, like torch F.gelu default
    return x1 + conv1x1(g, params["ffn_project_out_w"])


if __name__ == "__main__":
    key = jax.random.PRNGKey(0)
    keys = jax.random.split(key, 12)

    # TransformerBlock(dim=4, num_heads=2, ffn_expansion_factor=2.0, bias=False, 'WithBias')
    # TODO(synk): conv bias=True variant not wired (demo config uses bias=False).
    N, C, H, W = 2, 4, 16, 16
    num_heads = 2
    F = int(C * 2.0)   # hidden_features

    x = jax.random.normal(keys[0], (N, C, H, W), dtype=jnp.float32)
    params = {
        "norm1_w": 1.0 + 0.1 * jax.random.normal(keys[1], (C,), dtype=jnp.float32),
        "norm1_b": 0.1 * jax.random.normal(keys[2], (C,), dtype=jnp.float32),
        "attn_qkv_w": 0.3 * jax.random.normal(keys[3], (3 * C, C, 1, 1), dtype=jnp.float32),
        "attn_qkv_dw_w": 0.3 * jax.random.normal(keys[4], (3 * C, 1, 3, 3), dtype=jnp.float32),
        "attn_temperature": 1.0 + 0.1 * jax.random.normal(keys[5], (num_heads, 1, 1), dtype=jnp.float32),
        "attn_project_out_w": 0.3 * jax.random.normal(keys[6], (C, C, 1, 1), dtype=jnp.float32),
        "norm2_w": 1.0 + 0.1 * jax.random.normal(keys[7], (C,), dtype=jnp.float32),
        "norm2_b": 0.1 * jax.random.normal(keys[8], (C,), dtype=jnp.float32),
        "ffn_project_in_w": 0.3 * jax.random.normal(keys[9], (2 * F, C, 1, 1), dtype=jnp.float32),
        "ffn_dw_w": 0.3 * jax.random.normal(keys[10], (2 * F, 1, 3, 3), dtype=jnp.float32),
        "ffn_project_out_w": 0.3 * jax.random.normal(keys[11], (C, F, 1, 1), dtype=jnp.float32),
    }

    out = transformer_block_pallas(x, params, num_heads=num_heads)
    out = jax.block_until_ready(out)

    ref = transformer_block_reference(x, params, num_heads=num_heads)
    assert out.shape == (N, C, H, W), out.shape
    max_err = float(jnp.max(jnp.abs(out - ref)))
    assert jnp.allclose(out, ref, atol=1e-4, rtol=1e-4), max_err

    print("KERNEL_OK")
</pallas_src>

<mosaic_0001>
module attributes {stable_mosaic.version = 11 : i64} {
  func.func @_transformer_block_kernel(%arg0: memref<2x4x256xf32, #tpu.memory_space<vmem>>, %arg1: memref<1x256xf32, #tpu.memory_space<vmem>>, %arg2: memref<1x256xf32, #tpu.memory_space<vmem>>, %arg3: memref<4x1xf32, #tpu.memory_space<vmem>>, %arg4: memref<4x1xf32, #tpu.memory_space<vmem>>, %arg5: memref<12x4xf32, #tpu.memory_space<vmem>>, %arg6: memref<12x9xf32, #tpu.memory_space<vmem>>, %arg7: memref<2x1xf32, #tpu.memory_space<vmem>>, %arg8: memref<4x4xf32, #tpu.memory_space<vmem>>, %arg9: memref<4x1xf32, #tpu.memory_space<vmem>>, %arg10: memref<4x1xf32, #tpu.memory_space<vmem>>, %arg11: memref<16x4xf32, #tpu.memory_space<vmem>>, %arg12: memref<16x9xf32, #tpu.memory_space<vmem>>, %arg13: memref<4x8xf32, #tpu.memory_space<vmem>>, %arg14: memref<2x4x256xf32, #tpu.memory_space<vmem>>) attributes {dimension_semantics = [], scalar_prefetch = 0 : i64, scratch_operands = 0 : i64, tpu.core_type = #tpu.core_type<tc>} {
    %c0 = arith.constant 0 : index
    %c0_0 = arith.constant 0 : index
    %0 = vector.load %arg1[%c0, %c0_0] : memref<1x256xf32, #tpu.memory_space<vmem>>, vector<1x256xf32>
    %c0_1 = arith.constant 0 : index
    %c0_2 = arith.constant 0 : index
    %1 = vector.load %arg2[%c0_1, %c0_2] : memref<1x256xf32, #tpu.memory_space<vmem>>, vector<1x256xf32>
    %c0_3 = arith.constant 0 : index
    %c0_4 = arith.constant 0 : index
    %2 = vector.load %arg3[%c0_3, %c0_4] : memref<4x1xf32, #tpu.memory_space<vmem>>, vector<4x1xf32>
    %c0_5 = arith.constant 0 : index
    %c0_6 = arith.constant 0 : index
    %3 = vector.load %arg4[%c0_5, %c0_6] : memref<4x1xf32, #tpu.memory_space<vmem>>, vector<4x1xf32>
    %c0_7 = arith.constant 0 : index
    %c0_8 = arith.constant 0 : index
    %4 = vector.load %arg9[%c0_7, %c0_8] : memref<4x1xf32, #tpu.memory_space<vmem>>, vector<4x1xf32>
    %c0_9 = arith.constant 0 : index
    %c0_10 = arith.constant 0 : index
    %5 = vector.load %arg10[%c0_9, %c0_10] : memref<4x1xf32, #tpu.memory_space<vmem>>, vector<4x1xf32>
    %c0_11 = arith.constant 0 : index
    %c0_12 = arith.constant 0 : index
    %6 = vector.load %arg5[%c0_11, %c0_12] : memref<12x4xf32, #tpu.memory_space<vmem>>, vector<12x4xf32>
    %c0_13 = arith.constant 0 : index
    %c0_14 = arith.constant 0 : index
    %7 = vector.load %arg6[%c0_13, %c0_14] : memref<12x9xf32, #tpu.memory_space<vmem>>, vector<12x9xf32>
    %c0_15 = arith.constant 0 : index
    %c0_16 = arith.constant 0 : index
    %8 = vector.load %arg7[%c0_15, %c0_16] : memref<2x1xf32, #tpu.memory_space<vmem>>, vector<2x1xf32>
    %c0_17 = arith.constant 0 : index
    %c0_18 = arith.constant 0 : index
    %9 = vector.load %arg8[%c0_17, %c0_18] : memref<4x4xf32, #tpu.memory_space<vmem>>, vector<4x4xf32>
    %c0_19 = arith.constant 0 : index
    %c0_20 = arith.constant 0 : index
    %10 = vector.load %arg11[%c0_19, %c0_20] : memref<16x4xf32, #tpu.memory_space<vmem>>, vector<16x4xf32>
    %c0_21 = arith.constant 0 : index
    %c0_22 = arith.constant 0 : index
    %11 = vector.load %arg12[%c0_21, %c0_22] : memref<16x9xf32, #tpu.memory_space<vmem>>, vector<16x9xf32>
    %c0_23 = arith.constant 0 : index
    %c0_24 = arith.constant 0 : index
    %12 = vector.load %arg13[%c0_23, %c0_24] : memref<4x8xf32, #tpu.memory_space<vmem>>, vector<4x8xf32>
    %c0_25 = arith.constant 0 : index
    %c0_26 = arith.constant 0 : index
    %c0_27 = arith.constant 0 : index
    %13 = vector.load %arg0[%c0_25, %c0_26, %c0_27] : memref<2x4x256xf32, #tpu.memory_space<vmem>>, vector<1x4x256xf32>
    %14 = vector.shape_cast %13 : vector<1x4x256xf32> to vector<4x256xf32>
    %cst = arith.constant dense<0.000000e+00> : vector<256xf32>
    %15 = vector.multi_reduction <add>, %14, %cst [0] : vector<4x256xf32> to vector<256xf32>
    %16 = vector.shape_cast %15 : vector<256xf32> to vector<1x256xf32>
    %cst_28 = arith.constant 4.000000e+00 : f32
    %17 = vector.broadcast %cst_28 : f32 to vector<1x256xf32>
    %18 = arith.divf %16, %17 : vector<1x256xf32>
    %19 = vector.broadcast %18 : vector<1x256xf32> to vector<4x256xf32>
    %20 = arith.subf %14, %19 : vector<4x256xf32>
    %21 = arith.mulf %20, %20 : vector<4x256xf32>
    %cst_29 = arith.constant dense<0.000000e+00> : vector<256xf32>
    %22 = vector.multi_reduction <add>, %21, %cst_29 [0] : vector<4x256xf32> to vector<256xf32>
    %23 = vector.shape_cast %22 : vector<256xf32> to vector<1x256xf32>
    %cst_30 = arith.constant 4.000000e+00 : f32
    %24 = vector.broadcast %cst_30 : f32 to vector<1x256xf32>
    %25 = arith.divf %23, %24 : vector<1x256xf32>
    %cst_31 = arith.constant 9.99999974E-6 : f32
    %26 = vector.broadcast %cst_31 : f32 to vector<1x256xf32>
    %27 = arith.addf %25, %26 : vector<1x256xf32>
    %28 = math.rsqrt %27 : vector<1x256xf32>
    %29 = vector.broadcast %28 : vector<1x256xf32> to vector<4x256xf32>
    %30 = arith.mulf %20, %29 : vector<4x256xf32>
    %31 = vector.broadcast %2 : vector<4x1xf32> to vector<4x256xf32>
    %32 = arith.mulf %30, %31 : vector<4x256xf32>
    %33 = vector.broadcast %3 : vector<4x1xf32> to vector<4x256xf32>
    %34 = arith.addf %32, %33 : vector<4x256xf32>
    %35 = vector.extract_strided_slice %34 {offsets = [0, 0], sizes = [1, 256], strides = [1, 1]} : vector<4x256xf32> to vector<1x256xf32>
    %36 = vector.extract_strided_slice %34 {offsets = [1, 0], sizes = [1, 256], strides = [1, 1]} : vector<4x256xf32> to vector<1x256xf32>
    %37 = vector.extract_strided_slice %34 {offsets = [2, 0], sizes = [1, 256], strides = [1, 1]} : vector<4x256xf32> to vector<1x256xf32>
    %38 = vector.extract_strided_slice %34 {offsets = [3, 0], sizes = [1, 256], strides = [1, 1]} : vector<4x256xf32> to vector<1x256xf32>
    %39 = vector.extract_strided_slice %6 {offsets = [0, 0], sizes = [12, 1], strides = [1, 1]} : vector<12x4xf32> to vector<12x1xf32>
    %40 = vector.broadcast %39 : vector<12x1xf32> to vector<12x256xf32>
    %41 = vector.broadcast %35 : vector<1x256xf32> to vector<12x256xf32>
    %42 = arith.mulf %40, %41 : vector<12x256xf32>
    %43 = vector.extract_strided_slice %6 {offsets = [0, 1], sizes = [12, 1], strides = [1, 1]} : vector<12x4xf32> to vector<12x1xf32>
    %44 = vector.broadcast %43 : vector<12x1xf32> to vector<12x256xf32>
    %45 = vector.broadcast %36 : vector<1x256xf32> to vector<12x256xf32>
    %46 = arith.mulf %44, %45 : vector<12x256xf32>
    %47 = arith.addf %42, %46 : vector<12x256xf32>
    %48 = vector.extract_strided_slice %6 {offsets = [0, 2], sizes = [12, 1], strides = [1, 1]} : vector<12x4xf32> to vector<12x1xf32>
    %49 = vector.broadcast %48 : vector<12x1xf32> to vector<12x256xf32>
    %50 = vector.broadcast %37 : vector<1x256xf32> to vector<12x256xf32>
    %51 = arith.mulf %49, %50 : vector<12x256xf32>
    %52 = arith.addf %47, %51 : vector<12x256xf32>
    %53 = vector.extract_strided_slice %6 {offsets = [0, 3], sizes = [12, 1], strides = [1, 1]} : vector<12x4xf32> to vector<12x1xf32>
    %54 = vector.broadcast %53 : vector<12x1xf32> to vector<12x256xf32>
    %55 = vector.broadcast %38 : vector<1x256xf32> to vector<12x256xf32>
    %56 = arith.mulf %54, %55 : vector<12x256xf32>
    %57 = arith.addf %52, %56 : vector<12x256xf32>
    %cst_32 = arith.constant 0.000000e+00 : f32
    %58 = vector.broadcast %cst_32 : f32 to vector<12x256xf32>
    %59 = tpu.concatenate %57, %58 in 1 : vector<12x256xf32>, vector<12x256xf32> -> vector<12x512xf32>
    %60 = tpu.concatenate %58, %57 in 1 : vector<12x256xf32>, vector<12x256xf32> -> vector<12x512xf32>
    %61 = vector.extract_strided_slice %60 {offsets = [0, 240], sizes = [12, 256], strides = [1, 1]} : vector<12x512xf32> to vector<12x256xf32>
    %62 = vector.extract_strided_slice %7 {offsets = [0, 1], sizes = [12, 1], strides = [1, 1]} : vector<12x9xf32> to vector<12x1xf32>
    %63 = vector.broadcast %62 : vector<12x1xf32> to vector<12x256xf32>
    %64 = arith.mulf %61, %63 : vector<12x256xf32>
    %65 = vector.extract_strided_slice %7 {offsets = [0, 4], sizes = [12, 1], strides = [1, 1]} : vector<12x9xf32> to vector<12x1xf32>
    %66 = vector.broadcast %65 : vector<12x1xf32> to vector<12x256xf32>
    %67 = arith.mulf %57, %66 : vector<12x256xf32>
    %68 = arith.addf %64, %67 : vector<12x256xf32>
    %69 = vector.extract_strided_slice %59 {offsets = [0, 16], sizes = [12, 256], strides = [1, 1]} : vector<12x512xf32> to vector<12x256xf32>
    %70 = vector.extract_strided_slice %7 {offsets = [0, 7], sizes = [12, 1], strides = [1, 1]} : vector<12x9xf32> to vector<12x1xf32>
    %71 = vector.broadcast %70 : vector<12x1xf32> to vector<12x256xf32>
    %72 = arith.mulf %69, %71 : vector<12x256xf32>
    %73 = arith.addf %68, %72 : vector<12x256xf32>
    %74 = vector.extract_strided_slice %60 {offsets = [0, 239], sizes = [12, 256], strides = [1, 1]} : vector<12x512xf32> to vector<12x256xf32>
    %75 = vector.extract_strided_slice %7 {offsets = [0, 0], sizes = [12, 1], strides = [1, 1]} : vector<12x9xf32> to vector<12x1xf32>
    %76 = vector.broadcast %75 : vector<12x1xf32> to vector<12x256xf32>
    %77 = arith.mulf %74, %76 : vector<12x256xf32>
    %78 = vector.extract_strided_slice %60 {offsets = [0, 255], sizes = [12, 256], strides = [1, 1]} : vector<12x512xf32> to vector<12x256xf32>
    %79 = vector.extract_strided_slice %7 {offsets = [0, 3], sizes = [12, 1], strides = [1, 1]} : vector<12x9xf32> to vector<12x1xf32>
    %80 = vector.broadcast %79 : vector<12x1xf32> to vector<12x256xf32>
    %81 = arith.mulf %78, %80 : vector<12x256xf32>
    %82 = arith.addf %77, %81 : vector<12x256xf32>
    %83 = vector.extract_strided_slice %59 {offsets = [0, 15], sizes = [12, 256], strides = [1, 1]} : vector<12x512xf32> to vector<12x256xf32>
    %84 = vector.extract_strided_slice %7 {offsets = [0, 6], sizes = [12, 1], strides = [1, 1]} : vector<12x9xf32> to vector<12x1xf32>
    %85 = vector.broadcast %84 : vector<12x1xf32> to vector<12x256xf32>
    %86 = arith.mulf %83, %85 : vector<12x256xf32>
    %87 = arith.addf %82, %86 : vector<12x256xf32>
    %88 = vector.broadcast %0 : vector<1x256xf32> to vector<12x256xf32>
    %89 = arith.mulf %87, %88 : vector<12x256xf32>
    %90 = arith.addf %73, %89 : vector<12x256xf32>
    %91 = vector.extract_strided_slice %60 {offsets = [0, 241], sizes = [12, 256], strides = [1, 1]} : vector<12x512xf32> to vector<12x256xf32>
    %92 = vector.extract_strided_slice %7 {offsets = [0, 2], sizes = [12, 1], strides = [1, 1]} : vector<12x9xf32> to vector<12x1xf32>
    %93 = vector.broadcast %92 : vector<12x1xf32> to vector<12x256xf32>
    %94 = arith.mulf %91, %93 : vector<12x256xf32>
    %95 = vector.extract_strided_slice %59 {offsets = [0, 1], sizes = [12, 256], strides = [1, 1]} : vector<12x512xf32> to vector<12x256xf32>
    %96 = vector.extract_strided_slice %7 {offsets = [0, 5], sizes = [12, 1], strides = [1, 1]} : vector<12x9xf32> to vector<12x1xf32>
    %97 = vector.broadcast %96 : vector<12x1xf32> to vector<12x256xf32>
    %98 = arith.mulf %95, %97 : vector<12x256xf32>
    %99 = arith.addf %94, %98 : vector<12x256xf32>
    %100 = vector.extract_strided_slice %59 {offsets = [0, 17], sizes = [12, 256], strides = [1, 1]} : vector<12x512xf32> to vector<12x256xf32>
    %101 = vector.extract_strided_slice %7 {offsets = [0, 8], sizes = [12, 1], strides = [1, 1]} : vector<12x9xf32> to vector<12x1xf32>
    %102 = vector.broadcast %101 : vector<12x1xf32> to vector<12x256xf32>
    %103 = arith.mulf %100, %102 : vector<12x256xf32>
    %104 = arith.addf %99, %103 : vector<12x256xf32>
    %105 = vector.broadcast %1 : vector<1x256xf32> to vector<12x256xf32>
    %106 = arith.mulf %104, %105 : vector<12x256xf32>
    %107 = arith.addf %90, %106 : vector<12x256xf32>
    %108 = vector.extract_strided_slice %107 {offsets = [0, 0], sizes = [4, 256], strides = [1, 1]} : vector<12x256xf32> to vector<4x256xf32>
    %109 = vector.extract_strided_slice %107 {offsets = [4, 0], sizes = [4, 256], strides = [1, 1]} : vector<12x256xf32> to vector<4x256xf32>
    %110 = vector.extract_strided_slice %107 {offsets = [8, 0], sizes = [4, 256], strides = [1, 1]} : vector<12x256xf32> to vector<4x256xf32>
    %111 = vector.extract_strided_slice %108 {offsets = [0, 0], sizes = [2, 256], strides = [1, 1]} : vector<4x256xf32> to vector<2x256xf32>
    %112 = arith.mulf %111, %111 : vector<2x256xf32>
    %cst_33 = arith.constant dense<0.000000e+00> : vector<2xf32>
    %113 = vector.multi_reduction <add>, %112, %cst_33 [1] : vector<2x256xf32> to vector<2xf32>
    %114 = vector.shape_cast %113 : vector<2xf32> to vector<2x1xf32>
    %115 = math.sqrt %114 : vector<2x1xf32>
    %cst_34 = arith.constant 9.99999996E-13 : f32
    %116 = vector.broadcast %cst_34 : f32 to vector<2x1xf32>
    %117 = arith.maximumf %115, %116 : vector<2x1xf32>
    %118 = vector.broadcast %117 : vector<2x1xf32> to vector<2x256xf32>
    %119 = arith.divf %111, %118 : vector<2x256xf32>
    %120 = vector.extract_strided_slice %109 {offsets = [0, 0], sizes = [2, 256], strides = [1, 1]} : vector<4x256xf32> to vector<2x256xf32>
    %121 = arith.mulf %120, %120 : vector<2x256xf32>
    %cst_35 = arith.constant dense<0.000000e+00> : vector<2xf32>
    %122 = vector.multi_reduction <add>, %121, %cst_35 [1] : vector<2x256xf32> to vector<2xf32>
    %123 = vector.shape_cast %122 : vector<2xf32> to vector<2x1xf32>
    %124 = math.sqrt %123 : vector<2x1xf32>
    %cst_36 = arith.constant 9.99999996E-13 : f32
    %125 = vector.broadcast %cst_36 : f32 to vector<2x1xf32>
    %126 = arith.maximumf %124, %125 : vector<2x1xf32>
    %127 = vector.broadcast %126 : vector<2x1xf32> to vector<2x256xf32>
    %128 = arith.divf %120, %127 : vector<2x256xf32>
    %129 = vector.extract_strided_slice %110 {offsets = [0, 0], sizes = [2, 256], strides = [1, 1]} : vector<4x256xf32> to vector<2x256xf32>
    %130 = vector.extract_strided_slice %8 {offsets = [0, 0], sizes = [1, 1], strides = [1, 1]} : vector<2x1xf32> to vector<1x1xf32>
    %131 = vector.extract_strided_slice %119 {offsets = [0, 0], sizes = [1, 256], strides = [1, 1]} : vector<2x256xf32> to vector<1x256xf32>
    %132 = vector.broadcast %131 : vector<1x256xf32> to vector<2x256xf32>
    %133 = arith.mulf %132, %128 : vector<2x256xf32>
    %cst_37 = arith.constant dense<0.000000e+00> : vector<2xf32>
    %134 = vector.multi_reduction <add>, %133, %cst_37 [1] : vector<2x256xf32> to vector<2xf32>
    %135 = vector.shape_cast %134 : vector<2xf32> to vector<2x1xf32>
    %136 = vector.broadcast %130 : vector<1x1xf32> to vector<2x1xf32>
    %137 = arith.mulf %135, %136 : vector<2x1xf32>
    %cst_38 = arith.constant dense<0xFF800000> : vector<1xf32>
    %138 = vector.multi_reduction <maximumf>, %137, %cst_38 [0] : vector<2x1xf32> to vector<1xf32>
    %139 = vector.shape_cast %138 : vector<1xf32> to vector<1x1xf32>
    %140 = vector.broadcast %139 : vector<1x1xf32> to vector<2x1xf32>
    %141 = arith.subf %137, %140 : vector<2x1xf32>
    %142 = math.exp %141 : vector<2x1xf32>
    %cst_39 = arith.constant dense<0.000000e+00> : vector<1xf32>
    %143 = vector.multi_reduction <add>, %142, %cst_39 [0] : vector<2x1xf32> to vector<1xf32>
    %144 = vector.shape_cast %143 : vector<1xf32> to vector<1x1xf32>
    %145 = vector.broadcast %144 : vector<1x1xf32> to vector<2x1xf32>
    %146 = arith.divf %142, %145 : vector<2x1xf32>
    %147 = vector.broadcast %146 : vector<2x1xf32> to vector<2x256xf32>
    %148 = arith.mulf %147, %129 : vector<2x256xf32>
    %cst_40 = arith.constant dense<0.000000e+00> : vector<256xf32>
    %149 = vector.multi_reduction <add>, %148, %cst_40 [0] : vector<2x256xf32> to vector<256xf32>
    %150 = vector.shape_cast %149 : vector<256xf32> to vector<1x256xf32>
    %151 = vector.extract_strided_slice %119 {offsets = [1, 0], sizes = [1, 256], strides = [1, 1]} : vector<2x256xf32> to vector<1x256xf32>
    %152 = vector.broadcast %151 : vector<1x256xf32> to vector<2x256xf32>
    %153 = arith.mulf %152, %128 : vector<2x256xf32>
    %cst_41 = arith.constant dense<0.000000e+00> : vector<2xf32>
    %154 = vector.multi_reduction <add>, %153, %cst_41 [1] : vector<2x256xf32> to vector<2xf32>
    %155 = vector.shape_cast %154 : vector<2xf32> to vector<2x1xf32>
    %156 = vector.broadcast %130 : vector<1x1xf32> to vector<2x1xf32>
    %157 = arith.mulf %155, %156 : vector<2x1xf32>
    %cst_42 = arith.constant dense<0xFF800000> : vector<1xf32>
    %158 = vector.multi_reduction <maximumf>, %157, %cst_42 [0] : vector<2x1xf32> to vector<1xf32>
    %159 = vector.shape_cast %158 : vector<1xf32> to vector<1x1xf32>
    %160 = vector.broadcast %159 : vector<1x1xf32> to vector<2x1xf32>
    %161 = arith.subf %157, %160 : vector<2x1xf32>
    %162 = math.exp %161 : vector<2x1xf32>
    %cst_43 = arith.constant dense<0.000000e+00> : vector<1xf32>
    %163 = vector.multi_reduction <add>, %162, %cst_43 [0] : vector<2x1xf32> to vector<1xf32>
    %164 = vector.shape_cast %163 : vector<1xf32> to vector<1x1xf32>
    %165 = vector.broadcast %164 : vector<1x1xf32> to vector<2x1xf32>
    %166 = arith.divf %162, %165 : vector<2x1xf32>
    %167 = vector.broadcast %166 : vector<2x1xf32> to vector<2x256xf32>
    %168 = arith.mulf %167, %129 : vector<2x256xf32>
    %cst_44 = arith.constant dense<0.000000e+00> : vector<256xf32>
    %169 = vector.multi_reduction <add>, %168, %cst_44 [0] : vector<2x256xf32> to vector<256xf32>
    %170 = vector.shape_cast %169 : vector<256xf32> to vector<1x256xf32>
    %171 = vector.extract_strided_slice %108 {offsets = [2, 0], sizes = [2, 256], strides = [1, 1]} : vector<4x256xf32> to vector<2x256xf32>
    %172 = arith.mulf %171, %171 : vector<2x256xf32>
    %cst_45 = arith.constant dense<0.000000e+00> : vector<2xf32>
    %173 = vector.multi_reduction <add>, %172, %cst_45 [1] : vector<2x256xf32> to vector<2xf32>
    %174 = vector.shape_cast %173 : vector<2xf32> to vector<2x1xf32>
    %175 = math.sqrt %174 : vector<2x1xf32>
    %cst_46 = arith.constant 9.99999996E-13 : f32
    %176 = vector.broadcast %cst_46 : f32 to vector<2x1xf32>
    %177 = arith.maximumf %175, %176 : vector<2x1xf32>
    %178 = vector.broadcast %177 : vector<2x1xf32> to vector<2x256xf32>
    %179 = arith.divf %171, %178 : vector<2x256xf32>
    %180 = vector.extract_strided_slice %109 {offsets = [2, 0], sizes = [2, 256], strides = [1, 1]} : vector<4x256xf32> to vector<2x256xf32>
    %181 = arith.mulf %180, %180 : vector<2x256xf32>
    %cst_47 = arith.constant dense<0.000000e+00> : vector<2xf32>
    %182 = vector.multi_reduction <add>, %181, %cst_47 [1] : vector<2x256xf32> to vector<2xf32>
    %183 = vector.shape_cast %182 : vector<2xf32> to vector<2x1xf32>
    %184 = math.sqrt %183 : vector<2x1xf32>
    %cst_48 = arith.constant 9.99999996E-13 : f32
    %185 = vector.broadcast %cst_48 : f32 to vector<2x1xf32>
    %186 = arith.maximumf %184, %185 : vector<2x1xf32>
    %187 = vector.broadcast %186 : vector<2x1xf32> to vector<2x256xf32>
    %188 = arith.divf %180, %187 : vector<2x256xf32>
    %189 = vector.extract_strided_slice %110 {offsets = [2, 0], sizes = [2, 256], strides = [1, 1]} : vector<4x256xf32> to vector<2x256xf32>
    %190 = vector.extract_strided_slice %8 {offsets = [1, 0], sizes = [1, 1], strides = [1, 1]} : vector<2x1xf32> to vector<1x1xf32>
    %191 = vector.extract_strided_slice %179 {offsets = [0, 0], sizes = [1, 256], strides = [1, 1]} : vector<2x256xf32> to vector<1x256xf32>
    %192 = vector.broadcast %191 : vector<1x256xf32> to vector<2x256xf32>
    %193 = arith.mulf %192, %188 : vector<2x256xf32>
    %cst_49 = arith.constant dense<0.000000e+00> : vector<2xf32>
    %194 = vector.multi_reduction <add>, %193, %cst_49 [1] : vector<2x256xf32> to vector<2xf32>
    %195 = vector.shape_cast %194 : vector<2xf32> to vector<2x1xf32>
    %196 = vector.broadcast %190 : vector<1x1xf32> to vector<2x1xf32>
    %197 = arith.mulf %195, %196 : vector<2x1xf32>
    %cst_50 = arith.constant dense<0xFF800000> : vector<1xf32>
    %198 = vector.multi_reduction <maximumf>, %197, %cst_50 [0] : vector<2x1xf32> to vector<1xf32>
    %199 = vector.shape_cast %198 : vector<1xf32> to vector<1x1xf32>
    %200 = vector.broadcast %199 : vector<1x1xf32> to vector<2x1xf32>
    %201 = arith.subf %197, %200 : vector<2x1xf32>
    %202 = math.exp %201 : vector<2x1xf32>
    %cst_51 = arith.constant dense<0.000000e+00> : vector<1xf32>
    %203 = vector.multi_reduction <add>, %202, %cst_51 [0] : vector<2x1xf32> to vector<1xf32>
    %204 = vector.shape_cast %203 : vector<1xf32> to vector<1x1xf32>
    %205 = vector.broadcast %204 : vector<1x1xf32> to vector<2x1xf32>
    %206 = arith.divf %202, %205 : vector<2x1xf32>
    %207 = vector.broadcast %206 : vector<2x1xf32> to vector<2x256xf32>
    %208 = arith.mulf %207, %189 : vector<2x256xf32>
    %cst_52 = arith.constant dense<0.000000e+00> : vector<256xf32>
    %209 = vector.multi_reduction <add>, %208, %cst_52 [0] : vector<2x256xf32> to vector<256xf32>
    %210 = vector.shape_cast %209 : vector<256xf32> to vector<1x256xf32>
    %211 = vector.extract_strided_slice %179 {offsets = [1, 0], sizes = [1, 256], strides = [1, 1]} : vector<2x256xf32> to vector<1x256xf32>
    %212 = vector.broadcast %211 : vector<1x256xf32> to vector<2x256xf32>
    %213 = arith.mulf %212, %188 : vector<2x256xf32>
    %cst_53 = arith.constant dense<0.000000e+00> : vector<2xf32>
    %214 = vector.multi_reduction <add>, %213, %cst_53 [1] : vector<2x256xf32> to vector<2xf32>
    %215 = vector.shape_cast %214 : vector<2xf32> to vector<2x1xf32>
    %216 = vector.broadcast %190 : vector<1x1xf32> to vector<2x1xf32>
    %217 = arith.mulf %215, %216 : vector<2x1xf32>
    %cst_54 = arith.constant dense<0xFF800000> : vector<1xf32>
    %218 = vector.multi_reduction <maximumf>, %217, %cst_54 [0] : vector<2x1xf32> to vector<1xf32>
    %219 = vector.shape_cast %218 : vector<1xf32> to vector<1x1xf32>
    %220 = vector.broadcast %219 : vector<1x1xf32> to vector<2x1xf32>
    %221 = arith.subf %217, %220 : vector<2x1xf32>
    %222 = math.exp %221 : vector<2x1xf32>
    %cst_55 = arith.constant dense<0.000000e+00> : vector<1xf32>
    %223 = vector.multi_reduction <add>, %222, %cst_55 [0] : vector<2x1xf32> to vector<1xf32>
    %224 = vector.shape_cast %223 : vector<1xf32> to vector<1x1xf32>
    %225 = vector.broadcast %224 : vector<1x1xf32> to vector<2x1xf32>
    %226 = arith.divf %222, %225 : vector<2x1xf32>
    %227 = vector.broadcast %226 : vector<2x1xf32> to vector<2x256xf32>
    %228 = arith.mulf %227, %189 : vector<2x256xf32>
    %cst_56 = arith.constant dense<0.000000e+00> : vector<256xf32>
    %229 = vector.multi_reduction <add>, %228, %cst_56 [0] : vector<2x256xf32> to vector<256xf32>
    %230 = vector.shape_cast %229 : vector<256xf32> to vector<1x256xf32>
    %231 = vector.extract_strided_slice %9 {offsets = [0, 0], sizes = [4, 1], strides = [1, 1]} : vector<4x4xf32> to vector<4x1xf32>
    %232 = vector.broadcast %231 : vector<4x1xf32> to vector<4x256xf32>
    %233 = vector.broadcast %150 : vector<1x256xf32> to vector<4x256xf32>
    %234 = arith.mulf %232, %233 : vector<4x256xf32>
    %235 = arith.addf %14, %234 : vector<4x256xf32>
    %236 = vector.extract_strided_slice %9 {offsets = [0, 1], sizes = [4, 1], strides = [1, 1]} : vector<4x4xf32> to vector<4x1xf32>
    %237 = vector.broadcast %236 : vector<4x1xf32> to vector<4x256xf32>
    %238 = vector.broadcast %170 : vector<1x256xf32> to vector<4x256xf32>
    %239 = arith.mulf %237, %238 : vector<4x256xf32>
    %240 = arith.addf %235, %239 : vector<4x256xf32>
    %241 = vector.extract_strided_slice %9 {offsets = [0, 2], sizes = [4, 1], strides = [1, 1]} : vector<4x4xf32> to vector<4x1xf32>
    %242 = vector.broadcast %241 : vector<4x1xf32> to vector<4x256xf32>
    %243 = vector.broadcast %210 : vector<1x256xf32> to vector<4x256xf32>
    %244 = arith.mulf %242, %243 : vector<4x256xf32>
    %245 = arith.addf %240, %244 : vector<4x256xf32>
    %246 = vector.extract_strided_slice %9 {offsets = [0, 3], sizes = [4, 1], strides = [1, 1]} : vector<4x4xf32> to vector<4x1xf32>
    %247 = vector.broadcast %246 : vector<4x1xf32> to vector<4x256xf32>
    %248 = vector.broadcast %230 : vector<1x256xf32> to vector<4x256xf32>
    %249 = arith.mulf %247, %248 : vector<4x256xf32>
    %250 = arith.addf %245, %249 : vector<4x256xf32>
    %cst_57 = arith.constant dense<0.000000e+00> : vector<256xf32>
    %251 = vector.multi_reduction <add>, %250, %cst_57 [0] : vector<4x256xf32> to vector<256xf32>
    %252 = vector.shape_cast %251 : vector<256xf32> to vector<1x256xf32>
    %cst_58 = arith.constant 4.000000e+00 : f32
    %253 = vector.broadcast %cst_58 : f32 to vector<1x256xf32>
    %254 = arith.divf %252, %253 : vector<1x256xf32>
    %255 = vector.broadcast %254 : vector<1x256xf32> to vector<4x256xf32>
    %256 = arith.subf %250, %255 : vector<4x256xf32>
    %257 = arith.mulf %256, %256 : vector<4x256xf32>
    %cst_59 = arith.constant dense<0.000000e+00> : vector<256xf32>
    %258 = vector.multi_reduction <add>, %257, %cst_59 [0] : vector<4x256xf32> to vector<256xf32>
    %259 = vector.shape_cast %258 : vector<256xf32> to vector<1x256xf32>
    %cst_60 = arith.constant 4.000000e+00 : f32
    %260 = vector.broadcast %cst_60 : f32 to vector<1x256xf32>
    %261 = arith.divf %259, %260 : vector<1x256xf32>
    %cst_61 = arith.constant 9.99999974E-6 : f32
    %262 = vector.broadcast %cst_61 : f32 to vector<1x256xf32>
    %263 = arith.addf %261, %262 : vector<1x256xf32>
    %264 = math.rsqrt %263 : vector<1x256xf32>
    %265 = vector.broadcast %264 : vector<1x256xf32> to vector<4x256xf32>
    %266 = arith.mulf %256, %265 : vector<4x256xf32>
    %267 = vector.broadcast %4 : vector<4x1xf32> to vector<4x256xf32>
    %268 = arith.mulf %266, %267 : vector<4x256xf32>
    %269 = vector.broadcast %5 : vector<4x1xf32> to vector<4x256xf32>
    %270 = arith.addf %268, %269 : vector<4x256xf32>
    %271 = vector.extract_strided_slice %270 {offsets = [0, 0], sizes = [1, 256], strides = [1, 1]} : vector<4x256xf32> to vector<1x256xf32>
    %272 = vector.extract_strided_slice %270 {offsets = [1, 0], sizes = [1, 256], strides = [1, 1]} : vector<4x256xf32> to vector<1x256xf32>
    %273 = vector.extract_strided_slice %270 {offsets = [2, 0], sizes = [1, 256], strides = [1, 1]} : vector<4x256xf32> to vector<1x256xf32>
    %274 = vector.extract_strided_slice %270 {offsets = [3, 0], sizes = [1, 256], strides = [1, 1]} : vector<4x256xf32> to vector<1x256xf32>
    %275 = vector.extract_strided_slice %10 {offsets = [0, 0], sizes = [16, 1], strides = [1, 1]} : vector<16x4xf32> to vector<16x1xf32>
    %276 = vector.broadcast %275 : vector<16x1xf32> to vector<16x256xf32>
    %277 = vector.broadcast %271 : vector<1x256xf32> to vector<16x256xf32>
    %278 = arith.mulf %276, %277 : vector<16x256xf32>
    %279 = vector.extract_strided_slice %10 {offsets = [0, 1], sizes = [16, 1], strides = [1, 1]} : vector<16x4xf32> to vector<16x1xf32>
    %280 = vector.broadcast %279 : vector<16x1xf32> to vector<16x256xf32>
    %281 = vector.broadcast %272 : vector<1x256xf32> to vector<16x256xf32>
    %282 = arith.mulf %280, %281 : vector<16x256xf32>
    %283 = arith.addf %278, %282 : vector<16x256xf32>
    %284 = vector.extract_strided_slice %10 {offsets = [0, 2], sizes = [16, 1], strides = [1, 1]} : vector<16x4xf32> to vector<16x1xf32>
    %285 = vector.broadcast %284 : vector<16x1xf32> to vector<16x256xf32>
    %286 = vector.broadcast %273 : vector<1x256xf32> to vector<16x256xf32>
    %287 = arith.mulf %285, %286 : vector<16x256xf32>
    %288 = arith.addf %283, %287 : vector<16x256xf32>
    %289 = vector.extract_strided_slice %10 {offsets = [0, 3], sizes = [16, 1], strides = [1, 1]} : vector<16x4xf32> to vector<16x1xf32>
    %290 = vector.broadcast %289 : vector<16x1xf32> to vector<16x256xf32>
    %291 = vector.broadcast %274 : vector<1x256xf32> to vector<16x256xf32>
    %292 = arith.mulf %290, %291 : vector<16x256xf32>
    %293 = arith.addf %288, %292 : vector<16x256xf32>
    %cst_62 = arith.constant 0.000000e+00 : f32
    %294 = vector.broadcast %cst_62 : f32 to vector<16x256xf32>
    %295 = tpu.concatenate %293, %294 in 1 : vector<16x256xf32>, vector<16x256xf32> -> vector<16x512xf32>
    %296 = tpu.concatenate %294, %293 in 1 : vector<16x256xf32>, vector<16x256xf32> -> vector<16x512xf32>
    %297 = vector.extract_strided_slice %296 {offsets = [0, 240], sizes = [16, 256], strides = [1, 1]} : vector<16x512xf32> to vector<16x256xf32>
    %298 = vector.extract_strided_slice %11 {offsets = [0, 1], sizes = [16, 1], strides = [1, 1]} : vector<16x9xf32> to vector<16x1xf32>
    %299 = vector.broadcast %298 : vector<16x1xf32> to vector<16x256xf32>
    %300 = arith.mulf %297, %299 : vector<16x256xf32>
    %301 = vector.extract_strided_slice %11 {offsets = [0, 4], sizes = [16, 1], strides = [1, 1]} : vector<16x9xf32> to vector<16x1xf32>
    %302 = vector.broadcast %301 : vector<16x1xf32> to vector<16x256xf32>
    %303 = arith.mulf %293, %302 : vector<16x256xf32>
    %304 = arith.addf %300, %303 : vector<16x256xf32>
    %305 = vector.extract_strided_slice %295 {offsets = [0, 16], sizes = [16, 256], strides = [1, 1]} : vector<16x512xf32> to vector<16x256xf32>
    %306 = vector.extract_strided_slice %11 {offsets = [0, 7], sizes = [16, 1], strides = [1, 1]} : vector<16x9xf32> to vector<16x1xf32>
    %307 = vector.broadcast %306 : vector<16x1xf32> to vector<16x256xf32>
    %308 = arith.mulf %305, %307 : vector<16x256xf32>
    %309 = arith.addf %304, %308 : vector<16x256xf32>
    %310 = vector.extract_strided_slice %296 {offsets = [0, 239], sizes = [16, 256], strides = [1, 1]} : vector<16x512xf32> to vector<16x256xf32>
    %311 = vector.extract_strided_slice %11 {offsets = [0, 0], sizes = [16, 1], strides = [1, 1]} : vector<16x9xf32> to vector<16x1xf32>
    %312 = vector.broadcast %311 : vector<16x1xf32> to vector<16x256xf32>
    %313 = arith.mulf %310, %312 : vector<16x256xf32>
    %314 = vector.extract_strided_slice %296 {offsets = [0, 255], sizes = [16, 256], strides = [1, 1]} : vector<16x512xf32> to vector<16x256xf32>
    %315 = vector.extract_strided_slice %11 {offsets = [0, 3], sizes = [16, 1], strides = [1, 1]} : vector<16x9xf32> to vector<16x1xf32>
    %316 = vector.broadcast %315 : vector<16x1xf32> to vector<16x256xf32>
    %317 = arith.mulf %314, %316 : vector<16x256xf32>
    %318 = arith.addf %313, %317 : vector<16x256xf32>
    %319 = vector.extract_strided_slice %295 {offsets = [0, 15], sizes = [16, 256], strides = [1, 1]} : vector<16x512xf32> to vector<16x256xf32>
    %320 = vector.extract_strided_slice %11 {offsets = [0, 6], sizes = [16, 1], strides = [1, 1]} : vector<16x9xf32> to vector<16x1xf32>
    %321 = vector.broadcast %320 : vector<16x1xf32> to vector<16x256xf32>
    %322 = arith.mulf %319, %321 : vector<16x256xf32>
    %323 = arith.addf %318, %322 : vector<16x256xf32>
    %324 = vector.broadcast %0 : vector<1x256xf32> to vector<16x256xf32>
    %325 = arith.mulf %323, %324 : vector<16x256xf32>
    %326 = arith.addf %309, %325 : vector<16x256xf32>
    %327 = vector.extract_strided_slice %296 {offsets = [0, 241], sizes = [16, 256], strides = [1, 1]} : vector<16x512xf32> to vector<16x256xf32>
    %328 = vector.extract_strided_slice %11 {offsets = [0, 2], sizes = [16, 1], strides = [1, 1]} : vector<16x9xf32> to vector<16x1xf32>
    %329 = vector.broadcast %328 : vector<16x1xf32> to vector<16x256xf32>
    %330 = arith.mulf %327, %329 : vector<16x256xf32>
    %331 = vector.extract_strided_slice %295 {offsets = [0, 1], sizes = [16, 256], strides = [1, 1]} : vector<16x512xf32> to vector<16x256xf32>
    %332 = vector.extract_strided_slice %11 {offsets = [0, 5], sizes = [16, 1], strides = [1, 1]} : vector<16x9xf32> to vector<16x1xf32>
    %333 = vector.broadcast %332 : vector<16x1xf32> to vector<16x256xf32>
    %334 = arith.mulf %331, %333 : vector<16x256xf32>
    %335 = arith.addf %330, %334 : vector<16x256xf32>
    %336 = vector.extract_strided_slice %295 {offsets = [0, 17], sizes = [16, 256], strides = [1, 1]} : vector<16x512xf32> to vector<16x256xf32>
    %337 = vector.extract_strided_slice %11 {offsets = [0, 8], sizes = [16, 1], strides = [1, 1]} : vector<16x9xf32> to vector<16x1xf32>
    %338 = vector.broadcast %337 : vector<16x1xf32> to vector<16x256xf32>
    %339 = arith.mulf %336, %338 : vector<16x256xf32>
    %340 = arith.addf %335, %339 : vector<16x256xf32>
    %341 = vector.broadcast %1 : vector<1x256xf32> to vector<16x256xf32>
    %342 = arith.mulf %340, %341 : vector<16x256xf32>
    %343 = arith.addf %326, %342 : vector<16x256xf32>
    %344 = vector.extract_strided_slice %343 {offsets = [0, 0], sizes = [8, 256], strides = [1, 1]} : vector<16x256xf32> to vector<8x256xf32>
    %cst_63 = arith.constant 5.000000e-01 : f32
    %345 = vector.broadcast %cst_63 : f32 to vector<8x256xf32>
    %346 = arith.mulf %345, %344 : vector<8x256xf32>
    %cst_64 = arith.constant 0.707106769 : f32
    %347 = vector.broadcast %cst_64 : f32 to vector<8x256xf32>
    %348 = arith.mulf %344, %347 : vector<8x256xf32>
    %349 = math.absf %348 : vector<8x256xf32>
    %cst_65 = arith.constant 0.327591091 : f32
    %350 = vector.broadcast %cst_65 : f32 to vector<8x256xf32>
    %351 = arith.mulf %350, %349 : vector<8x256xf32>
    %cst_66 = arith.constant 1.000000e+00 : f32
    %352 = vector.broadcast %cst_66 : f32 to vector<8x256xf32>
    %353 = arith.addf %352, %351 : vector<8x256xf32>
    %cst_67 = arith.constant 1.000000e+00 : f32
    %354 = vector.broadcast %cst_67 : f32 to vector<8x256xf32>
    %355 = arith.divf %354, %353 : vector<8x256xf32>
    %cst_68 = arith.constant 1.06140542 : f32
    %356 = vector.broadcast %cst_68 : f32 to vector<8x256xf32>
    %357 = arith.mulf %356, %355 : vector<8x256xf32>
    %cst_69 = arith.constant -1.45315206 : f32
    %358 = vector.broadcast %cst_69 : f32 to vector<8x256xf32>
    %359 = arith.addf %357, %358 : vector<8x256xf32>
    %360 = arith.mulf %359, %355 : vector<8x256xf32>
    %cst_70 = arith.constant 1.42141378 : f32
    %361 = vector.broadcast %cst_70 : f32 to vector<8x256xf32>
    %362 = arith.addf %360, %361 : vector<8x256xf32>
    %363 = arith.mulf %362, %355 : vector<8x256xf32>
    %cst_71 = arith.constant -0.284496725 : f32
    %364 = vector.broadcast %cst_71 : f32 to vector<8x256xf32>
    %365 = arith.addf %363, %364 : vector<8x256xf32>
    %366 = arith.mulf %365, %355 : vector<8x256xf32>
    %cst_72 = arith.constant 0.254829586 : f32
    %367 = vector.broadcast %cst_72 : f32 to vector<8x256xf32>
    %368 = arith.addf %366, %367 : vector<8x256xf32>
    %369 = arith.mulf %368, %355 : vector<8x256xf32>
    %cst_73 = arith.constant 0.000000e+00 : f32
    %370 = vector.broadcast %cst_73 : f32 to vector<8x256xf32>
    %371 = arith.subf %370, %349 : vector<8x256xf32>
    %372 = arith.mulf %371, %349 : vector<8x256xf32>
    %373 = math.exp %372 : vector<8x256xf32>
    %374 = arith.mulf %369, %373 : vector<8x256xf32>
    %cst_74 = arith.constant 1.000000e+00 : f32
    %375 = vector.broadcast %cst_74 : f32 to vector<8x256xf32>
    %376 = arith.subf %375, %374 : vector<8x256xf32>
    %cst_75 = arith.constant 0.000000e+00 : f32
    %377 = vector.broadcast %cst_75 : f32 to vector<8x256xf32>
    %378 = arith.cmpf olt, %348, %377 : vector<8x256xf32>
    %cst_76 = arith.constant 0.000000e+00 : f32
    %379 = vector.broadcast %cst_76 : f32 to vector<8x256xf32>
    %380 = arith.subf %379, %376 : vector<8x256xf32>
    %381 = arith.select %378, %380, %376 : vector<8x256xi1>, vector<8x256xf32>
    %cst_77 = arith.constant 1.000000e+00 : f32
    %382 = vector.broadcast %cst_77 : f32 to vector<8x256xf32>
    %383 = arith.addf %382, %381 : vector<8x256xf32>
    %384 = arith.mulf %346, %383 : vector<8x256xf32>
    %385 = vector.extract_strided_slice %343 {offsets = [8, 0], sizes = [8, 256], strides = [1, 1]} : vector<16x256xf32> to vector<8x256xf32>
    %386 = arith.mulf %384, %385 : vector<8x256xf32>
    %387 = vector.extract_strided_slice %386 {offsets = [0, 0], sizes = [1, 256], strides = [1, 1]} : vector<8x256xf32> to vector<1x256xf32>
    %388 = vector.extract_strided_slice %386 {offsets = [1, 0], sizes = [1, 256], strides = [1, 1]} : vector<8x256xf32> to vector<1x256xf32>
    %389 = vector.extract_strided_slice %386 {offsets = [2, 0], sizes = [1, 256], strides = [1, 1]} : vector<8x256xf32> to vector<1x256xf32>
    %390 = vector.extract_strided_slice %386 {offsets = [3, 0], sizes = [1, 256], strides = [1, 1]} : vector<8x256xf32> to vector<1x256xf32>
    %391 = vector.extract_strided_slice %386 {offsets = [4, 0], sizes = [1, 256], strides = [1, 1]} : vector<8x256xf32> to vector<1x256xf32>
    %392 = vector.extract_strided_slice %386 {offsets = [5, 0], sizes = [1, 256], strides = [1, 1]} : vector<8x256xf32> to vector<1x256xf32>
    %393 = vector.extract_strided_slice %386 {offsets = [6, 0], sizes = [1, 256], strides = [1, 1]} : vector<8x256xf32> to vector<1x256xf32>
    %394 = vector.extract_strided_slice %386 {offsets = [7, 0], sizes = [1, 256], strides = [1, 1]} : vector<8x256xf32> to vector<1x256xf32>
    %395 = vector.extract_strided_slice %12 {offsets = [0, 0], sizes = [4, 1], strides = [1, 1]} : vector<4x8xf32> to vector<4x1xf32>
    %396 = vector.broadcast %395 : vector<4x1xf32> to vector<4x256xf32>
    %397 = vector.broadcast %387 : vector<1x256xf32> to vector<4x256xf32>
    %398 = arith.mulf %396, %397 : vector<4x256xf32>
    %399 = arith.addf %250, %398 : vector<4x256xf32>
    %400 = vector.extract_strided_slice %12 {offsets = [0, 1], sizes = [4, 1], strides = [1, 1]} : vector<4x8xf32> to vector<4x1xf32>
    %401 = vector.broadcast %400 : vector<4x1xf32> to vector<4x256xf32>
    %402 = vector.broadcast %388 : vector<1x256xf32> to vector<4x256xf32>
    %403 = arith.mulf %401, %402 : vector<4x256xf32>
    %404 = arith.addf %399, %403 : vector<4x256xf32>
    %405 = vector.extract_strided_slice %12 {offsets = [0, 2], sizes = [4, 1], strides = [1, 1]} : vector<4x8xf32> to vector<4x1xf32>
    %406 = vector.broadcast %405 : vector<4x1xf32> to vector<4x256xf32>
    %407 = vector.broadcast %389 : vector<1x256xf32> to vector<4x256xf32>
    %408 = arith.mulf %406, %407 : vector<4x256xf32>
    %409 = arith.addf %404, %408 : vector<4x256xf32>
    %410 = vector.extract_strided_slice %12 {offsets = [0, 3], sizes = [4, 1], strides = [1, 1]} : vector<4x8xf32> to vector<4x1xf32>
    %411 = vector.broadcast %410 : vector<4x1xf32> to vector<4x256xf32>
    %412 = vector.broadcast %390 : vector<1x256xf32> to vector<4x256xf32>
    %413 = arith.mulf %411, %412 : vector<4x256xf32>
    %414 = arith.addf %409, %413 : vector<4x256xf32>
    %415 = vector.extract_strided_slice %12 {offsets = [0, 4], sizes = [4, 1], strides = [1, 1]} : vector<4x8xf32> to vector<4x1xf32>
    %416 = vector.broadcast %415 : vector<4x1xf32> to vector<4x256xf32>
    %417 = vector.broadcast %391 : vector<1x256xf32> to vector<4x256xf32>
    %418 = arith.mulf %416, %417 : vector<4x256xf32>
    %419 = arith.addf %414, %418 : vector<4x256xf32>
    %420 = vector.extract_strided_slice %12 {offsets = [0, 5], sizes = [4, 1], strides = [1, 1]} : vector<4x8xf32> to vector<4x1xf32>
    %421 = vector.broadcast %420 : vector<4x1xf32> to vector<4x256xf32>
    %422 = vector.broadcast %392 : vector<1x256xf32> to vector<4x256xf32>
    %423 = arith.mulf %421, %422 : vector<4x256xf32>
    %424 = arith.addf %419, %423 : vector<4x256xf32>
    %425 = vector.extract_strided_slice %12 {offsets = [0, 6], sizes = [4, 1], strides = [1, 1]} : vector<4x8xf32> to vector<4x1xf32>
    %426 = vector.broadcast %425 : vector<4x1xf32> to vector<4x256xf32>
    %427 = vector.broadcast %393 : vector<1x256xf32> to vector<4x256xf32>
    %428 = arith.mulf %426, %427 : vector<4x256xf32>
    %429 = arith.addf %424, %428 : vector<4x256xf32>
    %430 = vector.extract_strided_slice %12 {offsets = [0, 7], sizes = [4, 1], strides = [1, 1]} : vector<4x8xf32> to vector<4x1xf32>
    %431 = vector.broadcast %430 : vector<4x1xf32> to vector<4x256xf32>
    %432 = vector.broadcast %394 : vector<1x256xf32> to vector<4x256xf32>
    %433 = arith.mulf %431, %432 : vector<4x256xf32>
    %434 = arith.addf %429, %433 : vector<4x256xf32>
    %c0_78 = arith.constant 0 : index
    %c0_79 = arith.constant 0 : index
    %c0_80 = arith.constant 0 : index
    %435 = vector.load %arg14[%c0_78, %c0_79, %c0_80] : memref<2x4x256xf32, #tpu.memory_space<vmem>>, vector<1x4x256xf32>
    %436 = vector.shape_cast %435 : vector<1x4x256xf32> to vector<4x256xf32>
    %437 = vector.shape_cast %434 : vector<4x256xf32> to vector<1x4x256xf32>
    tpu.vector_store %arg14[%c0_78, %c0_79, %c0_80], %437 {strides = array<i32>} : memref<2x4x256xf32, #tpu.memory_space<vmem>>, vector<1x4x256xf32>,
    %c1 = arith.constant 1 : index
    %c0_81 = arith.constant 0 : index
    %c0_82 = arith.constant 0 : index
    %438 = vector.load %arg0[%c1, %c0_81, %c0_82] : memref<2x4x256xf32, #tpu.memory_space<vmem>>, vector<1x4x256xf32>
    %439 = vector.shape_cast %438 : vector<1x4x256xf32> to vector<4x256xf32>
    %cst_83 = arith.constant dense<0.000000e+00> : vector<256xf32>
    %440 = vector.multi_reduction <add>, %439, %cst_83 [0] : vector<4x256xf32> to vector<256xf32>
    %441 = vector.shape_cast %440 : vector<256xf32> to vector<1x256xf32>
    %cst_84 = arith.constant 4.000000e+00 : f32
    %442 = vector.broadcast %cst_84 : f32 to vector<1x256xf32>
    %443 = arith.divf %441, %442 : vector<1x256xf32>
    %444 = vector.broadcast %443 : vector<1x256xf32> to vector<4x256xf32>
    %445 = arith.subf %439, %444 : vector<4x256xf32>
    %446 = arith.mulf %445, %445 : vector<4x256xf32>
    %cst_85 = arith.constant dense<0.000000e+00> : vector<256xf32>
    %447 = vector.multi_reduction <add>, %446, %cst_85 [0] : vector<4x256xf32> to vector<256xf32>
    %448 = vector.shape_cast %447 : vector<256xf32> to vector<1x256xf32>
    %cst_86 = arith.constant 4.000000e+00 : f32
    %449 = vector.broadcast %cst_86 : f32 to vector<1x256xf32>
    %450 = arith.divf %448, %449 : vector<1x256xf32>
    %cst_87 = arith.constant 9.99999974E-6 : f32
    %451 = vector.broadcast %cst_87 : f32 to vector<1x256xf32>
    %452 = arith.addf %450, %451 : vector<1x256xf32>
    %453 = math.rsqrt %452 : vector<1x256xf32>
    %454 = vector.broadcast %453 : vector<1x256xf32> to vector<4x256xf32>
    %455 = arith.mulf %445, %454 : vector<4x256xf32>
    %456 = vector.broadcast %2 : vector<4x1xf32> to vector<4x256xf32>
    %457 = arith.mulf %455, %456 : vector<4x256xf32>
    %458 = vector.broadcast %3 : vector<4x1xf32> to vector<4x256xf32>
    %459 = arith.addf %457, %458 : vector<4x256xf32>
    %460 = vector.extract_strided_slice %459 {offsets = [0, 0], sizes = [1, 256], strides = [1, 1]} : vector<4x256xf32> to vector<1x256xf32>
    %461 = vector.extract_strided_slice %459 {offsets = [1, 0], sizes = [1, 256], strides = [1, 1]} : vector<4x256xf32> to vector<1x256xf32>
    %462 = vector.extract_strided_slice %459 {offsets = [2, 0], sizes = [1, 256], strides = [1, 1]} : vector<4x256xf32> to vector<1x256xf32>
    %463 = vector.extract_strided_slice %459 {offsets = [3, 0], sizes = [1, 256], strides = [1, 1]} : vector<4x256xf32> to vector<1x256xf32>
    %464 = vector.extract_strided_slice %6 {offsets = [0, 0], sizes = [12, 1], strides = [1, 1]} : vector<12x4xf32> to vector<12x1xf32>
    %465 = vector.broadcast %464 : vector<12x1xf32> to vector<12x256xf32>
    %466 = vector.broadcast %460 : vector<1x256xf32> to vector<12x256xf32>
    %467 = arith.mulf %465, %466 : vector<12x256xf32>
    %468 = vector.extract_strided_slice %6 {offsets = [0, 1], sizes = [12, 1], strides = [1, 1]} : vector<12x4xf32> to vector<12x1xf32>
    %469 = vector.broadcast %468 : vector<12x1xf32> to vector<12x256xf32>
    %470 = vector.broadcast %461 : vector<1x256xf32> to vector<12x256xf32>
    %471 = arith.mulf %469, %470 : vector<12x256xf32>
    %472 = arith.addf %467, %471 : vector<12x256xf32>
    %473 = vector.extract_strided_slice %6 {offsets = [0, 2], sizes = [12, 1], strides = [1, 1]} : vector<12x4xf32> to vector<12x1xf32>
    %474 = vector.broadcast %473 : vector<12x1xf32> to vector<12x256xf32>
    %475 = vector.broadcast %462 : vector<1x256xf32> to vector<12x256xf32>
    %476 = arith.mulf %474, %475 : vector<12x256xf32>
    %477 = arith.addf %472, %476 : vector<12x256xf32>
    %478 = vector.extract_strided_slice %6 {offsets = [0, 3], sizes = [12, 1], strides = [1, 1]} : vector<12x4xf32> to vector<12x1xf32>
    %479 = vector.broadcast %478 : vector<12x1xf32> to vector<12x256xf32>
    %480 = vector.broadcast %463 : vector<1x256xf32> to vector<12x256xf32>
    %481 = arith.mulf %479, %480 : vector<12x256xf32>
    %482 = arith.addf %477, %481 : vector<12x256xf32>
    %cst_88 = arith.constant 0.000000e+00 : f32
    %483 = vector.broadcast %cst_88 : f32 to vector<12x256xf32>
    %484 = tpu.concatenate %482, %483 in 1 : vector<12x256xf32>, vector<12x256xf32> -> vector<12x512xf32>
    %485 = tpu.concatenate %483, %482 in 1 : vector<12x256xf32>, vector<12x256xf32> -> vector<12x512xf32>
    %486 = vector.extract_strided_slice %485 {offsets = [0, 240], sizes = [12, 256], strides = [1, 1]} : vector<12x512xf32> to vector<12x256xf32>
    %487 = vector.extract_strided_slice %7 {offsets = [0, 1], sizes = [12, 1], strides = [1, 1]} : vector<12x9xf32> to vector<12x1xf32>
    %488 = vector.broadcast %487 : vector<12x1xf32> to vector<12x256xf32>
    %489 = arith.mulf %486, %488 : vector<12x256xf32>
    %490 = vector.extract_strided_slice %7 {offsets = [0, 4], sizes = [12, 1], strides = [1, 1]} : vector<12x9xf32> to vector<12x1xf32>
    %491 = vector.broadcast %490 : vector<12x1xf32> to vector<12x256xf32>
    %492 = arith.mulf %482, %491 : vector<12x256xf32>
    %493 = arith.addf %489, %492 : vector<12x256xf32>
    %494 = vector.extract_strided_slice %484 {offsets = [0, 16], sizes = [12, 256], strides = [1, 1]} : vector<12x512xf32> to vector<12x256xf32>
    %495 = vector.extract_strided_slice %7 {offsets = [0, 7], sizes = [12, 1], strides = [1, 1]} : vector<12x9xf32> to vector<12x1xf32>
    %496 = vector.broadcast %495 : vector<12x1xf32> to vector<12x256xf32>
    %497 = arith.mulf %494, %496 : vector<12x256xf32>
    %498 = arith.addf %493, %497 : vector<12x256xf32>
    %499 = vector.extract_strided_slice %485 {offsets = [0, 239], sizes = [12, 256], strides = [1, 1]} : vector<12x512xf32> to vector<12x256xf32>
    %500 = vector.extract_strided_slice %7 {offsets = [0, 0], sizes = [12, 1], strides = [1, 1]} : vector<12x9xf32> to vector<12x1xf32>
    %501 = vector.broadcast %500 : vector<12x1xf32> to vector<12x256xf32>
    %502 = arith.mulf %499, %501 : vector<12x256xf32>
    %503 = vector.extract_strided_slice %485 {offsets = [0, 255], sizes = [12, 256], strides = [1, 1]} : vector<12x512xf32> to vector<12x256xf32>
    %504 = vector.extract_strided_slice %7 {offsets = [0, 3], sizes = [12, 1], strides = [1, 1]} : vector<12x9xf32> to vector<12x1xf32>
    %505 = vector.broadcast %504 : vector<12x1xf32> to vector<12x256xf32>
    %506 = arith.mulf %503, %505 : vector<12x256xf32>
    %507 = arith.addf %502, %506 : vector<12x256xf32>
    %508 = vector.extract_strided_slice %484 {offsets = [0, 15], sizes = [12, 256], strides = [1, 1]} : vector<12x512xf32> to vector<12x256xf32>
    %509 = vector.extract_strided_slice %7 {offsets = [0, 6], sizes = [12, 1], strides = [1, 1]} : vector<12x9xf32> to vector<12x1xf32>
    %510 = vector.broadcast %509 : vector<12x1xf32> to vector<12x256xf32>
    %511 = arith.mulf %508, %510 : vector<12x256xf32>
    %512 = arith.addf %507, %511 : vector<12x256xf32>
    %513 = vector.broadcast %0 : vector<1x256xf32> to vector<12x256xf32>
    %514 = arith.mulf %512, %513 : vector<12x256xf32>
    %515 = arith.addf %498, %514 : vector<12x256xf32>
    %516 = vector.extract_strided_slice %485 {offsets = [0, 241], sizes = [12, 256], strides = [1, 1]} : vector<12x512xf32> to vector<12x256xf32>
    %517 = vector.extract_strided_slice %7 {offsets = [0, 2], sizes = [12, 1], strides = [1, 1]} : vector<12x9xf32> to vector<12x1xf32>
    %518 = vector.broadcast %517 : vector<12x1xf32> to vector<12x256xf32>
    %519 = arith.mulf %516, %518 : vector<12x256xf32>
    %520 = vector.extract_strided_slice %484 {offsets = [0, 1], sizes = [12, 256], strides = [1, 1]} : vector<12x512xf32> to vector<12x256xf32>
    %521 = vector.extract_strided_slice %7 {offsets = [0, 5], sizes = [12, 1], strides = [1, 1]} : vector<12x9xf32> to vector<12x1xf32>
    %522 = vector.broadcast %521 : vector<12x1xf32> to vector<12x256xf32>
    %523 = arith.mulf %520, %522 : vector<12x256xf32>
    %524 = arith.addf %519, %523 : vector<12x256xf32>
    %525 = vector.extract_strided_slice %484 {offsets = [0, 17], sizes = [12, 256], strides = [1, 1]} : vector<12x512xf32> to vector<12x256xf32>
    %526 = vector.extract_strided_slice %7 {offsets = [0, 8], sizes = [12, 1], strides = [1, 1]} : vector<12x9xf32> to vector<12x1xf32>
    %527 = vector.broadcast %526 : vector<12x1xf32> to vector<12x256xf32>
    %528 = arith.mulf %525, %527 : vector<12x256xf32>
    %529 = arith.addf %524, %528 : vector<12x256xf32>
    %530 = vector.broadcast %1 : vector<1x256xf32> to vector<12x256xf32>
    %531 = arith.mulf %529, %530 : vector<12x256xf32>
    %532 = arith.addf %515, %531 : vector<12x256xf32>
    %533 = vector.extract_strided_slice %532 {offsets = [0, 0], sizes = [4, 256], strides = [1, 1]} : vector<12x256xf32> to vector<4x256xf32>
    %534 = vector.extract_strided_slice %532 {offsets = [4, 0], sizes = [4, 256], strides = [1, 1]} : vector<12x256xf32> to vector<4x256xf32>
    %535 = vector.extract_strided_slice %532 {offsets = [8, 0], sizes = [4, 256], strides = [1, 1]} : vector<12x256xf32> to vector<4x256xf32>
    %536 = vector.extract_strided_slice %533 {offsets = [0, 0], sizes = [2, 256], strides = [1, 1]} : vector<4x256xf32> to vector<2x256xf32>
    %537 = arith.mulf %536, %536 : vector<2x256xf32>
    %cst_89 = arith.constant dense<0.000000e+00> : vector<2xf32>
    %538 = vector.multi_reduction <add>, %537, %cst_89 [1] : vector<2x256xf32> to vector<2xf32>
    %539 = vector.shape_cast %538 : vector<2xf32> to vector<2x1xf32>
    %540 = math.sqrt %539 : vector<2x1xf32>
    %cst_90 = arith.constant 9.99999996E-13 : f32
    %541 = vector.broadcast %cst_90 : f32 to vector<2x1xf32>
    %542 = arith.maximumf %540, %541 : vector<2x1xf32>
    %543 = vector.broadcast %542 : vector<2x1xf32> to vector<2x256xf32>
    %544 = arith.divf %536, %543 : vector<2x256xf32>
    %545 = vector.extract_strided_slice %534 {offsets = [0, 0], sizes = [2, 256], strides = [1, 1]} : vector<4x256xf32> to vector<2x256xf32>
    %546 = arith.mulf %545, %545 : vector<2x256xf32>
    %cst_91 = arith.constant dense<0.000000e+00> : vector<2xf32>
    %547 = vector.multi_reduction <add>, %546, %cst_91 [1] : vector<2x256xf32> to vector<2xf32>
    %548 = vector.shape_cast %547 : vector<2xf32> to vector<2x1xf32>
    %549 = math.sqrt %548 : vector<2x1xf32>
    %cst_92 = arith.constant 9.99999996E-13 : f32
    %550 = vector.broadcast %cst_92 : f32 to vector<2x1xf32>
    %551 = arith.maximumf %549, %550 : vector<2x1xf32>
    %552 = vector.broadcast %551 : vector<2x1xf32> to vector<2x256xf32>
    %553 = arith.divf %545, %552 : vector<2x256xf32>
    %554 = vector.extract_strided_slice %535 {offsets = [0, 0], sizes = [2, 256], strides = [1, 1]} : vector<4x256xf32> to vector<2x256xf32>
    %555 = vector.extract_strided_slice %8 {offsets = [0, 0], sizes = [1, 1], strides = [1, 1]} : vector<2x1xf32> to vector<1x1xf32>
    %556 = vector.extract_strided_slice %544 {offsets = [0, 0], sizes = [1, 256], strides = [1, 1]} : vector<2x256xf32> to vector<1x256xf32>
    %557 = vector.broadcast %556 : vector<1x256xf32> to vector<2x256xf32>
    %558 = arith.mulf %557, %553 : vector<2x256xf32>
    %cst_93 = arith.constant dense<0.000000e+00> : vector<2xf32>
    %559 = vector.multi_reduction <add>, %558, %cst_93 [1] : vector<2x256xf32> to vector<2xf32>
    %560 = vector.shape_cast %559 : vector<2xf32> to vector<2x1xf32>
    %561 = vector.broadcast %555 : vector<1x1xf32> to vector<2x1xf32>
    %562 = arith.mulf %560, %561 : vector<2x1xf32>
    %cst_94 = arith.constant dense<0xFF800000> : vector<1xf32>
    %563 = vector.multi_reduction <maximumf>, %562, %cst_94 [0] : vector<2x1xf32> to vector<1xf32>
    %564 = vector.shape_cast %563 : vector<1xf32> to vector<1x1xf32>
    %565 = vector.broadcast %564 : vector<1x1xf32> to vector<2x1xf32>
    %566 = arith.subf %562, %565 : vector<2x1xf32>
    %567 = math.exp %566 : vector<2x1xf32>
    %cst_95 = arith.constant dense<0.000000e+00> : vector<1xf32>
    %568 = vector.multi_reduction <add>, %567, %cst_95 [0] : vector<2x1xf32> to vector<1xf32>
    %569 = vector.shape_cast %568 : vector<1xf32> to vector<1x1xf32>
    %570 = vector.broadcast %569 : vector<1x1xf32> to vector<2x1xf32>
    %571 = arith.divf %567, %570 : vector<2x1xf32>
    %572 = vector.broadcast %571 : vector<2x1xf32> to vector<2x256xf32>
    %573 = arith.mulf %572, %554 : vector<2x256xf32>
    %cst_96 = arith.constant dense<0.000000e+00> : vector<256xf32>
    %574 = vector.multi_reduction <add>, %573, %cst_96 [0] : vector<2x256xf32> to vector<256xf32>
    %575 = vector.shape_cast %574 : vector<256xf32> to vector<1x256xf32>
    %576 = vector.extract_strided_slice %544 {offsets = [1, 0], sizes = [1, 256], strides = [1, 1]} : vector<2x256xf32> to vector<1x256xf32>
    %577 = vector.broadcast %576 : vector<1x256xf32> to vector<2x256xf32>
    %578 = arith.mulf %577, %553 : vector<2x256xf32>
    %cst_97 = arith.constant dense<0.000000e+00> : vector<2xf32>
    %579 = vector.multi_reduction <add>, %578, %cst_97 [1] : vector<2x256xf32> to vector<2xf32>
    %580 = vector.shape_cast %579 : vector<2xf32> to vector<2x1xf32>
    %581 = vector.broadcast %555 : vector<1x1xf32> to vector<2x1xf32>
    %582 = arith.mulf %580, %581 : vector<2x1xf32>
    %cst_98 = arith.constant dense<0xFF800000> : vector<1xf32>
    %583 = vector.multi_reduction <maximumf>, %582, %cst_98 [0] : vector<2x1xf32> to vector<1xf32>
    %584 = vector.shape_cast %583 : vector<1xf32> to vector<1x1xf32>
    %585 = vector.broadcast %584 : vector<1x1xf32> to vector<2x1xf32>
    %586 = arith.subf %582, %585 : vector<2x1xf32>
    %587 = math.exp %586 : vector<2x1xf32>
    %cst_99 = arith.constant dense<0.000000e+00> : vector<1xf32>
    %588 = vector.multi_reduction <add>, %587, %cst_99 [0] : vector<2x1xf32> to vector<1xf32>
    %589 = vector.shape_cast %588 : vector<1xf32> to vector<1x1xf32>
    %590 = vector.broadcast %589 : vector<1x1xf32> to vector<2x1xf32>
    %591 = arith.divf %587, %590 : vector<2x1xf32>
    %592 = vector.broadcast %591 : vector<2x1xf32> to vector<2x256xf32>
    %593 = arith.mulf %592, %554 : vector<2x256xf32>
    %cst_100 = arith.constant dense<0.000000e+00> : vector<256xf32>
    %594 = vector.multi_reduction <add>, %593, %cst_100 [0] : vector<2x256xf32> to vector<256xf32>
    %595 = vector.shape_cast %594 : vector<256xf32> to vector<1x256xf32>
    %596 = vector.extract_strided_slice %533 {offsets = [2, 0], sizes = [2, 256], strides = [1, 1]} : vector<4x256xf32> to vector<2x256xf32>
    %597 = arith.mulf %596, %596 : vector<2x256xf32>
    %cst_101 = arith.constant dense<0.000000e+00> : vector<2xf32>
    %598 = vector.multi_reduction <add>, %597, %cst_101 [1] : vector<2x256xf32> to vector<2xf32>
    %599 = vector.shape_cast %598 : vector<2xf32> to vector<2x1xf32>
    %600 = math.sqrt %599 : vector<2x1xf32>
    %cst_102 = arith.constant 9.99999996E-13 : f32
    %601 = vector.broadcast %cst_102 : f32 to vector<2x1xf32>
    %602 = arith.maximumf %600, %601 : vector<2x1xf32>
    %603 = vector.broadcast %602 : vector<2x1xf32> to vector<2x256xf32>
    %604 = arith.divf %596, %603 : vector<2x256xf32>
    %605 = vector.extract_strided_slice %534 {offsets = [2, 0], sizes = [2, 256], strides = [1, 1]} : vector<4x256xf32> to vector<2x256xf32>
    %606 = arith.mulf %605, %605 : vector<2x256xf32>
    %cst_103 = arith.constant dense<0.000000e+00> : vector<2xf32>
    %607 = vector.multi_reduction <add>, %606, %cst_103 [1] : vector<2x256xf32> to vector<2xf32>
    %608 = vector.shape_cast %607 : vector<2xf32> to vector<2x1xf32>
    %609 = math.sqrt %608 : vector<2x1xf32>
    %cst_104 = arith.constant 9.99999996E-13 : f32
    %610 = vector.broadcast %cst_104 : f32 to vector<2x1xf32>
    %611 = arith.maximumf %609, %610 : vector<2x1xf32>
    %612 = vector.broadcast %611 : vector<2x1xf32> to vector<2x256xf32>
    %613 = arith.divf %605, %612 : vector<2x256xf32>
    %614 = vector.extract_strided_slice %535 {offsets = [2, 0], sizes = [2, 256], strides = [1, 1]} : vector<4x256xf32> to vector<2x256xf32>
    %615 = vector.extract_strided_slice %8 {offsets = [1, 0], sizes = [1, 1], strides = [1, 1]} : vector<2x1xf32> to vector<1x1xf32>
    %616 = vector.extract_strided_slice %604 {offsets = [0, 0], sizes = [1, 256], strides = [1, 1]} : vector<2x256xf32> to vector<1x256xf32>
    %617 = vector.broadcast %616 : vector<1x256xf32> to vector<2x256xf32>
    %618 = arith.mulf %617, %613 : vector<2x256xf32>
    %cst_105 = arith.constant dense<0.000000e+00> : vector<2xf32>
    %619 = vector.multi_reduction <add>, %618, %cst_105 [1] : vector<2x256xf32> to vector<2xf32>
    %620 = vector.shape_cast %619 : vector<2xf32> to vector<2x1xf32>
    %621 = vector.broadcast %615 : vector<1x1xf32> to vector<2x1xf32>
    %622 = arith.mulf %620, %621 : vector<2x1xf32>
    %cst_106 = arith.constant dense<0xFF800000> : vector<1xf32>
    %623 = vector.multi_reduction <maximumf>, %622, %cst_106 [0] : vector<2x1xf32> to vector<1xf32>
    %624 = vector.shape_cast %623 : vector<1xf32> to vector<1x1xf32>
    %625 = vector.broadcast %624 : vector<1x1xf32> to vector<2x1xf32>
    %626 = arith.subf %622, %625 : vector<2x1xf32>
    %627 = math.exp %626 : vector<2x1xf32>
    %cst_107 = arith.constant dense<0.000000e+00> : vector<1xf32>
    %628 = vector.multi_reduction <add>, %627, %cst_107 [0] : vector<2x1xf32> to vector<1xf32>
    %629 = vector.shape_cast %628 : vector<1xf32> to vector<1x1xf32>
    %630 = vector.broadcast %629 : vector<1x1xf32> to vector<2x1xf32>
    %631 = arith.divf %627, %630 : vector<2x1xf32>
    %632 = vector.broadcast %631 : vector<2x1xf32> to vector<2x256xf32>
    %633 = arith.mulf %632, %614 : vector<2x256xf32>
    %cst_108 = arith.constant dense<0.000000e+00> : vector<256xf32>
    %634 = vector.multi_reduction <add>, %633, %cst_108 [0] : vector<2x256xf32> to vector<256xf32>
    %635 = vector.shape_cast %634 : vector<256xf32> to vector<1x256xf32>
    %636 = vector.extract_strided_slice %604 {offsets = [1, 0], sizes = [1, 256], strides = [1, 1]} : vector<2x256xf32> to vector<1x256xf32>
    %637 = vector.broadcast %636 : vector<1x256xf32> to vector<2x256xf32>
    %638 = arith.mulf %637, %613 : vector<2x256xf32>
    %cst_109 = arith.constant dense<0.000000e+00> : vector<2xf32>
    %639 = vector.multi_reduction <add>, %638, %cst_109 [1] : vector<2x256xf32> to vector<2xf32>
    %640 = vector.shape_cast %639 : vector<2xf32> to vector<2x1xf32>
    %641 = vector.broadcast %615 : vector<1x1xf32> to vector<2x1xf32>
    %642 = arith.mulf %640, %641 : vector<2x1xf32>
    %cst_110 = arith.constant dense<0xFF800000> : vector<1xf32>
    %643 = vector.multi_reduction <maximumf>, %642, %cst_110 [0] : vector<2x1xf32> to vector<1xf32>
    %644 = vector.shape_cast %643 : vector<1xf32> to vector<1x1xf32>
    %645 = vector.broadcast %644 : vector<1x1xf32> to vector<2x1xf32>
    %646 = arith.subf %642, %645 : vector<2x1xf32>
    %647 = math.exp %646 : vector<2x1xf32>
    %cst_111 = arith.constant dense<0.000000e+00> : vector<1xf32>
    %648 = vector.multi_reduction <add>, %647, %cst_111 [0] : vector<2x1xf32> to vector<1xf32>
    %649 = vector.shape_cast %648 : vector<1xf32> to vector<1x1xf32>
    %650 = vector.broadcast %649 : vector<1x1xf32> to vector<2x1xf32>
    %651 = arith.divf %647, %650 : vector<2x1xf32>
    %652 = vector.broadcast %651 : vector<2x1xf32> to vector<2x256xf32>
    %653 = arith.mulf %652, %614 : vector<2x256xf32>
    %cst_112 = arith.constant dense<0.000000e+00> : vector<256xf32>
    %654 = vector.multi_reduction <add>, %653, %cst_112 [0] : vector<2x256xf32> to vector<256xf32>
    %655 = vector.shape_cast %654 : vector<256xf32> to vector<1x256xf32>
    %656 = vector.extract_strided_slice %9 {offsets = [0, 0], sizes = [4, 1], strides = [1, 1]} : vector<4x4xf32> to vector<4x1xf32>
    %657 = vector.broadcast %656 : vector<4x1xf32> to vector<4x256xf32>
    %658 = vector.broadcast %575 : vector<1x256xf32> to vector<4x256xf32>
    %659 = arith.mulf %657, %658 : vector<4x256xf32>
    %660 = arith.addf %439, %659 : vector<4x256xf32>
    %661 = vector.extract_strided_slice %9 {offsets = [0, 1], sizes = [4, 1], strides = [1, 1]} : vector<4x4xf32> to vector<4x1xf32>
    %662 = vector.broadcast %661 : vector<4x1xf32> to vector<4x256xf32>
    %663 = vector.broadcast %595 : vector<1x256xf32> to vector<4x256xf32>
    %664 = arith.mulf %662, %663 : vector<4x256xf32>
    %665 = arith.addf %660, %664 : vector<4x256xf32>
    %666 = vector.extract_strided_slice %9 {offsets = [0, 2], sizes = [4, 1], strides = [1, 1]} : vector<4x4xf32> to vector<4x1xf32>
    %667 = vector.broadcast %666 : vector<4x1xf32> to vector<4x256xf32>
    %668 = vector.broadcast %635 : vector<1x256xf32> to vector<4x256xf32>
    %669 = arith.mulf %667, %668 : vector<4x256xf32>
    %670 = arith.addf %665, %669 : vector<4x256xf32>
    %671 = vector.extract_strided_slice %9 {offsets = [0, 3], sizes = [4, 1], strides = [1, 1]} : vector<4x4xf32> to vector<4x1xf32>
    %672 = vector.broadcast %671 : vector<4x1xf32> to vector<4x256xf32>
    %673 = vector.broadcast %655 : vector<1x256xf32> to vector<4x256xf32>
    %674 = arith.mulf %672, %673 : vector<4x256xf32>
    %675 = arith.addf %670, %674 : vector<4x256xf32>
    %cst_113 = arith.constant dense<0.000000e+00> : vector<256xf32>
    %676 = vector.multi_reduction <add>, %675, %cst_113 [0] : vector<4x256xf32> to vector<256xf32>
    %677 = vector.shape_cast %676 : vector<256xf32> to vector<1x256xf32>
    %cst_114 = arith.constant 4.000000e+00 : f32
    %678 = vector.broadcast %cst_114 : f32 to vector<1x256xf32>
    %679 = arith.divf %677, %678 : vector<1x256xf32>
    %680 = vector.broadcast %679 : vector<1x256xf32> to vector<4x256xf32>
    %681 = arith.subf %675, %680 : vector<4x256xf32>
    %682 = arith.mulf %681, %681 : vector<4x256xf32>
    %cst_115 = arith.constant dense<0.000000e+00> : vector<256xf32>
    %683 = vector.multi_reduction <add>, %682, %cst_115 [0] : vector<4x256xf32> to vector<256xf32>
    %684 = vector.shape_cast %683 : vector<256xf32> to vector<1x256xf32>
    %cst_116 = arith.constant 4.000000e+00 : f32
    %685 = vector.broadcast %cst_116 : f32 to vector<1x256xf32>
    %686 = arith.divf %684, %685 : vector<1x256xf32>
    %cst_117 = arith.constant 9.99999974E-6 : f32
    %687 = vector.broadcast %cst_117 : f32 to vector<1x256xf32>
    %688 = arith.addf %686, %687 : vector<1x256xf32>
    %689 = math.rsqrt %688 : vector<1x256xf32>
    %690 = vector.broadcast %689 : vector<1x256xf32> to vector<4x256xf32>
    %691 = arith.mulf %681, %690 : vector<4x256xf32>
    %692 = vector.broadcast %4 : vector<4x1xf32> to vector<4x256xf32>
    %693 = arith.mulf %691, %692 : vector<4x256xf32>
    %694 = vector.broadcast %5 : vector<4x1xf32> to vector<4x256xf32>
    %695 = arith.addf %693, %694 : vector<4x256xf32>
    %696 = vector.extract_strided_slice %695 {offsets = [0, 0], sizes = [1, 256], strides = [1, 1]} : vector<4x256xf32> to vector<1x256xf32>
    %697 = vector.extract_strided_slice %695 {offsets = [1, 0], sizes = [1, 256], strides = [1, 1]} : vector<4x256xf32> to vector<1x256xf32>
    %698 = vector.extract_strided_slice %695 {offsets = [2, 0], sizes = [1, 256], strides = [1, 1]} : vector<4x256xf32> to vector<1x256xf32>
    %699 = vector.extract_strided_slice %695 {offsets = [3, 0], sizes = [1, 256], strides = [1, 1]} : vector<4x256xf32> to vector<1x256xf32>
    %700 = vector.extract_strided_slice %10 {offsets = [0, 0], sizes = [16, 1], strides = [1, 1]} : vector<16x4xf32> to vector<16x1xf32>
    %701 = vector.broadcast %700 : vector<16x1xf32> to vector<16x256xf32>
    %702 = vector.broadcast %696 : vector<1x256xf32> to vector<16x256xf32>
    %703 = arith.mulf %701, %702 : vector<16x256xf32>
    %704 = vector.extract_strided_slice %10 {offsets = [0, 1], sizes = [16, 1], strides = [1, 1]} : vector<16x4xf32> to vector<16x1xf32>
    %705 = vector.broadcast %704 : vector<16x1xf32> to vector<16x256xf32>
    %706 = vector.broadcast %697 : vector<1x256xf32> to vector<16x256xf32>
    %707 = arith.mulf %705, %706 : vector<16x256xf32>
    %708 = arith.addf %703, %707 : vector<16x256xf32>
    %709 = vector.extract_strided_slice %10 {offsets = [0, 2], sizes = [16, 1], strides = [1, 1]} : vector<16x4xf32> to vector<16x1xf32>
    %710 = vector.broadcast %709 : vector<16x1xf32> to vector<16x256xf32>
    %711 = vector.broadcast %698 : vector<1x256xf32> to vector<16x256xf32>
    %712 = arith.mulf %710, %711 : vector<16x256xf32>
    %713 = arith.addf %708, %712 : vector<16x256xf32>
    %714 = vector.extract_strided_slice %10 {offsets = [0, 3], sizes = [16, 1], strides = [1, 1]} : vector<16x4xf32> to vector<16x1xf32>
    %715 = vector.broadcast %714 : vector<16x1xf32> to vector<16x256xf32>
    %716 = vector.broadcast %699 : vector<1x256xf32> to vector<16x256xf32>
    %717 = arith.mulf %715, %716 : vector<16x256xf32>
    %718 = arith.addf %713, %717 : vector<16x256xf32>
    %cst_118 = arith.constant 0.000000e+00 : f32
    %719 = vector.broadcast %cst_118 : f32 to vector<16x256xf32>
    %720 = tpu.concatenate %718, %719 in 1 : vector<16x256xf32>, vector<16x256xf32> -> vector<16x512xf32>
    %721 = tpu.concatenate %719, %718 in 1 : vector<16x256xf32>, vector<16x256xf32> -> vector<16x512xf32>
    %722 = vector.extract_strided_slice %721 {offsets = [0, 240], sizes = [16, 256], strides = [1, 1]} : vector<16x512xf32> to vector<16x256xf32>
    %723 = vector.extract_strided_slice %11 {offsets = [0, 1], sizes = [16, 1], strides = [1, 1]} : vector<16x9xf32> to vector<16x1xf32>
    %724 = vector.broadcast %723 : vector<16x1xf32> to vector<16x256xf32>
    %725 = arith.mulf %722, %724 : vector<16x256xf32>
    %726 = vector.extract_strided_slice %11 {offsets = [0, 4], sizes = [16, 1], strides = [1, 1]} : vector<16x9xf32> to vector<16x1xf32>
    %727 = vector.broadcast %726 : vector<16x1xf32> to vector<16x256xf32>
    %728 = arith.mulf %718, %727 : vector<16x256xf32>
    %729 = arith.addf %725, %728 : vector<16x256xf32>
    %730 = vector.extract_strided_slice %720 {offsets = [0, 16], sizes = [16, 256], strides = [1, 1]} : vector<16x512xf32> to vector<16x256xf32>
    %731 = vector.extract_strided_slice %11 {offsets = [0, 7], sizes = [16, 1], strides = [1, 1]} : vector<16x9xf32> to vector<16x1xf32>
    %732 = vector.broadcast %731 : vector<16x1xf32> to vector<16x256xf32>
    %733 = arith.mulf %730, %732 : vector<16x256xf32>
    %734 = arith.addf %729, %733 : vector<16x256xf32>
    %735 = vector.extract_strided_slice %721 {offsets = [0, 239], sizes = [16, 256], strides = [1, 1]} : vector<16x512xf32> to vector<16x256xf32>
    %736 = vector.extract_strided_slice %11 {offsets = [0, 0], sizes = [16, 1], strides = [1, 1]} : vector<16x9xf32> to vector<16x1xf32>
    %737 = vector.broadcast %736 : vector<16x1xf32> to vector<16x256xf32>
    %738 = arith.mulf %735, %737 : vector<16x256xf32>
    %739 = vector.extract_strided_slice %721 {offsets = [0, 255], sizes = [16, 256], strides = [1, 1]} : vector<16x512xf32> to vector<16x256xf32>
    %740 = vector.extract_strided_slice %11 {offsets = [0, 3], sizes = [16, 1], strides = [1, 1]} : vector<16x9xf32> to vector<16x1xf32>
    %741 = vector.broadcast %740 : vector<16x1xf32> to vector<16x256xf32>
    %742 = arith.mulf %739, %741 : vector<16x256xf32>
    %743 = arith.addf %738, %742 : vector<16x256xf32>
    %744 = vector.extract_strided_slice %720 {offsets = [0, 15], sizes = [16, 256], strides = [1, 1]} : vector<16x512xf32> to vector<16x256xf32>
    %745 = vector.extract_strided_slice %11 {offsets = [0, 6], sizes = [16, 1], strides = [1, 1]} : vector<16x9xf32> to vector<16x1xf32>
    %746 = vector.broadcast %745 : vector<16x1xf32> to vector<16x256xf32>
    %747 = arith.mulf %744, %746 : vector<16x256xf32>
    %748 = arith.addf %743, %747 : vector<16x256xf32>
    %749 = vector.broadcast %0 : vector<1x256xf32> to vector<16x256xf32>
    %750 = arith.mulf %748, %749 : vector<16x256xf32>
    %751 = arith.addf %734, %750 : vector<16x256xf32>
    %752 = vector.extract_strided_slice %721 {offsets = [0, 241], sizes = [16, 256], strides = [1, 1]} : vector<16x512xf32> to vector<16x256xf32>
    %753 = vector.extract_strided_slice %11 {offsets = [0, 2], sizes = [16, 1], strides = [1, 1]} : vector<16x9xf32> to vector<16x1xf32>
    %754 = vector.broadcast %753 : vector<16x1xf32> to vector<16x256xf32>
    %755 = arith.mulf %752, %754 : vector<16x256xf32>
    %756 = vector.extract_strided_slice %720 {offsets = [0, 1], sizes = [16, 256], strides = [1, 1]} : vector<16x512xf32> to vector<16x256xf32>
    %757 = vector.extract_strided_slice %11 {offsets = [0, 5], sizes = [16, 1], strides = [1, 1]} : vector<16x9xf32> to vector<16x1xf32>
    %758 = vector.broadcast %757 : vector<16x1xf32> to vector<16x256xf32>
    %759 = arith.mulf %756, %758 : vector<16x256xf32>
    %760 = arith.addf %755, %759 : vector<16x256xf32>
    %761 = vector.extract_strided_slice %720 {offsets = [0, 17], sizes = [16, 256], strides = [1, 1]} : vector<16x512xf32> to vector<16x256xf32>
    %762 = vector.extract_strided_slice %11 {offsets = [0, 8], sizes = [16, 1], strides = [1, 1]} : vector<16x9xf32> to vector<16x1xf32>
    %763 = vector.broadcast %762 : vector<16x1xf32> to vector<16x256xf32>
    %764 = arith.mulf %761, %763 : vector<16x256xf32>
    %765 = arith.addf %760, %764 : vector<16x256xf32>
    %766 = vector.broadcast %1 : vector<1x256xf32> to vector<16x256xf32>
    %767 = arith.mulf %765, %766 : vector<16x256xf32>
    %768 = arith.addf %751, %767 : vector<16x256xf32>
    %769 = vector.extract_strided_slice %768 {offsets = [0, 0], sizes = [8, 256], strides = [1, 1]} : vector<16x256xf32> to vector<8x256xf32>
    %cst_119 = arith.constant 5.000000e-01 : f32
    %770 = vector.broadcast %cst_119 : f32 to vector<8x256xf32>
    %771 = arith.mulf %770, %769 : vector<8x256xf32>
    %cst_120 = arith.constant 0.707106769 : f32
    %772 = vector.broadcast %cst_120 : f32 to vector<8x256xf32>
    %773 = arith.mulf %769, %772 : vector<8x256xf32>
    %774 = math.absf %773 : vector<8x256xf32>
    %cst_121 = arith.constant 0.327591091 : f32
    %775 = vector.broadcast %cst_121 : f32 to vector<8x256xf32>
    %776 = arith.mulf %775, %774 : vector<8x256xf32>
    %cst_122 = arith.constant 1.000000e+00 : f32
    %777 = vector.broadcast %cst_122 : f32 to vector<8x256xf32>
    %778 = arith.addf %777, %776 : vector<8x256xf32>
    %cst_123 = arith.constant 1.000000e+00 : f32
    %779 = vector.broadcast %cst_123 : f32 to vector<8x256xf32>
    %780 = arith.divf %779, %778 : vector<8x256xf32>
    %cst_124 = arith.constant 1.06140542 : f32
    %781 = vector.broadcast %cst_124 : f32 to vector<8x256xf32>
    %782 = arith.mulf %781, %780 : vector<8x256xf32>
    %cst_125 = arith.constant -1.45315206 : f32
    %783 = vector.broadcast %cst_125 : f32 to vector<8x256xf32>
    %784 = arith.addf %782, %783 : vector<8x256xf32>
    %785 = arith.mulf %784, %780 : vector<8x256xf32>
    %cst_126 = arith.constant 1.42141378 : f32
    %786 = vector.broadcast %cst_126 : f32 to vector<8x256xf32>
    %787 = arith.addf %785, %786 : vector<8x256xf32>
    %788 = arith.mulf %787, %780 : vector<8x256xf32>
    %cst_127 = arith.constant -0.284496725 : f32
    %789 = vector.broadcast %cst_127 : f32 to vector<8x256xf32>
    %790 = arith.addf %788, %789 : vector<8x256xf32>
    %791 = arith.mulf %790, %780 : vector<8x256xf32>
    %cst_128 = arith.constant 0.254829586 : f32
    %792 = vector.broadcast %cst_128 : f32 to vector<8x256xf32>
    %793 = arith.addf %791, %792 : vector<8x256xf32>
    %794 = arith.mulf %793, %780 : vector<8x256xf32>
    %cst_129 = arith.constant 0.000000e+00 : f32
    %795 = vector.broadcast %cst_129 : f32 to vector<8x256xf32>
    %796 = arith.subf %795, %774 : vector<8x256xf32>
    %797 = arith.mulf %796, %774 : vector<8x256xf32>
    %798 = math.exp %797 : vector<8x256xf32>
    %799 = arith.mulf %794, %798 : vector<8x256xf32>
    %cst_130 = arith.constant 1.000000e+00 : f32
    %800 = vector.broadcast %cst_130 : f32 to vector<8x256xf32>
    %801 = arith.subf %800, %799 : vector<8x256xf32>
    %cst_131 = arith.constant 0.000000e+00 : f32
    %802 = vector.broadcast %cst_131 : f32 to vector<8x256xf32>
    %803 = arith.cmpf olt, %773, %802 : vector<8x256xf32>
    %cst_132 = arith.constant 0.000000e+00 : f32
    %804 = vector.broadcast %cst_132 : f32 to vector<8x256xf32>
    %805 = arith.subf %804, %801 : vector<8x256xf32>
    %806 = arith.select %803, %805, %801 : vector<8x256xi1>, vector<8x256xf32>
    %cst_133 = arith.constant 1.000000e+00 : f32
    %807 = vector.broadcast %cst_133 : f32 to vector<8x256xf32>
    %808 = arith.addf %807, %806 : vector<8x256xf32>
    %809 = arith.mulf %771, %808 : vector<8x256xf32>
    %810 = vector.extract_strided_slice %768 {offsets = [8, 0], sizes = [8, 256], strides = [1, 1]} : vector<16x256xf32> to vector<8x256xf32>
    %811 = arith.mulf %809, %810 : vector<8x256xf32>
    %812 = vector.extract_strided_slice %811 {offsets = [0, 0], sizes = [1, 256], strides = [1, 1]} : vector<8x256xf32> to vector<1x256xf32>
    %813 = vector.extract_strided_slice %811 {offsets = [1, 0], sizes = [1, 256], strides = [1, 1]} : vector<8x256xf32> to vector<1x256xf32>
    %814 = vector.extract_strided_slice %811 {offsets = [2, 0], sizes = [1, 256], strides = [1, 1]} : vector<8x256xf32> to vector<1x256xf32>
    %815 = vector.extract_strided_slice %811 {offsets = [3, 0], sizes = [1, 256], strides = [1, 1]} : vector<8x256xf32> to vector<1x256xf32>
    %816 = vector.extract_strided_slice %811 {offsets = [4, 0], sizes = [1, 256], strides = [1, 1]} : vector<8x256xf32> to vector<1x256xf32>
    %817 = vector.extract_strided_slice %811 {offsets = [5, 0], sizes = [1, 256], strides = [1, 1]} : vector<8x256xf32> to vector<1x256xf32>
    %818 = vector.extract_strided_slice %811 {offsets = [6, 0], sizes = [1, 256], strides = [1, 1]} : vector<8x256xf32> to vector<1x256xf32>
    %819 = vector.extract_strided_slice %811 {offsets = [7, 0], sizes = [1, 256], strides = [1, 1]} : vector<8x256xf32> to vector<1x256xf32>
    %820 = vector.extract_strided_slice %12 {offsets = [0, 0], sizes = [4, 1], strides = [1, 1]} : vector<4x8xf32> to vector<4x1xf32>
    %821 = vector.broadcast %820 : vector<4x1xf32> to vector<4x256xf32>
    %822 = vector.broadcast %812 : vector<1x256xf32> to vector<4x256xf32>
    %823 = arith.mulf %821, %822 : vector<4x256xf32>
    %824 = arith.addf %675, %823 : vector<4x256xf32>
    %825 = vector.extract_strided_slice %12 {offsets = [0, 1], sizes = [4, 1], strides = [1, 1]} : vector<4x8xf32> to vector<4x1xf32>
    %826 = vector.broadcast %825 : vector<4x1xf32> to vector<4x256xf32>
    %827 = vector.broadcast %813 : vector<1x256xf32> to vector<4x256xf32>
    %828 = arith.mulf %826, %827 : vector<4x256xf32>
    %829 = arith.addf %824, %828 : vector<4x256xf32>
    %830 = vector.extract_strided_slice %12 {offsets = [0, 2], sizes = [4, 1], strides = [1, 1]} : vector<4x8xf32> to vector<4x1xf32>
    %831 = vector.broadcast %830 : vector<4x1xf32> to vector<4x256xf32>
    %832 = vector.broadcast %814 : vector<1x256xf32> to vector<4x256xf32>
    %833 = arith.mulf %831, %832 : vector<4x256xf32>
    %834 = arith.addf %829, %833 : vector<4x256xf32>
    %835 = vector.extract_strided_slice %12 {offsets = [0, 3], sizes = [4, 1], strides = [1, 1]} : vector<4x8xf32> to vector<4x1xf32>
    %836 = vector.broadcast %835 : vector<4x1xf32> to vector<4x256xf32>
    %837 = vector.broadcast %815 : vector<1x256xf32> to vector<4x256xf32>
    %838 = arith.mulf %836, %837 : vector<4x256xf32>
    %839 = arith.addf %834, %838 : vector<4x256xf32>
    %840 = vector.extract_strided_slice %12 {offsets = [0, 4], sizes = [4, 1], strides = [1, 1]} : vector<4x8xf32> to vector<4x1xf32>
    %841 = vector.broadcast %840 : vector<4x1xf32> to vector<4x256xf32>
    %842 = vector.broadcast %816 : vector<1x256xf32> to vector<4x256xf32>
    %843 = arith.mulf %841, %842 : vector<4x256xf32>
    %844 = arith.addf %839, %843 : vector<4x256xf32>
    %845 = vector.extract_strided_slice %12 {offsets = [0, 5], sizes = [4, 1], strides = [1, 1]} : vector<4x8xf32> to vector<4x1xf32>
    %846 = vector.broadcast %845 : vector<4x1xf32> to vector<4x256xf32>
    %847 = vector.broadcast %817 : vector<1x256xf32> to vector<4x256xf32>
    %848 = arith.mulf %846, %847 : vector<4x256xf32>
    %849 = arith.addf %844, %848 : vector<4x256xf32>
    %850 = vector.extract_strided_slice %12 {offsets = [0, 6], sizes = [4, 1], strides = [1, 1]} : vector<4x8xf32> to vector<4x1xf32>
    %851 = vector.broadcast %850 : vector<4x1xf32> to vector<4x256xf32>
    %852 = vector.broadcast %818 : vector<1x256xf32> to vector<4x256xf32>
    %853 = arith.mulf %851, %852 : vector<4x256xf32>
    %854 = arith.addf %849, %853 : vector<4x256xf32>
    %855 = vector.extract_strided_slice %12 {offsets = [0, 7], sizes = [4, 1], strides = [1, 1]} : vector<4x8xf32> to vector<4x1xf32>
    %856 = vector.broadcast %855 : vector<4x1xf32> to vector<4x256xf32>
    %857 = vector.broadcast %819 : vector<1x256xf32> to vector<4x256xf32>
    %858 = arith.mulf %856, %857 : vector<4x256xf32>
    %859 = arith.addf %854, %858 : vector<4x256xf32>
    %c1_134 = arith.constant 1 : index
    %c0_135 = arith.constant 0 : index
    %c0_136 = arith.constant 0 : index
    %860 = vector.load %arg14[%c1_134, %c0_135, %c0_136] : memref<2x4x256xf32, #tpu.memory_space<vmem>>, vector<1x4x256xf32>
    %861 = vector.shape_cast %860 : vector<1x4x256xf32> to vector<4x256xf32>
    %862 = vector.shape_cast %859 : vector<4x256xf32> to vector<1x4x256xf32>
    tpu.vector_store %arg14[%c1_134, %c0_135, %c0_136], %862 {strides = array<i32>} : memref<2x4x256xf32, #tpu.memory_space<vmem>>, vector<1x4x256xf32>,
    return
  }
}

</mosaic_0001>

<bundles_post_ra>
// kernel: tpu_custom_call.1
= control target key start
LH: loop header
LB: loop body
LE: loop exit
PB: predicated region body
PF: predicated region fallthrough
CT: control target
= control target key end

     0   :  { %19 = vsyncpa [#allocation3], 0  ;;  %s6579_s0 = inlined_call_operand.vmem [shape: f32[2,4,256], index: 0, kind: input, shape index: {}]   ;;  %s6580_s1 = inlined_call_operand.hbm [shape: f32[1,256], index: 1, kind: input, shape index: {}]   ;;  %s6581_s2 = inlined_call_operand.vmem [shape: f32[1,256], index: 2, kind: input, shape index: {}]   ;;  %s6582_s3 = inlined_call_operand.vmem [shape: f32[4,1], index: 3, kind: input, shape index: {}]   ;;  %s6583_s4 = inlined_call_operand.vmem [shape: f32[4,1], index: 4, kind: input, shape index: {}]   ;;  %s6584_s5 = inlined_call_operand.vmem [shape: f32[12,4], index: 5, kind: input, shape index: {}]   ;;  %s6585_s6 = inlined_call_operand.vmem [shape: f32[12,9], index: 6, kind: input, shape index: {}]   ;;  %s6586_s7 = inlined_call_operand.vmem [shape: f32[2,1], index: 7, kind: input, shape index: {}]   ;;  %s6587_s8 = inlined_call_operand.vmem [shape: f32[4,4], index: 8, kind: input, shape index: {}]   ;;  %s6588_s9 = inlined_call_operand.vmem [shape: f32[4,1], index: 9, kind: input, shape index: {}]   ;;  %s6589_s10 = inlined_call_operand.vmem [shape: f32[4,1], index: 10, kind: input, shape index: {}]   ;;  %s6590_s11 = inlined_call_operand.vmem [shape: f32[16,4], index: 11, kind: input, shape index: {}]   ;;  %s6591_s12 = inlined_call_operand.vmem [shape: f32[16,9], index: 12, kind: input, shape index: {}]   ;;  %s6592_s13 = inlined_call_operand.vmem [shape: f32[4,8], index: 13, kind: input, shape index: {}]   ;;  %s6593_s14 = inlined_call_operand.hbm [shape: f32[2,4,256], index: 14, kind: output, shape index: {}]  }
   0x1   :  { %20 = vsyncpa [#allocation4], 0  ;;  %s4095_s29 = smov [#allocation2]  }
   0x2   :  { %s29_s30 = sshll.u32 %s4095_s29, 4  ;;  %s30_s30 = int_to_ptr.vmem [resolvable:$true] %s29_s30 }
   0x3   :  { %s4059_s15 = scalar_lea.vmem %s30_s30, 32  ;;  %p4064_p1 = scmp.lt.s32.totalorder %s30_s30, %s30_s30 }
   0x4   :  { %p4060_p0 = scmp.ne.s32.totalorder %s30_s30, %s4059_s15  ;;  %p4065_p2 = scmp.lt.s32.totalorder %s4059_s15, %s4059_s15 }
   0x6   :  { %p4066_p3 = por %p4065_p2, %p4064_p1 }
   0x8   :  { %p4067_p4 = pnand %p4066_p3, %p4060_p0 }
   0xa   :  { %4070 = shalt.err (!%p4067_p4)
}
   0xb   :  { %32 = dma.hbm_to_vmem [thread:$0]  %s6580_s1, 32, %s30_s30, [#allocation3]  }
   0xc   :  { %4091 = dma.done.wait [#allocation3], 32  }
   0xd   :  { %4092 = vsyncadd [#allocation3], 4294967264  ;;  %v6604_v0 = vmov 1   ;;  %v6606_v1 = vmov 0   ;;  %v66_v2 = vld [vmem:[%s6584_s5] sm:$0xff]  ;;  %v6600_v5 = vmov 4   ;;  %v140_v12 = vlaneseq }
   0xe   :  { %3891 = vset.pattern.permute.xlu0 %v6604_v0  ;;  %3890 = vset.pattern.permute.xlu1 %v6606_v1  ;;  %v67_v3 = vld [vmem:[%s6584_s5 + $0x8] sm:$0xf]  ;;  %v4212_v6 = vld [vmem:[%s6585_s6] sm:$0xff]  ;;  %v6602_v7 = vmov 7   ;;  %v6610_v9 = vmov 2   ;;  %v6608_v11 = vmov 3  }
   0xf   :  { %193 = vperm.xlu0 %3891, %v66_v2   ;;  %161 = vperm.xlu1 %3890, %v66_v2   ;;  %v4205_v4 = vld [vmem:[%s6585_s6 + $0x8] sm:$0xf]  ;;  %v62_v8 = vld [vmem:[%s6582_s3] sm:$0xf]  ;;  %v4227_v13 = vshrl.u32 %v140_v12, 7  ;;  %v6598_v14 = vmov 6  }
  0x10   :  { %v63_v10 = vld [vmem:[%s6583_s4] sm:$0xf]  ;;  %v3868_v18 = vld [vmem:[%s6579_s0 + $0x8] sm:$0xff]  ;;  %s4103_s27 = smov 111   ;;  %vm81_vm0 = vcmask 1043456   ;;  %v6596_v24 = vmov 8  }
  0x11   :  { %v4234_v15 = vsub.s32 1, %v4227_v13  ;;  %v60_v16 = vld [vmem:[#allocation2] sm:$0x3]  ;;  %v2198_v19 = vcombine.high %v3868_v18, %v3868_v18  ;;  %v2200_v20 = vsel %vm81_vm0, %v3868_v18, 0.0  ;;  %v4258_v29 = vsub.s32 0, %v4227_v13  ;;  %s4106_s16 = smov 113  }
  0x12   :  { %v2201_v22 = vrot.slane %v2200_v20, 4  ;;  %v77_v33 = vld [vmem:[%s6579_s0] sm:$0xff]  ;;  %v6594_v43 = vmov 5   ;;  %s4109_s17 = smov 112   ;;  %vm381_vm1 = vcmask 785408   ;;  %s4110_s18 = smov 1  }
  0x13   :  { %3897 = vset.pattern.permute.xlu0 %v6600_v5  ;;  %166 = vperm.xlu1 %3890, %v67_v3   ;;  %6698 = vst [vmem:[#allocation8_spill] sm:$0xff] %v4234_v15  ;;  %v516_v17 = vrot.slane %v60_v16, %v4234_v15  ;;  %v2207_v21 = vsel %vm81_vm0, %v2198_v19, 0.0  ;;  %6699 = vst [vmem:[#allocation9_spill] sm:$0xff] %v4258_v29  ;;  %v512_v32 = vrot.slane %v60_v16, %v4258_v29  ;;  %v4278_v46 = vld [vmem:[%s6581_s2] sm:$0x3]  ;;  %s4108_s2 = smov 96  }
  0x14   :  { %315 = vperm.xlu0 %3897, %v4205_v4   ;;  %v2208_v23 = vrot.slane %v2207_v21, 4  ;;  %v2202_v25 = vadd.f32 %v2201_v22, %v2200_v20  ;;  %v79_v36 = vcombine.high %v77_v33, %v77_v33  ;;  %v82_v39 = vsel %vm81_vm0, %v77_v33, 0.0  ;;  %s4111_s19 = smov 127   ;;  %s4112_s20 = smov 16  }
  0x15   :  { %v83_v44 = vrot.slane %v82_v39, 4  ;;  %v681_v50 = vrot.slane %v4278_v46, %v4258_v29  ;;  %vm334_vm2 = vcmask 916480   ;;  %vm521_vm3 = vcmask 908288  }
  0x16   :  { %v2209_v26 = vadd.f32 %v2208_v23, %v2207_v21  ;;  %v2203_v27 = vrot.slane %v2202_v25, 2  ;;  %v89_v40 = vsel %vm81_vm0, %v79_v36, 0.0  ;;  %vm690_vm4 = vcmask 924672  }
  0x17   :  { %3892 = vset.pattern.permute.xlu1 %v6604_v0  ;;  %v90_v45 = vrot.slane %v89_v40, 4  ;;  %v84_v48 = vadd.f32 %v83_v44, %v82_v39  ;;  %vm550_vm5 = vcmask 7168   ;;  %vm719_vm6 = vcmask 1039360  }
  0x18   :  { %3898 = vset.pattern.permute.xlu0 %v6602_v7  ;;  %197 = vperm.xlu1 %3892, %v67_v3   ;;  %v2210_v28 = vrot.slane %v2209_v26, 2  ;;  %v2204_v30 = vadd.f32 %v2203_v27, %v2202_v25  ;;  %vm748_vm7 = vcmask 130048   ;;  %vm977_vm8 = vcmask 1043458  }
  0x19   :  { %350 = vperm.xlu0 %3898, %v4212_v6   ;;  %v91_v49 = vadd.f32 %v90_v45, %v89_v40  ;;  %v85_v52 = vrot.slane %v84_v48, 2  ;;  %vm995_vm9 = vcmask 1047558   ;;  %vm753_vm10 = vcmask 1041408  }
  0x1a   :  { %v2211_v31 = vadd.f32 %v2210_v28, %v2209_v26  ;;  %v2205_v34 = vrot.slane %v2204_v30, 1  ;;  %vm771_vm11 = vcmask 1045508  }
  0x1b   :  { %v92_v53 = vrot.slane %v91_v49, 2  ;;  %v86_v55 = vadd.f32 %v85_v52, %v84_v48 }
  0x1c   :  { %3893 = vset.pattern.permute.xlu1 %v6610_v9  ;;  %v2212_v35 = vrot.slane %v2211_v31, 1  ;;  %v2206_v37 = vadd.f32 %v2205_v34, %v2204_v30 }
  0x1d   :  { %3899 = vset.pattern.permute.xlu0 %v6606_v1  ;;  %227 = vperm.xlu1 %3893, %v66_v2   ;;  %v93_v56 = vadd.f32 %v92_v53, %v91_v49  ;;  %v87_v58 = vrot.slane %v86_v55, 1 }
  0x1e   :  { %135 = vperm.xlu0 %3899, %v62_v8   ;;  %v2213_v38 = vadd.f32 %v2212_v35, %v2211_v31  ;;  %v2214_v41 = vmul.f32 0.25, %v2206_v37 }
  0x1f   :  { %v94_v59 = vrot.slane %v93_v56, 1  ;;  %v88_v62 = vadd.f32 %v87_v58, %v86_v55 }
  0x20   :  { %v2215_v42 = vmul.f32 0.25, %v2213_v38 }
  0x21   :  { %3894 = vset.pattern.permute.xlu1 %v6608_v11  ;;  %v95_v63 = vadd.f32 %v94_v59, %v93_v56 }
  0x22   :  { %261 = vperm.xlu1 %3894, %v66_v2   ;;  %148 = vperm.xlu0 %3899, %v63_v10   ;;  %v2218_v47 = vcombine.low %v2214_v41, %v2215_v42 }
  0x24   :  { %v4283_v51 = vsub.f32 %v3868_v18, %v2218_v47 }
  0x26   :  { %265 = vperm.xlu1 %3894, %v67_v3   ;;  %403 = vperm.xlu0 %3899, %v4205_v4   ;;  %v2221_v54 = vmul.f32 %v4283_v51, %v4283_v51 }
  0x28   :  { %v2223_v57 = vcombine.high %v2221_v54, %v2221_v54  ;;  %v2225_v60 = vsel %vm81_vm0, %v2221_v54, 0.0 }
  0x29   :  { %v2226_v2 = vrot.slane %v2225_v60, 4 }
  0x2a   :  { %3895 = vset.pattern.permute.xlu1 %v6604_v0  ;;  %3903 = vset.pattern.permute.xlu0 %v6598_v14  ;;  %v2232_v61 = vsel %vm81_vm0, %v2223_v57, 0.0 }
  0x2b   :  { %301 = vperm.xlu1 %3895, %v4205_v4   ;;  %461 = vperm.xlu0 %3903, %v4212_v6   ;;  %v2227_v8 = vadd.f32 %v2226_v2, %v2225_v60 }
  0x2d   :  { %v2228_v16 = vrot.slane %v2227_v8, 2 }
  0x2f   :  { %3896 = vset.pattern.permute.xlu1 %v6600_v5  ;;  %3904 = vset.pattern.permute.xlu0 %v6610_v9  ;;  %v2229_v19 = vadd.f32 %v2228_v16, %v2227_v8 }
  0x30   :  { %311 = vperm.xlu1 %3896, %v4212_v6   ;;  %231 = vperm.xlu0 %3904, %v67_v3   ;;  %v2233_v3 = vrot.slane %v2232_v61, 4 }
  0x31   :  { %v2230_v22 = vrot.slane %v2229_v19, 1 }
  0x32   :  { %v2234_v10 = vadd.f32 %v2233_v3, %v2232_v61 }
  0x33   :  { %v2231_v26 = vadd.f32 %v2230_v22, %v2229_v19 }
  0x34   :  { %3900 = vset.pattern.permute.xlu1 %v6602_v7  ;;  %519 = vrot.lane.b32.xlu0 %v516_v17, %s4103_s27  ;;  %v2235_v17 = vrot.slane %v2234_v10, 2 }
  0x35   :  { %354 = vperm.xlu1 %3900, %v4205_v4   ;;  %v2239_v31 = vmul.f32 0.25, %v2231_v26 }
  0x36   :  { %v2236_v20 = vadd.f32 %v2235_v17, %v2234_v10 }
  0x38   :  { %572 = vperm.xlu0 %3904, %v4205_v4   ;;  %v2237_v23 = vrot.slane %v2236_v20, 1 }
  0x39   :  { %3901 = vset.pattern.permute.xlu1 %v6606_v1 }
  0x3a   :  { %399 = vperm.xlu1 %3901, %v4212_v6   ;;  %v2238_v27 = vadd.f32 %v2237_v23, %v2236_v20 }
  0x3c   :  { %3908 = vset.pattern.permute.xlu0 %v6596_v24  ;;  %v2240_v34 = vmul.f32 0.25, %v2238_v27  ;;  %v4328_v27 = vsub.s32 4, %v4227_v13 }
  0x3d   :  { %630 = vperm.xlu0 %3908, %v4212_v6  }
  0x3e   :  { %3902 = vset.pattern.permute.xlu1 %v6608_v11  ;;  %v2242_v37 = vadd.f32 1e-05, %v2240_v34  ;;  %6702 = vst [vmem:[#allocation12_spill] sm:$0xff] %v4328_v27 }
  0x3f   :  { %413 = vperm.xlu1 %3902, %v4212_v6  }
  0x41   :  { %634 = vperm.xlu0 %3908, %v4205_v4  }
  0x43   :  { %417 = vperm.xlu1 %3902, %v4205_v4  }
  0x45   :  { %3909 = vset.pattern.permute.xlu0 %v6604_v0 }
  0x46   :  { %296 = vperm.xlu0 %3909, %v4212_v6  }
  0x47   :  { %3905 = vset.pattern.permute.xlu1 %v6598_v14 }
  0x48   :  { %465 = vperm.xlu1 %3905, %v4205_v4  }
  0x4c   :  { %517 = vrot.lane.b32.xlu1 %v512_v32, %s4103_s27 }
  0x4d   :  { %3906 = vset.pattern.permute.xlu1 %v6610_v9 }
  0x50   :  { %568 = vperm.xlu1 %3906, %v4212_v6  }
  0x54   :  { %3907 = vset.pattern.permute.xlu1 %v6594_v43 }
  0x55   :  { %582 = vperm.xlu1 %3907, %v4212_v6   ;;  %v98_v6 = vmul.f32 0.25, %v95_v63 }
  0x59   :  { %586 = vperm.xlu1 %3907, %v4205_v4   ;;  %v97_v4 = vmul.f32 0.25, %v88_v62 }
  0x5b   :  { %v101_v12 = vcombine.low %v97_v4, %v98_v6 }
  0x5d   :  { %686 = vrot.lane.b32.xlu1 %v681_v50, %s4106_s16  ;;  %v4291_v18 = vsub.f32 %v77_v33, %v101_v12  ;;  %v2241_v33 = vadd.f32 1e-05, %v2239_v31  ;;  %v4107_v50 = vmov 839922192   ;;  %v4340_v31 = vsub.s32 2, %v4227_v13 }
  0x5e   :  { %3910 = vset.pattern.permute.xlu1 %v6606_v1  ;;  %v138_v52 = vunpack.c.l.s4 %v4107_v50 }
  0x5f   :  { %v104_v21 = vmul.f32 %v4291_v18, %v4291_v18  ;;  %3942 = vrsqrt.f32 %v2241_v33  ;;  %6706 = vst [vmem:[#allocation16_spill] sm:$0xff] %v4340_v31 }
  0x60   :  { %3944 = vrsqrt.f32 %v2242_v37  ;;  %v139_v59 = vunpack.c.0.s8 %v138_v52 }
  0x61   :  { %v106_v25 = vcombine.high %v104_v21, %v104_v21  ;;  %v108_v28 = vsel %vm81_vm0, %v104_v21, 0.0 }
  0x62   :  { %v109_v32 = vrot.slane %v108_v28, 4  ;;  %v4314_v3 = vsub.s32 %v139_v59, %v4227_v13 }
  0x63   :  { %v115_v30 = vsel %vm81_vm0, %v106_v25, 0.0 }
  0x64   :  { %v116_v35 = vrot.slane %v115_v30, 4  ;;  %v110_v36 = vadd.f32 %v109_v32, %v108_v28  ;;  %6701 = vst [vmem:[#allocation11_spill] sm:$0xff] %v4314_v3  ;;  %v4334_v28 = vsub.s32 7, %v4227_v13  ;;  %v4343_v32 = vsub.s32 6, %v4227_v13 }
  0x66   :  { %v117_v38 = vadd.f32 %v116_v35, %v115_v30  ;;  %v111_v41 = vrot.slane %v110_v36, 2  ;;  %6704 = vst [vmem:[#allocation14_spill] sm:$0xff] %v4334_v28  ;;  %v4337_v30 = vsub.s32 5, %v4227_v13  ;;  %6707 = vst [vmem:[#allocation17_spill] sm:$0xff] %v4343_v32 }
  0x68   :  { %v118_v42 = vrot.slane %v117_v38, 2  ;;  %v112_v45 = vadd.f32 %v111_v41, %v110_v36  ;;  %6705 = vst [vmem:[#allocation15_spill] sm:$0xff] %v4337_v30 }
  0x6a   :  { %v119_v48 = vadd.f32 %v118_v42, %v117_v38  ;;  %v113_v49 = vrot.slane %v112_v45, 1 }
  0x6c   :  { %v120_v54 = vrot.slane %v119_v48, 1  ;;  %v3943_v57 = vpop.eup %3942  ;;  %v114_v58 = vadd.f32 %v113_v49, %v112_v45 }
  0x6d   :  { %v3945_v60 = vpop.eup %3944 }
  0x6e   :  { %v121_v61 = vadd.f32 %v120_v54, %v119_v48  ;;  %v122_v2 = vmul.f32 0.25, %v114_v58  ;;  %v2247_v4 = vcombine.low %v3943_v57, %v3945_v60 }
  0x70   :  { %v123_v6 = vmul.f32 0.25, %v121_v61  ;;  %v124_v10 = vadd.f32 1e-05, %v122_v2  ;;  %v2249_v12 = vmul.f32 %v2247_v4, %v4283_v51  ;;  %v4331_v51 = vsub.s32 3, %v4227_v13 }
  0x72   :  { %v125_v17 = vadd.f32 1e-05, %v123_v6  ;;  %3946 = vrsqrt.f32 %v124_v10  ;;  %6703 = vst [vmem:[#allocation13_spill] sm:$0xff] %v4331_v51 }
  0x74   :  { %3948 = vrsqrt.f32 %v125_v17 }
  0x7f   :  { %v3947_v50 = vpop.eup %3946 }
  0x81   :  { %v3949_v58 = vpop.eup %3948 }
  0x8a   :  { %v4297_v39 = vpop.permute.xlu1 %161  ;;  %v4299_v40 = vpop.permute.xlu0 %193 }
  0x8e   :  { %v4301_v44 = vpop.permute.xlu1 %166 }
  0x8f   :  { %v4303_v47 = vpop.permute.xlu0 %315 }
  0x90   :  { %6700 = vst [vmem:[#allocation10_spill] sm:$0xff] %v4303_v47 }
  0x93   :  { %v4305_v53 = vpop.permute.xlu1 %197 }
  0x94   :  { %v4307_v55 = vpop.permute.xlu0 %350 }
  0x95   :  { %v359_v56 = vmul.f32 0.0, %v4307_v55 }
  0x97   :  { %373 = vrot.lane.b32.xlu1 %v359_v56, %s4108_s2 }
  0x98   :  { %v4311_v62 = vpop.permute.xlu1 %227 }
  0x99   :  { %v136_v63 = vpop.permute.xlu0 %135 }
  0x9a   :  { %v143_v16 = vrot.slane %v136_v63, %v4314_v3 }
  0x9c   :  { %v2250_v21 = vmul.f32 %v2249_v12, %v143_v16  ;;  %v130_v12 = vcombine.low %v3947_v50, %v3949_v58 }
  0x9d   :  { %v4316_v8 = vpop.permute.xlu1 %261  ;;  %v149_v19 = vpop.permute.xlu0 %148 }
  0x9e   :  { %v156_v22 = vrot.slane %v149_v19, %v4314_v3 }
  0xa0   :  { %v2251_v25 = vadd.f32 %v2250_v21, %v156_v22 }
  0xa1   :  { %v4320_v20 = vpop.permute.xlu1 %265  ;;  %v4323_v23 = vpop.permute.xlu0 %403 }
  0xa2   :  { %v2256_v34 = vrot.slane %v2251_v25, %v4258_v29  ;;  %v2260_v35 = vrot.slane %v2251_v25, %v4328_v27  ;;  %v2278_v41 = vrot.slane %v2251_v25, %v4234_v15  ;;  %v2282_v42 = vrot.slane %v2251_v25, %v4337_v30 }
  0xa3   :  { %v2330_v13 = vrot.slane %v2251_v25, %v4331_v51  ;;  %v2334_v45 = vrot.slane %v2251_v25, %v4334_v28  ;;  %v2304_v48 = vrot.slane %v2251_v25, %v4340_v31  ;;  %v2308_v49 = vrot.slane %v2251_v25, %v4343_v32 }
  0xa4   :  { %v4352_v37 = vrot.slane %v2256_v34, %v4258_v29  ;;  %v4355_v38 = vrot.slane %v2260_v35, %v4258_v29  ;;  %v4368_v56 = vrot.slane %v2278_v41, %v4234_v15  ;;  %v4371_v57 = vrot.slane %v2282_v42, %v4234_v15 }
  0xa5   :  { %v4382_v2 = vrot.slane %v2330_v13, %v4331_v51  ;;  %v4385_v4 = vrot.slane %v2334_v45, %v4331_v51  ;;  %v4388_v6 = vrot.slane %v2304_v48, %v4340_v31  ;;  %v4391_v10 = vrot.slane %v2308_v49, %v4340_v31 }
  0xa6   :  { %v4325_v26 = vpop.permute.xlu1 %301  ;;  %v4347_v33 = vpop.permute.xlu0 %461  ;;  %v2273_v52 = vmul.f32 %v4352_v37, %v4301_v44  ;;  %v2274_v54 = vmul.f32 %v4355_v38, %v4301_v44  ;;  %v2295_v60 = vmul.f32 %v4368_v56, %v4305_v53  ;;  %v2296_v61 = vmul.f32 %v4371_v57, %v4305_v53 }
  0xa7   :  { %v2347_v41 = vmul.f32 %v4382_v2, %v4320_v20  ;;  %v2348_v42 = vmul.f32 %v4385_v4, %v4320_v20  ;;  %v132_v48 = vmul.f32 %v130_v12, %v4291_v18  ;;  %v470_v12 = vmul.f32 0.0, %v4347_v33 }
  0xa8   :  { %v2299_v17 = vadd.f32 %v2295_v60, %v2273_v52  ;;  %v2300_v19 = vadd.f32 %v2296_v61, %v2274_v54 }
  0xa9   :  { %v145_v54 = vmul.f32 %v143_v16, %v132_v48 }
  0xab   :  { %v4349_v36 = vpop.permute.xlu1 %311  ;;  %v4379_v63 = vpop.permute.xlu0 %231  ;;  %v158_v61 = vadd.f32 %v156_v22, %v145_v54 }
  0xac   :  { %v2321_v21 = vmul.f32 %v4388_v6, %v4379_v63  ;;  %v2322_v25 = vmul.f32 %v4391_v10, %v4379_v63 }
  0xad   :  { %v203_v16 = vrot.slane %v158_v61, %v4234_v15  ;;  %v207_v22 = vrot.slane %v158_v61, %v4337_v30  ;;  %v275_v0 = vrot.slane %v158_v61, %v4334_v28 }
  0xae   :  { %v2325_v13 = vadd.f32 %v2321_v21, %v2299_v17  ;;  %v2326_v45 = vadd.f32 %v2322_v25, %v2300_v19  ;;  %v173_v19 = vrot.slane %v158_v61, %v4258_v29 }
  0xaf   :  { %v4417_v18 = vpop.permute.xlu0 %519 }
  0xb0   :  { %v4373_v59 = vpop.permute.xlu1 %354  ;;  %v4406_v49 = vadd.f32 %v2347_v41, %v2325_v13  ;;  %v4408_v50 = vadd.f32 %v2348_v42, %v2326_v45  ;;  %6712 = vst [vmem:[#allocation22_spill] sm:$0xff] %v4417_v18  ;;  %v183_v42 = vrot.slane %v173_v19, %v4258_v29  ;;  %v213_v13 = vrot.slane %v203_v16, %v4234_v15 }
  0xb1   :  { %6708 = vst [vmem:[#allocation18_spill] sm:$0xff] %v4373_v59  ;;  %v362_v34 = vmul.f32 0.0, %v4373_v59  ;;  %v237_v45 = vrot.slane %v158_v61, %v4340_v31 }
  0xb2   :  { %6709 = vst [vmem:[#allocation19_spill] sm:$0xff] %v4406_v49  ;;  %6710 = vst [vmem:[#allocation20_spill] sm:$0xff] %v4408_v50  ;;  %v220_v43 = vmul.f32 %v213_v13, %v4305_v53  ;;  %v188_v16 = vmul.f32 %v183_v42, %v4297_v39 }
  0xb3   :  { %379 = vrot.lane.b32.xlu0 %v362_v34, %s4108_s2  ;;  %v177_v34 = vrot.slane %v158_v61, %v4328_v27  ;;  %v4429_v41 = vpop.permute.xlu0 %572  ;;  %v247_v19 = vrot.slane %v237_v45, %v4340_v31 }
  0xb5   :  { %v4398_v35 = vpop.permute.xlu1 %399  ;;  %v187_v54 = vrot.slane %v177_v34, %v4258_v29  ;;  %v254_v7 = vmul.f32 %v247_v19, %v4379_v63 }
  0xb7   :  { %v189_v34 = vmul.f32 %v187_v54, %v4297_v39 }
  0xb8   :  { %v4447_v14 = vpop.permute.xlu0 %630 }
  0xba   :  { %v4410_v52 = vpop.permute.xlu1 %413 }
  0xbb   :  { %v420_v58 = vmul.f32 0.0, %v4410_v52 }
  0xbc   :  { %v4460_v3 = vpop.permute.xlu0 %634 }
  0xbd   :  { %432 = vrot.lane.b32.xlu0 %v420_v58, %s4109_s17  ;;  %v217_v58 = vrot.slane %v207_v22, %v4234_v15  ;;  %v218_v22 = vmul.f32 %v213_v13, %v4299_v40  ;;  %v285_v13 = vrot.slane %v275_v0, %v4331_v51  ;;  %6715 = vst [vmem:[#allocation25_spill] sm:$0xff] %v4460_v3 }
  0xbe   :  { %v4414_v60 = vpop.permute.xlu1 %417 }
  0xbf   :  { %6711 = vst [vmem:[#allocation21_spill] sm:$0xff] %v4414_v60  ;;  %v423_v17 = vmul.f32 0.0, %v4414_v60  ;;  %v219_v5 = vmul.f32 %v217_v58, %v4299_v40 }
  0xc1   :  { %438 = vrot.lane.b32.xlu1 %v423_v17, %s4109_s17  ;;  %v271_v17 = vrot.slane %v158_v61, %v4331_v51 }
  0xc3   :  { %v4423_v21 = vpop.permute.xlu1 %465  ;;  %v281_v1 = vrot.slane %v271_v17, %v4331_v51 }
  0xc4   :  { %6713 = vst [vmem:[#allocation23_spill] sm:$0xff] %v4423_v21  ;;  %v473_v25 = vmul.f32 0.0, %v4423_v21 }
  0xc5   :  { %484 = vrot.lane.b32.xlu1 %v470_v12, %s4108_s2  ;;  %v190_v12 = vmul.f32 %v183_v42, %v4301_v44  ;;  %v222_v42 = vadd.f32 %v218_v22, %v188_v16  ;;  %v288_v29 = vmul.f32 %v281_v1, %v4320_v20  ;;  %v287_v16 = vmul.f32 %v285_v13, %v4316_v8 }
  0xc6   :  { %490 = vrot.lane.b32.xlu0 %v473_v25, %s4108_s2  ;;  %v241_v25 = vrot.slane %v158_v61, %v4343_v32  ;;  %v223_v32 = vadd.f32 %v219_v5, %v189_v34  ;;  %v252_v61 = vmul.f32 %v247_v19, %v4311_v62  ;;  %v191_v19 = vmul.f32 %v187_v54, %v4301_v44 }
  0xc7   :  { %v4435_v48 = vpop.permute.xlu1 %517  ;;  %v224_v11 = vadd.f32 %v220_v43, %v190_v12  ;;  %v642_v43 = vmul.f32 0.0, %v4460_v3  ;;  %v221_v34 = vmul.f32 %v217_v58, %v4305_v53  ;;  %v289_v58 = vmul.f32 %v285_v13, %v4320_v20 }
  0xc8   :  { %6714 = vst [vmem:[#allocation24_spill] sm:$0xff] %v4435_v48  ;;  %v251_v45 = vrot.slane %v241_v25, %v4340_v31  ;;  %v256_v5 = vadd.f32 %v252_v61, %v222_v42  ;;  %v286_v25 = vmul.f32 %v281_v1, %v4316_v8 }
  0xc9   :  { %v258_v30 = vadd.f32 %v254_v7, %v224_v11 }
  0xca   :  { %v253_v17 = vmul.f32 %v251_v45, %v4311_v62  ;;  %v4479_v22 = vadd.f32 %v286_v25, %v256_v5  ;;  %v2271_v25 = vmul.f32 %v4352_v37, %v4297_v39 }
  0xcb   :  { %v4444_v24 = vpop.permute.xlu1 %568  ;;  %v4469_v11 = vadd.f32 %v288_v29, %v258_v30  ;;  %v255_v30 = vmul.f32 %v251_v45, %v4379_v63 }
  0xcc   :  { %v257_v7 = vadd.f32 %v253_v17, %v223_v32  ;;  %v225_v32 = vadd.f32 %v221_v34, %v191_v19  ;;  %v318_v54 = vmul.f32 %v4349_v36, %v4479_v22  ;;  %v357_v17 = vmul.f32 %v4307_v55, %v4479_v22 }
  0xcd   :  { %v320_v1 = vmul.f32 %v4303_v47, %v4469_v11  ;;  %v360_v45 = vmul.f32 %v4373_v59, %v4469_v11  ;;  %v424_v13 = vmul.f32 %v4414_v60, %v4469_v11  ;;  %v468_v37 = vmul.f32 %v4347_v33, %v4479_v22 }
  0xce   :  { %v4481_v29 = vadd.f32 %v287_v16, %v257_v7  ;;  %v259_v44 = vadd.f32 %v255_v30, %v225_v32  ;;  %v471_v7 = vmul.f32 %v4423_v21, %v4469_v11  ;;  %v2293_v16 = vmul.f32 %v4368_v56, %v4299_v40 }
  0xcf   :  { %v2319_v56 = vmul.f32 %v4388_v6, %v4311_v62  ;;  %v640_v6 = vmul.f32 %v4460_v3, %v4469_v11  ;;  %v575_v28 = vmul.f32 0.0, %v4444_v24  ;;  %v410_v49 = vmul.f32 %v4323_v23, %v4469_v11 }
  0xd0   :  { %v4456_v9 = vpop.permute.xlu1 %582  ;;  %v358_v53 = vmul.f32 %v4307_v55, %v4481_v29  ;;  %v4495_v63 = vadd.f32 %v289_v58, %v259_v44  ;;  %v319_v42 = vmul.f32 %v4349_v36, %v4481_v29  ;;  %v422_v61 = vmul.f32 %v4410_v52, %v4481_v29 }
  0xd1   :  { %v591_v27 = vmul.f32 0.0, %v4456_v9  ;;  %v638_v30 = vmul.f32 %v4447_v14, %v4481_v29  ;;  %v589_v58 = vmul.f32 %v4456_v9, %v4479_v22 }
  0xd2   :  { %v321_v20 = vmul.f32 %v4303_v47, %v4495_v63  ;;  %v361_v5 = vmul.f32 %v4373_v59, %v4495_v63  ;;  %v425_v34 = vmul.f32 %v4414_v60, %v4495_v63  ;;  %v472_v44 = vmul.f32 %v4423_v21, %v4495_v63 }
  0xd3   :  { %605 = vrot.lane.b32.xlu0 %v591_v27, %s4109_s17  ;;  %v639_v27 = vmul.f32 0.0, %v4447_v14 }
  0xd4   :  { %v4467_v12 = vpop.permute.xlu1 %586 }
  0xd5   :  { %6716 = vst [vmem:[#allocation26_spill] sm:$0xff] %v4467_v12  ;;  %v594_v0 = vmul.f32 0.0, %v4467_v12  ;;  %v593_v19 = vmul.f32 %v4467_v12, %v4495_v63 }
  0xd7   :  { %659 = vrot.lane.b32.xlu0 %v642_v43, %s4108_s2  ;;  %611 = vrot.lane.b32.xlu1 %v594_v0, %s4109_s17  ;;  %v469_v43 = vmul.f32 %v4347_v33, %v4481_v29  ;;  %v421_v0 = vmul.f32 %v4410_v52, %v4479_v22 }
  0xdb   :  { %330 = vrot.lane.b32.xlu0 %v320_v1, %s4109_s17  ;;  %653 = vrot.lane.b32.xlu1 %v639_v27, %s4108_s2  ;;  %v2297_v27 = vadd.f32 %v2293_v16, %v2271_v25  ;;  %v685_v1 = vrot.slane %v4278_v46, %v4234_v15  ;;  %v4614_v25 = vpop.permute.xlu1 %686 }
  0xdc   :  { %6717 = vst [vmem:[#allocation27_spill] sm:$0xff] %v4614_v25 }
  0xdd   :  { %v2323_v32 = vadd.f32 %v2319_v56, %v2297_v27 }
  0xdf   :  { %371 = vrot.lane.b32.xlu0 %v358_v53, %s4108_s2  ;;  %326 = vrot.lane.b32.xlu1 %v318_v54, %s4109_s17  ;;  %v2345_v53 = vmul.f32 %v4382_v2, %v4316_v8  ;;  %v590_v2 = vmul.f32 %v4456_v9, %v4481_v29 }
  0xe1   :  { %v4553_v54 = vadd.f32 %v2345_v53, %v2323_v32 }
  0xe3   :  { %375 = vrot.lane.b32.xlu0 %v360_v45, %s4108_s2  ;;  %328 = vrot.lane.b32.xlu1 %v319_v42, %s4109_s17  ;;  %v2357_v46 = vmul.f32 %v4553_v54, %v4349_v36  ;;  %v592_v45 = vmul.f32 %v4467_v12, %v4469_v11  ;;  %v2272_v42 = vmul.f32 %v4355_v38, %v4297_v39 }
  0xe4   :  { %v2346_v39 = vmul.f32 %v4385_v4, %v4316_v8  ;;  %v2531_v4 = vmul.f32 %v4553_v54, %v4456_v9  ;;  %v2387_v16 = vmul.f32 %v4553_v54, %v4307_v55 }
  0xe7   :  { %436 = vrot.lane.b32.xlu0 %v422_v61, %s4109_s17  ;;  %332 = vrot.lane.b32.xlu1 %v321_v20, %s4109_s17  ;;  %v2294_v61 = vmul.f32 %v4371_v57, %v4299_v40  ;;  %v637_v20 = vmul.f32 %v4447_v14, %v4479_v22  ;;  %v2423_v40 = vmul.f32 %v4553_v54, %v4410_v52 }
  0xeb   :  { %440 = vrot.lane.b32.xlu0 %v424_v13, %s4109_s17  ;;  %369 = vrot.lane.b32.xlu1 %v357_v17, %s4108_s2  ;;  %v2298_v13 = vadd.f32 %v2294_v61, %v2272_v42  ;;  %v2320_v17 = vmul.f32 %v4391_v10, %v4311_v62  ;;  %v2455_v62 = vmul.f32 %v4553_v54, %v4347_v33 }
  0xec   :  { %v408_v61 = vmul.f32 %v4398_v35, %v4481_v29 }
  0xef   :  { %482 = vrot.lane.b32.xlu0 %v469_v43, %s4108_s2  ;;  %377 = vrot.lane.b32.xlu1 %v361_v5, %s4108_s2  ;;  %v641_v43 = vmul.f32 %v4460_v3, %v4495_v63  ;;  %v2324_v5 = vadd.f32 %v2320_v17, %v2298_v13 }
  0xf1   :  { %v4586_v38 = vadd.f32 %v2346_v39, %v2324_v5 }
  0xf3   :  { %486 = vrot.lane.b32.xlu0 %v471_v7, %s4108_s2  ;;  %434 = vrot.lane.b32.xlu1 %v421_v0, %s4109_s17  ;;  %v2424_v57 = vmul.f32 %v4586_v38, %v4410_v52  ;;  %v2456_v8 = vmul.f32 %v4586_v38, %v4347_v33  ;;  %v2532_v10 = vmul.f32 %v4586_v38, %v4456_v9  ;;  %v4610_v7 = vpop.permute.xlu0 %296 }
  0xf4   :  { %v2563_v52 = vmul.f32 %v4553_v54, %v4447_v14  ;;  %v2564_v33 = vmul.f32 %v4586_v38, %v4447_v14  ;;  %v2358_v0 = vmul.f32 %v4586_v38, %v4349_v36 }
  0xf7   :  { %609 = vrot.lane.b32.xlu0 %v593_v19, %s4109_s17  ;;  %442 = vrot.lane.b32.xlu1 %v425_v34, %s4109_s17  ;;  %v2388_v34 = vmul.f32 %v4586_v38, %v4307_v55 }
  0xfb   :  { %651 = vrot.lane.b32.xlu0 %v638_v30, %s4108_s2  ;;  %480 = vrot.lane.b32.xlu1 %v468_v37, %s4108_s2 }
  0xff   :  { %688 = vrot.lane.b32.xlu0 %v685_v1, %s4106_s16  ;;  %488 = vrot.lane.b32.xlu1 %v472_v44, %s4108_s2 }
 0x103   :  { %655 = vrot.lane.b32.xlu0 %v640_v6, %s4108_s2  ;;  %601 = vrot.lane.b32.xlu1 %v589_v58, %s4109_s17 }
 0x107   :  { %2365 = vrot.lane.b32.xlu0 %v2357_v46, %s4109_s17  ;;  %603 = vrot.lane.b32.xlu1 %v590_v2, %s4109_s17 }
 0x109   :  { %v4622_v19 = vpop.permute.xlu1 %373 }
 0x10b   :  { %607 = vrot.lane.b32.xlu1 %v592_v45, %s4109_s17 }
 0x10f   :  { %649 = vrot.lane.b32.xlu1 %v637_v20, %s4108_s2 }
 0x113   :  { %657 = vrot.lane.b32.xlu1 %v641_v43, %s4108_s2 }
 0x117   :  { %2431 = vrot.lane.b32.xlu1 %v2423_v40, %s4109_s17 }
 0x11b   :  { %2433 = vrot.lane.b32.xlu1 %v2424_v57, %s4109_s17 }
 0x11f   :  { %2463 = vrot.lane.b32.xlu1 %v2455_v62, %s4108_s2 }
 0x123   :  { %2465 = vrot.lane.b32.xlu1 %v2456_v8, %s4108_s2 }
 0x125   :  { %v4617_v9 = vpop.permute.xlu0 %379 }
 0x126   :  { %6718 = vst [vmem:[#allocation28_spill] sm:$0xff] %v4617_v9 }
 0x127   :  { %2539 = vrot.lane.b32.xlu1 %v2531_v4, %s4109_s17 }
 0x12b   :  { %2541 = vrot.lane.b32.xlu1 %v2532_v10, %s4109_s17  ;;  %v411_v10 = vmul.f32 %v4323_v23, %v4495_v63 }
 0x12f   :  { %2571 = vrot.lane.b32.xlu1 %v2563_v52, %s4108_s2  ;;  %v4624_v14 = vpop.permute.xlu0 %432 }
 0x133   :  { %2573 = vrot.lane.b32.xlu1 %v2564_v33, %s4108_s2  ;;  %v4629_v36 = vpop.permute.xlu1 %438 }
 0x137   :  { %2367 = vrot.lane.b32.xlu1 %v2358_v0, %s4109_s17  ;;  %v4633_v30 = vpop.permute.xlu1 %484 }
 0x138   :  { %v4631_v27 = vpop.permute.xlu0 %490 }
 0x139   :  { %6719 = vst [vmem:[#allocation29_spill] sm:$0xff] %v4631_v27 }
 0x13b   :  { %2395 = vrot.lane.b32.xlu1 %v2387_v16, %s4108_s2 }
 0x13f   :  { %2397 = vrot.lane.b32.xlu1 %v2388_v34, %s4108_s2 }
 0x145   :  { %v4635_v37 = vpop.permute.xlu0 %605 }
 0x149   :  { %v4637_v56 = vpop.permute.xlu0 %659  ;;  %v4639_v1 = vpop.permute.xlu1 %611 }
 0x14d   :  { %v4641_v32 = vpop.permute.xlu0 %330  ;;  %v4643_v44 = vpop.permute.xlu1 %653 }
 0x151   :  { %v4645_v53 = vpop.permute.xlu0 %371  ;;  %v4647_v55 = vpop.permute.xlu1 %326 }
 0x155   :  { %v4649_v6 = vpop.permute.xlu0 %375  ;;  %v4651_v58 = vpop.permute.xlu1 %328 }
 0x159   :  { %v4653_v46 = vpop.permute.xlu0 %436  ;;  %v4655_v2 = vpop.permute.xlu1 %332 }
 0x15a   :  { %6720 = vst [vmem:[#allocation30_spill] sm:$0xff] %v4655_v2  ;;  %v456_v20 = vadd.f32 %v4653_v46, %v408_v61 }
 0x15d   :  { %v4657_v45 = vpop.permute.xlu0 %440  ;;  %v4659_v42 = vpop.permute.xlu1 %369 }
 0x161   :  { %v4664_v13 = vpop.permute.xlu0 %482  ;;  %v4666_v17 = vpop.permute.xlu1 %377 }
 0x162   :  { %6721 = vst [vmem:[#allocation31_spill] sm:$0xff] %v4666_v17  ;;  %v493_v43 = vsel %vm381_vm1, %v4664_v13, %v4633_v30 }
 0x163   :  { %v504_v5 = vadd.f32 %v493_v43, %v456_v20 }
 0x165   :  { %v4671_v39 = vpop.permute.xlu1 %434  ;;  %v528_v40 = vmul.f32 %v4417_v18, %v504_v5  ;;  %v4674_v57 = vpop.permute.xlu0 %486 }
 0x166   :  { %v445_v2 = vsel %vm334_vm2, %v4671_v39, %v4653_v46 }
 0x167   :  { %542 = vrot.lane.b32.xlu1 %v528_v40, %s4110_s18  ;;  %v4694_v40 = vmul.f32 0.0, %v4429_v41 }
 0x169   :  { %v443_v62 = vpop.permute.xlu1 %442  ;;  %v4677_v8 = vpop.permute.xlu0 %609  ;;  %6723 = vst [vmem:[#allocation33_spill] sm:$0xff] %v4694_v40 }
 0x16a   :  { %v459_v52 = vadd.f32 %v443_v62, %v411_v10  ;;  %v447_v21 = vsel %vm334_vm2, %v4657_v45, %v443_v62 }
 0x16d   :  { %v481_v4 = vpop.permute.xlu1 %480  ;;  %v4683_v16 = vpop.permute.xlu0 %651 }
 0x171   :  { %v489_v33 = vpop.permute.xlu1 %488  ;;  %v4689_v43 = vpop.permute.xlu0 %688 }
 0x172   :  { %v495_v0 = vsel %vm381_vm1, %v489_v33, %v4631_v27  ;;  %6722 = vst [vmem:[#allocation32_spill] sm:$0xff] %v4689_v43 }
 0x173   :  { %v507_v34 = vadd.f32 %v495_v0, %v459_v52 }
 0x175   :  { %v4685_v61 = vpop.permute.xlu1 %601  ;;  %v531_v20 = vmul.f32 %v4417_v18, %v507_v34  ;;  %v656_v59 = vpop.permute.xlu0 %655 }
 0x176   :  { %v623_v52 = vadd.f32 %v4685_v61, %v575_v28 }
 0x177   :  { %548 = vrot.lane.b32.xlu0 %v531_v20, %s4110_s18 }
 0x179   :  { %v4691_v5 = vpop.permute.xlu1 %603 }
 0x17d   :  { %v608_v10 = vpop.permute.xlu1 %607 }
 0x17e   :  { %v626_v27 = vadd.f32 %v608_v10, %v4694_v40 }
 0x180   :  { %v674_v0 = vadd.f32 %v656_v59, %v626_v27  ;;  %v2420_v27 = vmul.f32 %v4586_v38, %v4398_v35 }
 0x181   :  { %v4699_v47 = vpop.permute.xlu1 %649 }
 0x182   :  { %v671_v34 = vadd.f32 %v4699_v47, %v623_v52  ;;  %v698_v20 = vmul.f32 %v4614_v25, %v674_v0  ;;  %v444_v52 = vsel %vm334_vm2, %v4624_v14, %v4671_v39  ;;  %v406_v0 = vmul.f32 0.0, %v4398_v35 }
 0x184   :  { %v695_v3 = vmul.f32 %v4614_v25, %v671_v34  ;;  %713 = vrot.lane.b32.xlu0 %v698_v20, %s4111_s19 }
 0x185   :  { %v4705_v12 = vpop.permute.xlu1 %657 }
 0x186   :  { %707 = vrot.lane.b32.xlu1 %v695_v3, %s4111_s19  ;;  %v454_v3 = vadd.f32 %v444_v52, %v406_v0  ;;  %v458_v52 = vadd.f32 %v447_v21, %v410_v49  ;;  %v662_v49 = vsel %vm381_vm1, %v4683_v16, %v4643_v44  ;;  %v615_v21 = vsel %vm334_vm2, %v608_v10, %v4677_v8 }
 0x188   :  { %v502_v60 = vadd.f32 %v481_v4, %v454_v3 }
 0x189   :  { %v2432_v40 = vpop.permute.xlu1 %2431 }
 0x18a   :  { %v526_v62 = vmul.f32 %v4435_v48, %v502_v60  ;;  %v4747_v60 = vsel %vm521_vm3, %v4435_v48, %v4417_v18 }
 0x18b   :  { %6724 = vst [vmem:[#allocation34_spill] sm:$0xff] %v4747_v60 }
 0x18d   :  { %v2434_v51 = vpop.permute.xlu1 %2433 }
 0x18e   :  { %v2451_v34 = vadd.f32 %v2434_v51, %v2420_v27  ;;  %v494_v27 = vsel %vm381_vm1, %v4674_v57, %v489_v33  ;;  %v407_v33 = vmul.f32 %v4398_v35, %v4479_v22 }
 0x191   :  { %v4708_v31 = vpop.permute.xlu1 %2463 }
 0x195   :  { %v2466_v20 = vpop.permute.xlu1 %2465 }
 0x196   :  { %v2472_v15 = vsel %vm381_vm1, %v2466_v20, %v4633_v30  ;;  %v614_v30 = vsel %vm334_vm2, %v4691_v5, %v4635_v37 }
 0x197   :  { %v2483_v50 = vadd.f32 %v2472_v15, %v2451_v34  ;;  %v577_v15 = vmul.f32 %v4444_v24, %v4481_v29  ;;  %v506_v34 = vadd.f32 %v494_v27, %v458_v52  ;;  %v492_v27 = vsel %vm381_vm1, %v481_v4, %v4664_v13 }
 0x198   :  { %v4767_v13 = vmul.f32 0.0, %v4323_v23 }
 0x199   :  { %v2489_v9 = vmul.f32 %v2483_v50, %v4417_v18  ;;  %v4723_v17 = vpop.permute.xlu1 %2539  ;;  %v625_v50 = vadd.f32 %v614_v30, %v577_v15  ;;  %v530_v46 = vmul.f32 %v4747_v60, %v506_v34  ;;  %v579_v30 = vmul.f32 %v4429_v41, %v4469_v11 }
 0x19a   :  { %v455_v15 = vadd.f32 %v445_v2, %v407_v33  ;;  %v2439_v34 = vsel %vm334_vm2, %v4624_v14, %v2432_v40  ;;  %v4784_v14 = vsel %vm690_vm4, %v4614_v25, %v4689_v43 }
 0x19b   :  { %2503 = vrot.lane.b32.xlu1 %v2489_v9, %s4110_s18  ;;  %v2557_v9 = vadd.f32 %v4723_v17, %v575_v28  ;;  %v673_v39 = vadd.f32 %v662_v49, %v625_v50  ;;  %v446_v28 = vsel %vm334_vm2, %v4629_v36, %v4657_v45  ;;  %v627_v10 = vadd.f32 %v615_v21, %v579_v30 }
 0x19c   :  { %v503_v4 = vadd.f32 %v492_v27, %v455_v15  ;;  %v457_v33 = vadd.f32 %v446_v28, %v4767_v13  ;;  %v576_v45 = vmul.f32 %v4444_v24, %v4479_v22  ;;  %v613_v49 = vsel %vm334_vm2, %v4685_v61, %v4691_v5  ;;  %6725 = vst [vmem:[#allocation35_spill] sm:$0xff] %v4784_v14 }
 0x19d   :  { %v4734_v3 = vpop.permute.xlu1 %2541  ;;  %v697_v50 = vmul.f32 %v4689_v43, %v673_v39  ;;  %v2449_v21 = vadd.f32 %v2439_v34, %v406_v0  ;;  %v2419_v61 = vmul.f32 %v4553_v54, %v4398_v35  ;;  %v2471_v0 = vsel %vm381_vm1, %v4708_v31, %v2466_v20 }
 0x19e   :  { %v527_v27 = vmul.f32 %v4747_v60, %v503_v4  ;;  %v664_v30 = vsel %vm381_vm1, %v4705_v12, %v4637_v56 }
 0x19f   :  { %538 = vrot.lane.b32.xlu1 %v526_v62, %s4110_s18  ;;  %v663_v62 = vsel %vm381_vm1, %v656_v59, %v4705_v12  ;;  %v2481_v5 = vadd.f32 %v4708_v31, %v2449_v21 }
 0x1a0   :  { %v675_v59 = vadd.f32 %v663_v62, %v627_v10 }
 0x1a1   :  { %v4757_v52 = vpop.permute.xlu1 %2571  ;;  %v2487_v31 = vmul.f32 %v2481_v5, %v4435_v48  ;;  %v335_v5 = vsel %vm334_vm2, %v4647_v55, %v4651_v58 }
 0x1a2   :  { %v2589_v18 = vadd.f32 %v4757_v52, %v2557_v9  ;;  %v2440_v9 = vsel %vm334_vm2, %v2432_v40, %v2434_v51  ;;  %v699_v39 = vmul.f32 %v4784_v14, %v675_v59  ;;  %v616_v51 = vsel %vm334_vm2, %v4677_v8, %v4639_v1 }
 0x1a3   :  { %546 = vrot.lane.b32.xlu1 %v530_v46, %s4110_s18  ;;  %v661_v46 = vsel %vm381_vm1, %v4699_v47, %v4683_v16  ;;  %v2450_v40 = vadd.f32 %v2440_v9, %v2419_v61  ;;  %v580_v47 = vmul.f32 %v4429_v41, %v4495_v63 }
 0x1a4   :  { %v2595_v2 = vmul.f32 %v2589_v18, %v4614_v25  ;;  %v505_v18 = vadd.f32 %v4674_v57, %v457_v33  ;;  %v624_v57 = vadd.f32 %v613_v49, %v576_v45 }
 0x1a5   :  { %v2482_v20 = vadd.f32 %v2471_v0, %v2450_v40  ;;  %v628_v15 = vadd.f32 %v616_v51, %v580_v47  ;;  %v2574_v12 = vpop.permute.xlu1 %2573  ;;  %v382_v51 = vsel %vm381_vm1, %v4659_v42, %v4645_v53 }
 0x1a6   :  { %2607 = vrot.lane.b32.xlu0 %v2595_v2, %s4111_s19  ;;  %v672_v16 = vadd.f32 %v661_v46, %v624_v57  ;;  %v529_v35 = vmul.f32 %v4435_v48, %v505_v18  ;;  %v306_v46 = vmul.f32 %v4610_v7, %v4481_v29  ;;  %v305_v57 = vmul.f32 %v4610_v7, %v4479_v22 }
 0x1a7   :  { %711 = vrot.lane.b32.xlu1 %v697_v50, %s4111_s19  ;;  %v676_v8 = vadd.f32 %v664_v30, %v628_v15  ;;  %v2488_v28 = vmul.f32 %v2482_v20, %v4747_v60  ;;  %v4823_v50 = vpop.permute.xlu0 %2365  ;;  %v383_v22 = vsel %vm381_vm1, %v4645_v53, %v4622_v19  ;;  %v2580_v53 = vsel %vm381_vm1, %v2574_v12, %v4643_v44 }
 0x1a8   :  { %v696_v62 = vmul.f32 %v4784_v14, %v672_v16  ;;  %v345_v0 = vadd.f32 %v4651_v58, %v306_v46  ;;  %v344_v29 = vadd.f32 %v335_v5, %v305_v57  ;;  %v4852_v16 = vmul.f32 0.0, %v4325_v26 }
 0x1a9   :  { %v700_v10 = vmul.f32 %v4689_v43, %v676_v8  ;;  %v4817_v4 = vpop.permute.xlu1 %2367  ;;  %v2547_v44 = vsel %vm334_vm2, %v4723_v17, %v4734_v3 }
 0x1aa   :  { %540 = vrot.lane.b32.xlu0 %v527_v27, %s4110_s18  ;;  %v4832_v27 = vmul.f32 0.0, %v4610_v7  ;;  %v394_v30 = vadd.f32 %v383_v22, %v345_v0  ;;  %v393_v20 = vadd.f32 %v382_v51, %v344_v29  ;;  %v346_v8 = vadd.f32 %v4641_v32, %v4852_v16 }
 0x1ab   :  { %715 = vrot.lane.b32.xlu1 %v699_v39, %s4111_s19  ;;  %v2527_v51 = vmul.f32 %v4553_v54, %v4444_v24 }
 0x1ac   :  { %v343_v40 = vadd.f32 %v4647_v55, %v4832_v27  ;;  %v2548_v55 = vsel %vm334_vm2, %v4734_v3, %v4635_v37  ;;  %v395_v5 = vadd.f32 %v4649_v6, %v346_v8 }
 0x1ad   :  { %v4819_v34 = vpop.permute.xlu1 %2395 }
 0x1ae   :  { %544 = vrot.lane.b32.xlu0 %v529_v35, %s4110_s18 }
 0x1af   :  { %2499 = vrot.lane.b32.xlu1 %v2487_v31, %s4110_s18  ;;  %v392_v31 = vadd.f32 %v4659_v42, %v343_v40 }
 0x1b1   :  { %v4821_v2 = vpop.permute.xlu1 %2397 }
 0x1b2   :  { %709 = vrot.lane.b32.xlu0 %v696_v62, %s4111_s19  ;;  %v2528_v62 = vmul.f32 %v4586_v38, %v4444_v24  ;;  %v2558_v24 = vadd.f32 %v2547_v44, %v2527_v51 }
 0x1b3   :  { %2501 = vrot.lane.b32.xlu1 %v2488_v28, %s4110_s18 }
 0x1b4   :  { %v2559_v46 = vadd.f32 %v2548_v55, %v2528_v62 }
 0x1b6   :  { %717 = vrot.lane.b32.xlu0 %v700_v10, %s4111_s19 }
 0x1d9   :  { %v543_v59 = vpop.permute.xlu1 %542 }
 0x1e9   :  { %v4825_v45 = vpop.permute.xlu0 %548 }
 0x1f6   :  { %v714_v21 = vpop.permute.xlu0 %713 }
 0x1f8   :  { %v708_v33 = vpop.permute.xlu1 %707 }
 0x20d   :  { %v4827_v49 = vpop.permute.xlu1 %2503 }
 0x211   :  { %v539_v18 = vpop.permute.xlu1 %538 }
 0x212   :  { %v561_v28 = vadd.f32 %v539_v18, %v392_v31 }
 0x215   :  { %v4836_v39 = vpop.permute.xlu1 %546 }
 0x218   :  { %v4829_v9 = vpop.permute.xlu0 %2607 }
 0x219   :  { %v712_v15 = vpop.permute.xlu1 %711 }
 0x21c   :  { %v541_v61 = vpop.permute.xlu0 %540 }
 0x21d   :  { %v551_v58 = vsel %vm550_vm5, %v539_v18, %v541_v61  ;;  %v552_v35 = vsel %vm550_vm5, %v541_v61, %v543_v59  ;;  %v2591_v18 = vadd.f32 %v2580_v53, %v2559_v46  ;;  %v716_v29 = vpop.permute.xlu1 %715  ;;  %v6726_v53 = vld [vmem:[#allocation30_spill] sm:$0xff] }
 0x21e   :  { %v562_v10 = vadd.f32 %v551_v58, %v393_v20  ;;  %v563_v59 = vadd.f32 %v552_v35, %v394_v30  ;;  %v2579_v35 = vsel %vm381_vm1, %v4757_v52, %v2574_v12  ;;  %v722_v17 = vsel %vm719_vm6, %v714_v21, %v716_v29 }
 0x21f   :  { %v2590_v3 = vadd.f32 %v2579_v35, %v2558_v24  ;;  %v2597_v31 = vmul.f32 %v2591_v18, %v4689_v43  ;;  %v2373_v18 = vsel %vm334_vm2, %v4823_v50, %v4817_v4  ;;  %v2353_v35 = vmul.f32 %v4553_v54, %v4610_v7 }
 0x220   :  { %v4849_v47 = vpop.permute.xlu0 %544  ;;  %v4881_v40 = vadd.f32 %v712_v15, %v563_v59 }
 0x221   :  { %v2596_v52 = vmul.f32 %v2590_v3, %v4784_v14  ;;  %v2500_v55 = vpop.permute.xlu1 %2499 }
 0x222   :  { %v738_v30 = vmul.f32 %v4881_v40, %v4881_v40 }
 0x224   :  { %v710_v42 = vpop.permute.xlu0 %709 }
 0x225   :  { %v720_v61 = vsel %vm719_vm6, %v708_v33, %v710_v42  ;;  %v721_v37 = vsel %vm719_vm6, %v710_v42, %v712_v15  ;;  %v564_v33 = vadd.f32 %v4849_v47, %v395_v5  ;;  %v2502_v21 = vpop.permute.xlu1 %2501  ;;  %v2381_v42 = vadd.f32 %v4823_v50, %v4832_v27 }
 0x226   :  { %v4872_v57 = vadd.f32 %v720_v61, %v561_v28  ;;  %v4874_v0 = vadd.f32 %v721_v37, %v562_v10  ;;  %v336_v28 = vsel %vm334_vm2, %v4641_v32, %v6726_v53  ;;  %v308_v10 = vmul.f32 %v4325_v26, %v4469_v11  ;;  %v6727_v37 = vld [vmem:[#allocation31_spill] sm:$0xff] }
 0x227   :  { %v733_v20 = vadd.f32 %v722_v17, %v564_v33  ;;  %v384_v5 = vsel %vm381_vm1, %v4649_v6, %v6727_v37  ;;  %v2413_v32 = vadd.f32 %v4819_v34, %v2381_v42  ;;  %v553_v6 = vsel %vm550_vm5, %v4849_v47, %v4836_v39 }
 0x228   :  { %v736_v22 = vmul.f32 %v4872_v57, %v4872_v57  ;;  %v737_v58 = vmul.f32 %v4874_v0, %v4874_v0  ;;  %v718_v15 = vpop.permute.xlu0 %717  ;;  %v347_v61 = vadd.f32 %v336_v28, %v308_v10  ;;  %v2403_v50 = vsel %vm381_vm1, %v4819_v34, %v4821_v2 }
 0x229   :  { %v859_v12 = vrot.slane %v733_v20, 4  ;;  %v2521_v24 = vadd.f32 %v2500_v55, %v2413_v32  ;;  %v2511_v54 = vsel %vm550_vm5, %v2500_v55, %v2502_v21 }
 0x22a   :  { %742 = vrot.lane.b32.xlu1 %v736_v22, %s4112_s20  ;;  %744 = vrot.lane.b32.xlu0 %v737_v58, %s4112_s20  ;;  %v396_v58 = vadd.f32 %v384_v5, %v347_v61  ;;  %v6728_v5 = vld [vmem:[#allocation28_spill] sm:$0xff] }
 0x22c   :  { %v565_v20 = vadd.f32 %v553_v6, %v396_v58  ;;  %v4990_v6 = vld [vmem:[%s6590_s11] sm:$0xff]  ;;  %v6734_v58 = vld [vmem:[#allocation19_spill] sm:$0xff] }
 0x22e   :  { %746 = vrot.lane.b32.xlu1 %v738_v30, %s4112_s20  ;;  %2611 = vrot.lane.b32.xlu0 %v2597_v31, %s4111_s19  ;;  %v723_v30 = vsel %vm719_vm6, %v716_v29, %v718_v15  ;;  %v2382_v31 = vadd.f32 %v2373_v18, %v2353_v35  ;;  %v65_v18 = vld [vmem:[%s6589_s10] sm:$0xf] }
 0x22f   :  { %v734_v28 = vadd.f32 %v723_v30, %v565_v20 }
 0x231   :  { %v860_v61 = vrot.slane %v734_v28, 4 }
 0x232   :  { %2609 = vrot.lane.b32.xlu1 %v2596_v52, %s4111_s19  ;;  %862 = vrot.lane.b32.xlu0 %v859_v12, %s4112_s20  ;;  %v2354_v12 = vmul.f32 %v4586_v38, %v4610_v7  ;;  %v2512_v38 = vsel %vm550_vm5, %v2502_v21, %v4827_v49  ;;  %v309_v7 = vmul.f32 %v4325_v26, %v4495_v63 }
 0x233   :  { %v554_v49 = vsel %vm550_vm5, %v4836_v39, %v4825_v45  ;;  %v6729_v39 = vmov 2  }
 0x234   :  { %v2383_v10 = vadd.f32 %v4817_v4, %v2354_v12 }
 0x29c   :  { %v745_v8 = vpop.permute.xlu0 %744  ;;  %v743_v62 = vpop.permute.xlu1 %742 }
 0x29d   :  { %v4907_v59 = vsel %vm748_vm7, %v743_v62, %v745_v8 }
 0x29e   :  { %v978_v11 = vsel %vm977_vm8, %v4907_v59, 0.0  ;;  %v996_v22 = vsel %vm995_vm9, %v4907_v59, 0.0  ;;  %v754_v30 = vsel %vm753_vm10, %v4907_v59, 0.0  ;;  %v772_v20 = vsel %vm771_vm11, %v4907_v59, 0.0 }
 0x2a0   :  { %v747_v46 = vpop.permute.xlu1 %746  ;;  %v2612_v62 = vpop.permute.xlu0 %2611 }
 0x2a1   :  { %v4915_v51 = vsel %vm748_vm7, %v745_v8, %v747_v46  ;;  %v2414_v8 = vadd.f32 %v2403_v50, %v2382_v31 }
 0x2a2   :  { %v979_v44 = vsel %vm977_vm8, %v4915_v51, 0.0  ;;  %v997_v27 = vsel %vm995_vm9, %v4915_v51, 0.0  ;;  %v755_v50 = vsel %vm753_vm10, %v4915_v51, 0.0  ;;  %v773_v31 = vsel %vm771_vm11, %v4915_v51, 0.0 }
 0x2a3   :  { %v980_v33 = vadd.f32 %v979_v44, %v978_v11  ;;  %v4934_v3 = vadd.f32 %v997_v27, %v996_v22  ;;  %v2522_v42 = vadd.f32 %v2511_v54, %v2414_v8  ;;  %v6730_v27 = vmov 3   ;;  %v6733_v22 = vld [vmem:[#allocation21_spill] sm:$0xff] }
 0x2a4   :  { %v2610_v17 = vpop.permute.xlu1 %2609  ;;  %v2425_v35 = vmul.f32 %v6734_v58, %v6733_v22  ;;  %v774_v54 = vadd.f32 %v773_v31, %v772_v20  ;;  %v5010_v12 = vpop.permute.xlu0 %862 }
 0x2a5   :  { %v2619_v47 = vsel %vm719_vm6, %v4829_v9, %v2610_v17  ;;  %981 = vadd.xlane.f32.xlu1 %v980_v33  ;;  %v2404_v9 = vsel %vm381_vm1, %v4821_v2, %v4622_v19  ;;  %v2620_v29 = vsel %vm719_vm6, %v2610_v17, %v2612_v62  ;;  %v385_v19 = vsel %vm381_vm1, %v6727_v37, %v6728_v5 }
 0x2a6   :  { %v4942_v52 = vadd.f32 %v2619_v47, %v2521_v24  ;;  %v2415_v55 = vadd.f32 %v2404_v9, %v2383_v10  ;;  %v4959_v46 = vadd.f32 %v2620_v29, %v2522_v42  ;;  %v348_v2 = vadd.f32 %v6726_v53, %v309_v7  ;;  %v71_v53 = vld [vmem:[%s6587_s8] sm:$0xf]  ;;  %v6735_v24 = vld [vmem:[#allocation23_spill] sm:$0xff] }
 0x2a7   :  { %v6732_v33 = vmov 1   ;;  %v2457_v17 = vmul.f32 %v6734_v58, %v6735_v24  ;;  %v756_v47 = vadd.f32 %v755_v50, %v754_v30 }
 0x2a8   :  { %v2635_v34 = vmul.f32 %v4942_v52, %v4942_v52  ;;  %v2523_v4 = vadd.f32 %v2512_v38, %v2415_v55  ;;  %v397_v21 = vadd.f32 %v385_v19, %v348_v2  ;;  %v2636_v63 = vmul.f32 %v4959_v46, %v4959_v46 }
 0x2aa   :  { %2641 = vrot.lane.b32.xlu0 %v2635_v34, %s4112_s20  ;;  %v4969_v32 = vadd.f32 %v2612_v62, %v2523_v4  ;;  %v566_v11 = vadd.f32 %v554_v49, %v397_v21  ;;  %v6736_v21 = vld [vmem:[#allocation20_spill] sm:$0xff] }
 0x2ac   :  { %v735_v37 = vadd.f32 %v718_v15, %v566_v11  ;;  %v2637_v44 = vmul.f32 %v4969_v32, %v4969_v32  ;;  %v6731_v15 = vmov 0   ;;  %v6737_v11 = vmov 7  }
 0x2ae   :  { %864 = vrot.lane.b32.xlu0 %v860_v61, %s4112_s20  ;;  %v861_v45 = vrot.slane %v735_v37, 4 }
 0x2b2   :  { %2643 = vrot.lane.b32.xlu0 %v2636_v63, %s4112_s20  ;;  %v2426_v63 = vmul.f32 %v6736_v21, %v6733_v22 }
 0x2b6   :  { %1186 = vperm.xlu1 %3910, %v71_v53   ;;  %2645 = vrot.lane.b32.xlu0 %v2637_v44, %s4112_s20 }
 0x2ba   :  { %3911 = vset.pattern.permute.xlu1 %v6729_v39  ;;  %866 = vrot.lane.b32.xlu0 %v861_v45, %s4112_s20 }
 0x2bb   :  { %1208 = vperm.xlu1 %3911, %v71_v53  }
 0x2bf   :  { %3912 = vset.pattern.permute.xlu1 %v6730_v27 }
 0x2c0   :  { %1219 = vperm.xlu1 %3912, %v71_v53  }
 0x2c4   :  { %3913 = vset.pattern.permute.xlu1 %v6731_v15 }
 0x2c5   :  { %1297 = vperm.xlu1 %3913, %v65_v18  }
 0x2c9   :  { %1310 = vperm.xlu1 %3913, %v4990_v6  }
 0x2cd   :  { %3914 = vset.pattern.permute.xlu1 %v6732_v33 }
 0x2ce   :  { %1342 = vperm.xlu1 %3914, %v4990_v6  }
 0x2d2   :  { %2435 = vrot.lane.b32.xlu1 %v2425_v35, %s4109_s17 }
 0x2d3   :  { %3915 = vset.pattern.permute.xlu1 %v6729_v39 }
 0x2d6   :  { %2467 = vrot.lane.b32.xlu1 %v2457_v17, %s4108_s2 }
 0x2d9   :  { %757 = vadd.xlane.f32.xlu0 %v756_v47 }
 0x2dd   :  { %775 = vadd.xlane.f32.xlu0 %v774_v54 }
 0x31c   :  { %v2642_v8 = vpop.permute.xlu0 %2641 }
 0x320   :  { %v5012_v62 = vpop.permute.xlu0 %864 }
 0x324   :  { %v2644_v34 = vpop.permute.xlu0 %2643 }
 0x325   :  { %v2647_v28 = vsel %vm748_vm7, %v2642_v8, %v2644_v34 }
 0x326   :  { %v2651_v10 = vsel %vm753_vm10, %v2647_v28, 0.0  ;;  %v2668_v38 = vsel %vm771_vm11, %v2647_v28, 0.0  ;;  %v2867_v61 = vsel %vm977_vm8, %v2647_v28, 0.0  ;;  %v2884_v4 = vsel %vm995_vm9, %v2647_v28, 0.0 }
 0x328   :  { %v2646_v9 = vpop.permute.xlu0 %2645 }
 0x329   :  { %v2648_v29 = vsel %vm748_vm7, %v2644_v34, %v2646_v9 }
 0x32a   :  { %v2652_v51 = vsel %vm753_vm10, %v2648_v29, 0.0  ;;  %v2669_v59 = vsel %vm771_vm11, %v2648_v29, 0.0  ;;  %v2868_v55 = vsel %vm977_vm8, %v2648_v29, 0.0  ;;  %v2885_v2 = vsel %vm995_vm9, %v2648_v29, 0.0 }
 0x32b   :  { %v2653_v42 = vadd.f32 %v2652_v51, %v2651_v10  ;;  %v2670_v7 = vadd.f32 %v2669_v59, %v2668_v38  ;;  %v2869_v19 = vadd.f32 %v2868_v55, %v2867_v61  ;;  %v2886_v49 = vadd.f32 %v2885_v2, %v2884_v4  ;;  %v6738_v51 = vld [vmem:[#allocation9_spill] sm:$0xff] }
 0x32c   :  { %v5029_v37 = vpop.permute.xlu0 %866 }
 0x32d   :  { %2654 = vadd.xlane.f32.xlu0 %v2653_v42 }
 0x331   :  { %2671 = vadd.xlane.f32.xlu0 %v2670_v7 }
 0x335   :  { %2870 = vadd.xlane.f32.xlu0 %v2869_v19  ;;  %v6739_v19 = vld [vmem:[#allocation8_spill] sm:$0xff] }
 0x339   :  { %999 = vadd.xlane.f32.xlu0 %v4934_v3 }
 0x33d   :  { %2887 = vadd.xlane.f32.xlu0 %v2886_v49 }
 0x353   :  { %1197 = vperm.xlu0 %3909, %v71_v53  }
 0x357   :  { %2437 = vrot.lane.b32.xlu0 %v2426_v63, %s4109_s17 }
 0x358   :  { %3919 = vset.pattern.permute.xlu0 %v6737_v11 }
 0x362   :  { %v758_v44 = vpop.xlane.xlu0 %757 }
 0x363   :  { %3950 = vrsqrt.f32 %v758_v44  ;;  %vm761_vm12 = vcmp.eq.f32.partialorder %v758_v44, inf  ;;  %v764_v35 = vand.u32 2147483648, %v758_v44  ;;  %vm763_vm13 = vcmp.eq.f32.partialorder %v758_v44, 0.0 }
 0x366   :  { %v776_v45 = vpop.xlane.xlu0 %775 }
 0x367   :  { %3952 = vrsqrt.f32 %v776_v45  ;;  %vm779_vm14 = vcmp.eq.f32.partialorder %v776_v45, inf  ;;  %v782_v47 = vand.u32 2147483648, %v776_v45  ;;  %vm781_vm15 = vcmp.eq.f32.partialorder %v776_v45, 0.0 }
 0x370   :  { %v3951_v18 = vpop.eup %3950 }
 0x371   :  { %v760_v3 = vmul.f32 %v3951_v18, %v758_v44 }
 0x373   :  { %v762_v17 = vsel %vm761_vm12, %v758_v44, %v760_v3 }
 0x374   :  { %v3953_v53 = vpop.eup %3952  ;;  %v765_v50 = vsel %vm763_vm13, %v764_v35, %v762_v17  ;;  %v982_v35 = vpop.xlane.xlu1 %981 }
 0x375   :  { %v766_v30 = vmax.f32 %v765_v50, 1e-12  ;;  %v778_v22 = vmul.f32 %v3953_v53, %v776_v45  ;;  %vm985_vm3 = vcmp.eq.f32.partialorder %v982_v35, inf  ;;  %vm987_vm4 = vcmp.eq.f32.partialorder %v982_v35, 0.0 }
 0x377   :  { %3954 = vrcp.f32 %v766_v30  ;;  %v780_v31 = vsel %vm779_vm14, %v776_v45, %v778_v22 }
 0x378   :  { %v783_v20 = vsel %vm781_vm15, %v782_v47, %v780_v31 }
 0x379   :  { %v784_v54 = vmax.f32 %v783_v20, 1e-12 }
 0x37b   :  { %3956 = vrcp.f32 %v784_v54  ;;  %v988_v54 = vand.u32 2147483648, %v982_v35 }
 0x37c   :  { %3958 = vrsqrt.f32 %v982_v35 }
 0x384   :  { %v3955_v8 = vpop.eup %3954 }
 0x385   :  { %v770_v34 = vmul.f32 %v3955_v8, %v4881_v40  ;;  %v768_v28 = vmul.f32 %v3955_v8, %v4872_v57  ;;  %v769_v29 = vmul.f32 %v3955_v8, %v4874_v0 }
 0x387   :  { %v800_v42 = vrot.slane %v770_v34, %v6738_v51  ;;  %v792_v38 = vrot.slane %v768_v28, %v6738_v51  ;;  %v897_v2 = vrot.slane %v768_v28, %v6739_v19  ;;  %v796_v4 = vrot.slane %v769_v29, %v6738_v51 }
 0x388   :  { %v3957_v9 = vpop.eup %3956  ;;  %v905_v44 = vrot.slane %v770_v34, %v6739_v19  ;;  %v901_v45 = vrot.slane %v769_v29, %v6739_v19 }
 0x389   :  { %v788_v10 = vmul.f32 %v3957_v9, %v4881_v40  ;;  %v786_v59 = vmul.f32 %v3957_v9, %v4872_v57  ;;  %v787_v61 = vmul.f32 %v3957_v9, %v4874_v0  ;;  %v3959_v30 = vpop.eup %3958 }
 0x38a   :  { %v984_v22 = vmul.f32 %v3959_v30, %v982_v35 }
 0x38b   :  { %v803_v7 = vmul.f32 %v800_v42, %v788_v10  ;;  %v801_v55 = vmul.f32 %v792_v38, %v786_v59  ;;  %v906_v49 = vmul.f32 %v897_v2, %v786_v59  ;;  %v802_v63 = vmul.f32 %v796_v4, %v787_v61 }
 0x38c   :  { %v908_v18 = vmul.f32 %v905_v44, %v788_v10  ;;  %v907_v3 = vmul.f32 %v901_v45, %v787_v61  ;;  %v986_v20 = vsel %vm985_vm3, %v982_v35, %v984_v22 }
 0x38d   :  { %811 = vrot.lane.b32.xlu0 %v803_v7, %s4112_s20  ;;  %807 = vrot.lane.b32.xlu1 %v801_v55, %s4112_s20  ;;  %v989_v28 = vsel %vm987_vm4, %v988_v54, %v986_v20 }
 0x38e   :  { %v990_v42 = vmax.f32 %v989_v28, 1e-12 }
 0x391   :  { %912 = vrot.lane.b32.xlu0 %v906_v49, %s4112_s20  ;;  %809 = vrot.lane.b32.xlu1 %v802_v63, %s4112_s20 }
 0x395   :  { %916 = vrot.lane.b32.xlu0 %v908_v18, %s4112_s20  ;;  %914 = vrot.lane.b32.xlu1 %v907_v3, %s4112_s20 }
 0x3b6   :  { %v2655_v17 = vpop.xlane.xlu0 %2654 }
 0x3b7   :  { %3960 = vrsqrt.f32 %v2655_v17  ;;  %vm2658_vm8 = vcmp.eq.f32.partialorder %v2655_v17, inf  ;;  %v2661_v59 = vand.u32 2147483648, %v2655_v17  ;;  %vm2660_vm13 = vcmp.eq.f32.partialorder %v2655_v17, 0.0 }
 0x3ba   :  { %v2672_v53 = vpop.xlane.xlu0 %2671 }
 0x3bb   :  { %3962 = vrsqrt.f32 %v2672_v53  ;;  %vm2675_vm12 = vcmp.eq.f32.partialorder %v2672_v53, inf  ;;  %v2678_v7 = vand.u32 2147483648, %v2672_v53  ;;  %vm2677_vm14 = vcmp.eq.f32.partialorder %v2672_v53, 0.0 }
 0x3be   :  { %v2871_v50 = vpop.xlane.xlu0 %2870 }
 0x3bf   :  { %vm2874_vm4 = vcmp.eq.f32.partialorder %v2871_v50, inf  ;;  %v2877_v20 = vand.u32 2147483648, %v2871_v50 }
 0x3c2   :  { %v1000_v47 = vpop.xlane.xlu0 %999 }
 0x3c3   :  { %3964 = vrsqrt.f32 %v1000_v47  ;;  %vm1003_vm15 = vcmp.eq.f32.partialorder %v1000_v47, inf  ;;  %v1006_v44 = vand.u32 2147483648, %v1000_v47  ;;  %vm1005_vm3 = vcmp.eq.f32.partialorder %v1000_v47, 0.0 }
 0x3c4   :  { %v3961_v31 = vpop.eup %3960  ;;  %3966 = vrsqrt.f32 %v2871_v50 }
 0x3c5   :  { %v2657_v8 = vmul.f32 %v3961_v31, %v2655_v17 }
 0x3c6   :  { %v2888_v29 = vpop.xlane.xlu0 %2887 }
 0x3c7   :  { %v2659_v10 = vsel %vm2658_vm8, %v2655_v17, %v2657_v8  ;;  %3968 = vrsqrt.f32 %v2888_v29  ;;  %vm2891_vm8 = vcmp.eq.f32.partialorder %v2888_v29, inf }
 0x3c8   :  { %v3963_v34 = vpop.eup %3962  ;;  %v2662_v55 = vsel %vm2660_vm13, %v2661_v59, %v2659_v10  ;;  %3970 = vrcp.f32 %v990_v42  ;;  %vm2893_vm13 = vcmp.eq.f32.partialorder %v2888_v29, 0.0 }
 0x3c9   :  { %v2674_v9 = vmul.f32 %v3963_v34, %v2672_v53  ;;  %v2663_v4 = vmax.f32 %v2662_v55, 1e-12 }
 0x3cb   :  { %v2676_v38 = vsel %vm2675_vm12, %v2672_v53, %v2674_v9  ;;  %3972 = vrcp.f32 %v2663_v4  ;;  %vm2876_vm12 = vcmp.eq.f32.partialorder %v2871_v50, 0.0 }
 0x3cc   :  { %v2679_v61 = vsel %vm2677_vm14, %v2678_v7, %v2676_v38  ;;  %v6740_v38 = vld [vmem:[#allocation16_spill] sm:$0xff]  ;;  %vm841_vm14 = vcmask 1024  }
 0x3cd   :  { %v2680_v63 = vmax.f32 %v2679_v61, 1e-12 }
 0x3cf   :  { %3974 = vrcp.f32 %v2680_v63 }
 0x3d0   :  { %v3965_v2 = vpop.eup %3964 }
 0x3d1   :  { %v1002_v49 = vmul.f32 %v3965_v2, %v1000_v47  ;;  %v3967_v35 = vpop.eup %3966 }
 0x3d2   :  { %v2873_v30 = vmul.f32 %v3967_v35, %v2871_v50 }
 0x3d3   :  { %v1004_v45 = vsel %vm1003_vm15, %v1000_v47, %v1002_v49  ;;  %v2894_v47 = vand.u32 2147483648, %v2888_v29 }
 0x3d4   :  { %v1007_v18 = vsel %vm1005_vm3, %v1006_v44, %v1004_v45  ;;  %v3969_v17 = vpop.eup %3968  ;;  %v2875_v31 = vsel %vm2874_vm4, %v2871_v50, %v2873_v30  ;;  %v5057_v44 = vpop.permute.xlu1 %1186 }
 0x3d5   :  { %v1008_v3 = vmax.f32 %v1007_v18, 1e-12  ;;  %v2890_v22 = vmul.f32 %v3969_v17, %v2888_v29  ;;  %v3971_v53 = vpop.eup %3970  ;;  %v2878_v9 = vsel %vm2876_vm12, %v2877_v20, %v2875_v31 }
 0x3d6   :  { %v993_v8 = vmul.f32 %v3971_v53, %v4874_v0  ;;  %v992_v34 = vmul.f32 %v3971_v53, %v4872_v57  ;;  %v994_v61 = vmul.f32 %v3971_v53, %v4881_v40  ;;  %v2879_v2 = vmax.f32 %v2878_v9, 1e-12 }
 0x3d7   :  { %3976 = vrcp.f32 %v1008_v3  ;;  %v2892_v54 = vsel %vm2891_vm8, %v2888_v29, %v2890_v22 }
 0x3d8   :  { %v3973_v28 = vpop.eup %3972  ;;  %v2895_v42 = vsel %vm2893_vm13, %v2894_v47, %v2892_v54  ;;  %v1020_v7 = vrot.slane %v993_v8, %v6740_v38  ;;  %v1016_v55 = vrot.slane %v992_v34, %v6740_v38  ;;  %3978 = vrcp.f32 %v2879_v2  ;;  %v5067_v53 = vpop.permute.xlu1 %1208 }
 0x3d9   :  { %v2666_v50 = vmul.f32 %v3973_v28, %v4959_v46  ;;  %v2896_v63 = vmax.f32 %v2895_v42, 1e-12  ;;  %v2667_v35 = vmul.f32 %v3973_v28, %v4969_v32  ;;  %v2665_v54 = vmul.f32 %v3973_v28, %v4942_v52 }
 0x3db   :  { %3980 = vrcp.f32 %v2896_v63  ;;  %v2696_v20 = vrot.slane %v2667_v35, %v6738_v51 }
 0x3dc   :  { %v3975_v10 = vpop.eup %3974 }
 0x3dd   :  { %v2683_v3 = vmul.f32 %v3975_v10, %v4959_v46  ;;  %v2684_v22 = vmul.f32 %v3975_v10, %v4969_v32  ;;  %v2682_v42 = vmul.f32 %v3975_v10, %v4942_v52  ;;  %v2791_v10 = vrot.slane %v2666_v50, %v6739_v19 }
 0x3df   :  { %v2699_v9 = vmul.f32 %v2696_v20, %v2684_v22 }
 0x3e4   :  { %v3977_v59 = vpop.eup %3976 }
 0x3e5   :  { %v1011_v4 = vmul.f32 %v3977_v59, %v4874_v0  ;;  %v1010_v49 = vmul.f32 %v3977_v59, %v4872_v57  ;;  %v1012_v18 = vmul.f32 %v3977_v59, %v4881_v40  ;;  %v1024_v0 = vrot.slane %v994_v61, %v6740_v38  ;;  %v6741_v40 = vld [vmem:[#allocation13_spill] sm:$0xff] }
 0x3e6   :  { %v2692_v57 = vrot.slane %v2666_v50, %v6738_v51  ;;  %v1104_v31 = vrot.slane %v992_v34, %v6741_v40  ;;  %v1108_v59 = vrot.slane %v993_v8, %v6741_v40  ;;  %v1112_v28 = vrot.slane %v994_v61, %v6741_v40 }
 0x3e7   :  { %v1026_v29 = vmul.f32 %v1020_v7, %v1011_v4  ;;  %v1025_v45 = vmul.f32 %v1016_v55, %v1010_v49  ;;  %v1027_v17 = vmul.f32 %v1024_v0, %v1012_v18  ;;  %v2787_v7 = vrot.slane %v2665_v54, %v6739_v19  ;;  %v5079_v55 = vpop.permute.xlu1 %1219 }
 0x3e8   :  { %v2698_v30 = vmul.f32 %v2692_v57, %v2683_v3  ;;  %v1113_v47 = vmul.f32 %v1104_v31, %v1010_v49  ;;  %v1114_v2 = vmul.f32 %v1108_v59, %v1011_v4  ;;  %v3979_v49 = vpop.eup %3978  ;;  %v1115_v63 = vmul.f32 %v1112_v28, %v1012_v18 }
 0x3e9   :  { %1033 = vrot.lane.b32.xlu1 %v1026_v29, %s4112_s20  ;;  %1031 = vrot.lane.b32.xlu0 %v1025_v45, %s4112_s20  ;;  %v2796_v34 = vmul.f32 %v2787_v7, %v2682_v42  ;;  %v2797_v29 = vmul.f32 %v2791_v10, %v2683_v3  ;;  %v3981_v45 = vpop.eup %3980  ;;  %v2688_v8 = vrot.slane %v2665_v54, %v6738_v51 }
 0x3ea   :  { %v2795_v4 = vrot.slane %v2667_v35, %v6739_v19  ;;  %v2881_v57 = vmul.f32 %v3979_v49, %v4942_v52  ;;  %v2882_v61 = vmul.f32 %v3979_v49, %v4959_v46  ;;  %v2898_v18 = vmul.f32 %v3981_v45, %v4942_v52 }
 0x3eb   :  { %v5086_v0 = vpop.permute.xlu1 %1297  ;;  %v2899_v3 = vmul.f32 %v3981_v45, %v4959_v46  ;;  %v2883_v35 = vmul.f32 %v3979_v49, %v4969_v32  ;;  %v5119_v49 = vpop.permute.xlu0 %1197 }
 0x3ec   :  { %v2798_v50 = vmul.f32 %v2795_v4, %v2684_v22  ;;  %v2908_v31 = vrot.slane %v2882_v61, %v6740_v38  ;;  %v2900_v22 = vmul.f32 %v3981_v45, %v4969_v32  ;;  %v2987_v46 = vrot.slane %v2881_v57, %v6741_v40  ;;  %v6744_v32 = vld [vmem:[#allocation26_spill] sm:$0xff] }
 0x3ed   :  { %1035 = vrot.lane.b32.xlu1 %v1027_v17, %s4112_s20  ;;  %2705 = vrot.lane.b32.xlu0 %v2698_v30, %s4112_s20  ;;  %v2697_v17 = vmul.f32 %v2688_v8, %v2682_v42  ;;  %v2904_v30 = vrot.slane %v2881_v57, %v6740_v38  ;;  %v2912_v52 = vrot.slane %v2883_v35, %v6740_v38 }
 0x3ee   :  { %v2996_v42 = vmul.f32 %v2987_v46, %v2898_v18  ;;  %v2991_v7 = vrot.slane %v2882_v61, %v6741_v40  ;;  %v2995_v28 = vrot.slane %v2883_v35, %v6741_v40  ;;  %v2534_v45 = vmul.f32 %v6736_v21, %v6744_v32 }
 0x3ef   :  { %v5100_v20 = vpop.permute.xlu1 %1310  ;;  %v2913_v54 = vmul.f32 %v2904_v30, %v2898_v18  ;;  %v5129_v4 = vpop.permute.xlu0 %2437 }
 0x3f0   :  { %6742 = vst [vmem:[#allocation30_spill] sm:$0xff] %v5100_v20 }
 0x3f1   :  { %1119 = vrot.lane.b32.xlu1 %v1113_v47, %s4112_s20  ;;  %2707 = vrot.lane.b32.xlu0 %v2699_v9, %s4112_s20  ;;  %v2914_v47 = vmul.f32 %v2908_v31, %v2899_v3  ;;  %v2915_v9 = vmul.f32 %v2912_v52, %v2900_v22 }
 0x3f3   :  { %v5107_v59 = vpop.permute.xlu1 %1342 }
 0x3f4   :  { %6743 = vst [vmem:[#allocation31_spill] sm:$0xff] %v5107_v59 }
 0x3f5   :  { %1121 = vrot.lane.b32.xlu1 %v1114_v2, %s4112_s20  ;;  %2802 = vrot.lane.b32.xlu0 %v2796_v34, %s4112_s20  ;;  %v2997_v2 = vmul.f32 %v2991_v7, %v2899_v3  ;;  %v2533_v34 = vmul.f32 %v6734_v58, %v6744_v32 }
 0x3f7   :  { %v5117_v10 = vpop.permute.xlu1 %2435 }
 0x3f9   :  { %1123 = vrot.lane.b32.xlu1 %v1115_v63, %s4112_s20  ;;  %2804 = vrot.lane.b32.xlu0 %v2797_v29, %s4112_s20  ;;  %v2458_v63 = vmul.f32 %v6736_v21, %v6735_v24  ;;  %v2998_v29 = vmul.f32 %v2995_v28, %v2900_v22 }
 0x3fb   :  { %v5127_v8 = vpop.permute.xlu1 %2467 }
 0x3fd   :  { %2703 = vrot.lane.b32.xlu1 %v2697_v17, %s4112_s20  ;;  %2806 = vrot.lane.b32.xlu0 %v2798_v50, %s4112_s20 }
 0x3ff   :  { %v812_v57 = vpop.permute.xlu0 %811  ;;  %v808_v61 = vpop.permute.xlu1 %807 }
 0x401   :  { %2919 = vrot.lane.b32.xlu1 %v2913_v54, %s4112_s20  ;;  %2921 = vrot.lane.b32.xlu0 %v2914_v47, %s4112_s20 }
 0x403   :  { %v913_v17 = vpop.permute.xlu0 %912  ;;  %v810_v50 = vpop.permute.xlu1 %809 }
 0x404   :  { %v813_v47 = vsel %vm748_vm7, %v808_v61, %v810_v50  ;;  %v814_v22 = vsel %vm748_vm7, %v810_v50, %v812_v57 }
 0x405   :  { %2923 = vrot.lane.b32.xlu1 %v2915_v9, %s4112_s20  ;;  %3002 = vrot.lane.b32.xlu0 %v2996_v42, %s4112_s20  ;;  %v817_v52 = vsel %vm771_vm11, %v813_v47, 0.0  ;;  %v818_v46 = vsel %vm771_vm11, %v814_v22, 0.0 }
 0x406   :  { %v819_v9 = vadd.f32 %v818_v46, %v817_v52 }
 0x407   :  { %v917_v18 = vpop.permute.xlu0 %916  ;;  %v915_v24 = vpop.permute.xlu1 %914 }
 0x408   :  { %v918_v3 = vsel %vm748_vm7, %v913_v17, %v915_v24  ;;  %v919_v30 = vsel %vm748_vm7, %v915_v24, %v917_v18 }
 0x409   :  { %3004 = vrot.lane.b32.xlu1 %v2997_v2, %s4112_s20  ;;  %2543 = vrot.lane.b32.xlu0 %v2533_v34, %s4109_s17  ;;  %v922_v31 = vsel %vm771_vm11, %v918_v3, 0.0  ;;  %v923_v35 = vsel %vm771_vm11, %v919_v30, 0.0 }
 0x40a   :  { %v924_v54 = vadd.f32 %v923_v35, %v922_v31 }
 0x40d   :  { %2469 = vrot.lane.b32.xlu1 %v2458_v63, %s4108_s2  ;;  %3006 = vrot.lane.b32.xlu0 %v2998_v29, %s4112_s20 }
 0x411   :  { %2545 = vrot.lane.b32.xlu1 %v2534_v45, %s4109_s17 }
 0x42c   :  { %925 = vadd.xlane.f32.xlu0 %v924_v54 }
 0x435   :  { %820 = vadd.xlane.f32.xlu1 %v819_v9 }
 0x45b   :  { %v1032_v42 = vpop.permute.xlu0 %1031  ;;  %v1034_v7 = vpop.permute.xlu1 %1033 }
 0x45c   :  { %v1037_v2 = vsel %vm748_vm7, %v1032_v42, %v1034_v7 }
 0x45d   :  { %v1041_v63 = vsel %vm995_vm9, %v1037_v2, 0.0 }
 0x45f   :  { %v2706_v32 = vpop.permute.xlu0 %2705  ;;  %v1036_v34 = vpop.permute.xlu1 %1035 }
 0x460   :  { %v1038_v28 = vsel %vm748_vm7, %v1034_v7, %v1036_v34 }
 0x461   :  { %v1042_v29 = vsel %vm995_vm9, %v1038_v28, 0.0 }
 0x462   :  { %v1043_v45 = vadd.f32 %v1042_v29, %v1041_v63 }
 0x463   :  { %v2708_v57 = vpop.permute.xlu0 %2707  ;;  %v1120_v61 = vpop.permute.xlu1 %1119 }
 0x464   :  { %1044 = vadd.xlane.f32.xlu0 %v1043_v45  ;;  %v2710_v54 = vsel %vm748_vm7, %v2706_v32, %v2708_v57 }
 0x465   :  { %v2714_v7 = vsel %vm771_vm11, %v2710_v54, 0.0 }
 0x467   :  { %v2803_v17 = vpop.permute.xlu0 %2802  ;;  %v1122_v50 = vpop.permute.xlu1 %1121 }
 0x468   :  { %v1125_v18 = vsel %vm748_vm7, %v1120_v61, %v1122_v50 }
 0x469   :  { %v1129_v31 = vsel %vm995_vm9, %v1125_v18, 0.0 }
 0x46b   :  { %v2805_v24 = vpop.permute.xlu0 %2804  ;;  %v1124_v3 = vpop.permute.xlu1 %1123 }
 0x46c   :  { %v1126_v30 = vsel %vm748_vm7, %v1122_v50, %v1124_v3  ;;  %v2808_v47 = vsel %vm748_vm7, %v2803_v17, %v2805_v24 }
 0x46d   :  { %v1130_v35 = vsel %vm995_vm9, %v1126_v30, 0.0  ;;  %v2812_v2 = vsel %vm771_vm11, %v2808_v47, 0.0 }
 0x46e   :  { %v1131_v22 = vadd.f32 %v1130_v35, %v1129_v31 }
 0x46f   :  { %v2807_v52 = vpop.permute.xlu0 %2806  ;;  %v2704_v46 = vpop.permute.xlu1 %2703 }
 0x470   :  { %v2809_v9 = vsel %vm748_vm7, %v2805_v24, %v2807_v52  ;;  %v2709_v42 = vsel %vm748_vm7, %v2704_v46, %v2706_v32  ;;  %1132 = vadd.xlane.f32.xlu1 %v1131_v22 }
 0x471   :  { %v2813_v34 = vsel %vm771_vm11, %v2809_v9, 0.0  ;;  %v2713_v28 = vsel %vm771_vm11, %v2709_v42, 0.0  ;;  %v6745_v9 = vld [vmem:[#allocation25_spill] sm:$0xff]  ;;  %vm1051_vm11 = vcmask 7174  }
 0x472   :  { %v2814_v63 = vadd.f32 %v2813_v34, %v2812_v2  ;;  %v2715_v29 = vadd.f32 %v2714_v7, %v2713_v28  ;;  %v2566_v42 = vmul.f32 %v6736_v21, %v6745_v9  ;;  %v5173_v7 = vld [vmem:[%s6590_s11 + $0x8] sm:$0xff]  ;;  %v5181_v2 = vld [vmem:[%s6591_s12] sm:$0xff]  ;;  %v2565_v28 = vmul.f32 %v6734_v58, %v6745_v9 }
 0x473   :  { %v2922_v45 = vpop.permute.xlu0 %2921  ;;  %v2920_v57 = vpop.permute.xlu1 %2919 }
 0x474   :  { %2815 = vadd.xlane.f32.xlu1 %v2814_v63  ;;  %2716 = vadd.xlane.f32.xlu0 %v2715_v29  ;;  %v2925_v61 = vsel %vm748_vm7, %v2920_v57, %v2922_v45  ;;  %v2441_v63 = vsel %vm334_vm2, %v4629_v36, %v5117_v10  ;;  %v2421_v29 = vmul.f32 %v6734_v58, %v4323_v23  ;;  %v6747_v36 = vmov 4  }
 0x475   :  { %v2929_v18 = vsel %vm995_vm9, %v2925_v61, 0.0 }
 0x477   :  { %v3003_v17 = vpop.permute.xlu0 %3002  ;;  %v2924_v50 = vpop.permute.xlu1 %2923 }
 0x478   :  { %v2926_v32 = vsel %vm748_vm7, %v2922_v45, %v2924_v50  ;;  %v6746_v45 = vld [vmem:[#allocation10_spill] sm:$0xff]  ;;  %v2452_v50 = vadd.f32 %v2441_v63, %v4767_v13 }
 0x479   :  { %v2930_v24 = vsel %vm995_vm9, %v2926_v32, 0.0  ;;  %v2360_v57 = vmul.f32 %v6736_v21, %v6746_v45  ;;  %v2359_v32 = vmul.f32 %v6734_v58, %v6746_v45 }
 0x47a   :  { %v2931_v3 = vadd.f32 %v2930_v24, %v2929_v18  ;;  %v6748_v18 = vld [vmem:[#allocation18_spill] sm:$0xff] }
 0x47b   :  { %v5160_v30 = vpop.permute.xlu0 %2543  ;;  %v3005_v31 = vpop.permute.xlu1 %3004  ;;  %v2390_v24 = vmul.f32 %v6736_v21, %v6748_v18  ;;  %v2389_v13 = vmul.f32 %v6734_v58, %v6748_v18  ;;  %v2530_v18 = vmul.f32 %v6736_v21, %v4429_v41 }
 0x47c   :  { %2932 = vadd.xlane.f32.xlu0 %v2931_v3  ;;  %v3008_v35 = vsel %vm748_vm7, %v3003_v17, %v3005_v31  ;;  %v2484_v3 = vadd.f32 %v5127_v8, %v2452_v50 }
 0x47d   :  { %v3012_v22 = vsel %vm995_vm9, %v3008_v35, 0.0  ;;  %v6749_v35 = vld [vmem:[#allocation29_spill] sm:$0xff] }
 0x47f   :  { %v3007_v54 = vpop.permute.xlu0 %3006  ;;  %v2470_v34 = vpop.permute.xlu1 %2469 }
 0x480   :  { %v3009_v47 = vsel %vm748_vm7, %v3005_v31, %v3007_v54  ;;  %v2473_v61 = vsel %vm381_vm1, %v5127_v8, %v2470_v34  ;;  %v2422_v31 = vmul.f32 %v6736_v21, %v4323_v23  ;;  %v2474_v54 = vsel %vm381_vm1, %v2470_v34, %v6749_v35  ;;  %v6750_v23 = vld [vmem:[#allocation22_spill] sm:$0xff] }
 0x481   :  { %v3013_v52 = vsel %vm995_vm9, %v3009_v47, 0.0  ;;  %vm827_vm9 = vcmask 5124  }
 0x482   :  { %v3014_v46 = vadd.f32 %v3013_v52, %v3012_v22  ;;  %v2454_v22 = vadd.f32 %v5129_v4, %v2422_v31  ;;  %v2490_v52 = vmul.f32 %v2484_v3, %v4435_v48 }
 0x483   :  { %v2546_v9 = vpop.permute.xlu1 %2545 }
 0x484   :  { %3015 = vadd.xlane.f32.xlu0 %v3014_v46  ;;  %v2486_v8 = vadd.f32 %v2474_v54, %v2454_v22  ;;  %v2550_v50 = vsel %vm334_vm2, %v2546_v9, %v4639_v1 }
 0x485   :  { %2577 = vrot.lane.b32.xlu1 %v2566_v42, %s4108_s2 }
 0x486   :  { %v2492_v46 = vmul.f32 %v2486_v8, %v6750_v23  ;;  %v70_v8 = vld [vmem:[%s6586_s7] sm:$0x3] }
 0x489   :  { %1376 = vperm.xlu1 %3915, %v4990_v6   ;;  %v2442_v6 = vsel %vm334_vm2, %v5117_v10, %v5129_v4 }
 0x48a   :  { %v2453_v17 = vadd.f32 %v2442_v6, %v2421_v29 }
 0x48c   :  { %v2485_v10 = vadd.f32 %v2473_v61, %v2453_v17  ;;  %v2529_v17 = vmul.f32 %v6734_v58, %v4429_v41 }
 0x48d   :  { %1380 = vperm.xlu1 %3915, %v5173_v7  }
 0x48e   :  { %v2491_v47 = vmul.f32 %v2485_v10, %v4747_v60 }
 0x491   :  { %3916 = vset.pattern.permute.xlu1 %v6730_v27 }
 0x492   :  { %1414 = vperm.xlu1 %3916, %v5173_v7  }
 0x496   :  { %3917 = vset.pattern.permute.xlu1 %v6732_v33 }
 0x497   :  { %1445 = vperm.xlu1 %3917, %v5181_v2  }
 0x49a   :  { %2575 = vrot.lane.b32.xlu0 %v2565_v28, %s4108_s2 }
 0x49b   :  { %2371 = vrot.lane.b32.xlu1 %v2360_v57, %s4109_s17  ;;  %v2549_v57 = vsel %vm334_vm2, %v5160_v30, %v2546_v9 }
 0x49c   :  { %3918 = vset.pattern.permute.xlu1 %v6747_v36 }
 0x49e   :  { %2369 = vrot.lane.b32.xlu0 %v2359_v32, %s4109_s17  ;;  %v6751_v32 = vld [vmem:[#allocation33_spill] sm:$0xff] }
 0x49f   :  { %2401 = vrot.lane.b32.xlu1 %v2390_v24, %s4108_s2  ;;  %v2560_v10 = vadd.f32 %v5160_v30, %v6751_v32  ;;  %v2561_v24 = vadd.f32 %v2549_v57, %v2529_v17  ;;  %v5251_v30 = vld [vmem:[%s6591_s12 + $0x8] sm:$0xff]  ;;  %v1049_v57 = vrot.slane %v70_v8, %v6739_v19 }
 0x4a2   :  { %2399 = vrot.lane.b32.xlu0 %v2389_v13, %s4108_s2  ;;  %v2562_v13 = vadd.f32 %v2550_v50, %v2530_v18 }
 0x4a3   :  { %2507 = vrot.lane.b32.xlu1 %v2491_v47, %s4110_s18 }
 0x4a6   :  { %2505 = vrot.lane.b32.xlu0 %v2490_v52, %s4110_s18 }
 0x4aa   :  { %2509 = vrot.lane.b32.xlu0 %v2492_v46, %s4110_s18  ;;  %v825_v46 = vrot.slane %v70_v8, %v6738_v51 }
 0x4b5   :  { %v926_v42 = vpop.xlane.xlu0 %925 }
 0x4b6   :  { %v927_v9 = vmul.f32 %v926_v42, %v825_v46 }
 0x4be   :  { %v821_v34 = vpop.xlane.xlu1 %820 }
 0x4ed   :  { %v1045_v6 = vpop.xlane.xlu0 %1044 }
 0x4ee   :  { %v5267_v17 = vmul.f32 %v1049_v57, %v1045_v6 }
 0x4f0   :  { %v1052_v42 = vsel %vm1051_vm11, %v5267_v17, -inf }
 0x4f9   :  { %v1133_v28 = vpop.xlane.xlu1 %1132 }
 0x4fd   :  { %v2717_v63 = vpop.xlane.xlu0 %2716  ;;  %v2816_v4 = vpop.xlane.xlu1 %2815 }
 0x4fe   :  { %v5279_v6 = vmul.f32 %v2717_v63, %v825_v46 }
 0x501   :  { %v2578_v61 = vpop.permute.xlu1 %2577 }
 0x502   :  { %v2582_v3 = vsel %vm381_vm1, %v2578_v61, %v4637_v56  ;;  %v64_v56 = vld [vmem:[%s6588_s9] sm:$0xf] }
 0x503   :  { %v2594_v22 = vadd.f32 %v2582_v3, %v2562_v13 }
 0x505   :  { %v2933_v29 = vpop.xlane.xlu0 %2932  ;;  %v2600_v41 = vmul.f32 %v2594_v22, %v4689_v43 }
 0x50d   :  { %v3016_v45 = vpop.xlane.xlu0 %3015 }
 0x511   :  { %v2576_v31 = vpop.permute.xlu0 %2575 }
 0x512   :  { %v2581_v35 = vsel %vm381_vm1, %v2576_v31, %v2578_v61  ;;  %v2592_v54 = vadd.f32 %v2576_v31, %v2560_v10  ;;  %v5264_v61 = vmul.f32 %v825_v46, %v821_v34  ;;  %v5271_v10 = vmul.f32 %v1133_v28, %v1049_v57 }
 0x513   :  { %v2593_v47 = vadd.f32 %v2581_v35, %v2561_v24  ;;  %v5275_v24 = vmul.f32 %v2816_v4, %v825_v46  ;;  %v1053_v34 = vrot.slane %v1052_v42, 4  ;;  %v2719_v4 = vsel %vm827_vm9, %v5279_v6, -inf }
 0x514   :  { %v2598_v52 = vmul.f32 %v2592_v54, %v4614_v25  ;;  %v828_v32 = vsel %vm827_vm9, %v5264_v61, -inf  ;;  %v1135_v31 = vsel %vm1051_vm11, %v5271_v10, -inf  ;;  %v5283_v54 = vmul.f32 %v3016_v45, %v1049_v57 }
 0x515   :  { %v2599_v1 = vmul.f32 %v2593_v47, %v4784_v14  ;;  %v829_v18 = vrot.slane %v828_v32, 4  ;;  %v2818_v35 = vsel %vm827_vm9, %v5275_v24, -inf  ;;  %v1136_v47 = vrot.slane %v1135_v31, 4 }
 0x516   :  { %2613 = vrot.lane.b32.xlu1 %v2598_v52, %s4111_s19  ;;  %v1054_v22 = vmax.f32 %v1052_v42, %v1053_v34  ;;  %v2819_v52 = vrot.slane %v2818_v35, 4  ;;  %v3018_v63 = vsel %vm1051_vm11, %v5283_v54, -inf  ;;  %v2720_v46 = vrot.slane %v2719_v4, 4 }
 0x517   :  { %2615 = vrot.lane.b32.xlu0 %v2599_v1, %s4111_s19  ;;  %v830_v13 = vmax.f32 %v828_v32, %v829_v18  ;;  %v5287_v1 = vmul.f32 %v2933_v29, %v1049_v57  ;;  %v1137_v8 = vmax.f32 %v1135_v31, %v1136_v47  ;;  %v3019_v32 = vrot.slane %v3018_v63, 4 }
 0x518   :  { %v2721_v14 = vmax.f32 %v2719_v4, %v2720_v46 }
 0x519   :  { %v2935_v45 = vsel %vm1051_vm11, %v5287_v1, -inf  ;;  %v1138_v34 = vrot.slane %v1137_v8, 2  ;;  %v3020_v60 = vmax.f32 %v3018_v63, %v3019_v32 }
 0x51a   :  { %2617 = vrot.lane.b32.xlu1 %v2600_v41, %s4111_s19  ;;  %v831_v41 = vrot.slane %v830_v13, 2  ;;  %v2936_v43 = vrot.slane %v2935_v45, 4 }
 0x51b   :  { %1498 = vperm.xlu0 %3919, %v5181_v2   ;;  %v1139_v23 = vmax.f32 %v1137_v8, %v1138_v34 }
 0x51c   :  { %v832_v18 = vmax.f32 %v830_v13, %v831_v41  ;;  %v2937_v31 = vmax.f32 %v2935_v45, %v2936_v43 }
 0x51d   :  { %v1140_v36 = vrot.slane %v1139_v23, 1 }
 0x51e   :  { %1460 = vperm.xlu1 %3918, %v5181_v2   ;;  %v833_v48 = vrot.slane %v832_v18, 1  ;;  %v2938_v13 = vrot.slane %v2937_v31, 2 }
 0x51f   :  { %3920 = vset.pattern.permute.xlu0 %v6731_v15  ;;  %v1141_v63 = vmax.f32 %v1139_v23, %v1140_v36 }
 0x520   :  { %1284 = vperm.xlu0 %3920, %v64_v56  }
 0x522   :  { %1464 = vperm.xlu1 %3918, %v5251_v30  }
 0x524   :  { %1315 = vperm.xlu0 %3920, %v5173_v7   ;;  %v928_v7 = vsel %vm827_vm9, %v927_v9, -inf }
 0x525   :  { %v929_v50 = vrot.slane %v928_v7, 4 }
 0x526   :  { %3921 = vset.pattern.permute.xlu1 %v6737_v11 }
 0x527   :  { %1502 = vperm.xlu1 %3921, %v5251_v30   ;;  %v930_v3 = vmax.f32 %v928_v7, %v929_v50  ;;  %v1055_v7 = vrot.slane %v1054_v22, 2  ;;  %v2820_v50 = vmax.f32 %v2818_v35, %v2819_v52  ;;  %v3021_v35 = vrot.slane %v3020_v60, 2 }
 0x528   :  { %v834_v52 = vmax.f32 %v832_v18, %v833_v48  ;;  %v1142_v48 = vsub.f32 %v5271_v10, %v1141_v63 }
 0x529   :  { %v931_v28 = vrot.slane %v930_v3, 2  ;;  %v1056_v29 = vmax.f32 %v1054_v22, %v1055_v7  ;;  %v2821_v57 = vrot.slane %v2820_v50, 2  ;;  %v3022_v4 = vmax.f32 %v3020_v60, %v3021_v35  ;;  %v2370_v35 = vpop.permute.xlu0 %2369 }
 0x52a   :  { %v835_v22 = vsub.f32 %v5264_v61, %v834_v52 }
 0x52b   :  { %3922 = vset.pattern.permute.xlu1 %v6731_v15  ;;  %v932_v56 = vmax.f32 %v930_v3, %v931_v28  ;;  %v2722_v3 = vrot.slane %v2721_v14, 2  ;;  %v1057_v28 = vrot.slane %v1056_v29, 1  ;;  %v2822_v47 = vmax.f32 %v2820_v50, %v2821_v57 }
 0x52c   :  { %v3023_v45 = vrot.slane %v3022_v4, 1  ;;  %v836_v50 = vmul.f32 1.442695, %v835_v22 }
 0x52d   :  { %v933_v42 = vrot.slane %v932_v56, 1  ;;  %v2723_v40 = vmax.f32 %v2721_v14, %v2722_v3  ;;  %v1058_v41 = vmax.f32 %v1056_v29, %v1057_v28  ;;  %v2823_v38 = vrot.slane %v2822_v47, 1 }
 0x52e   :  { %v3024_v61 = vmax.f32 %v3022_v4, %v3023_v45  ;;  %v5330_v45 = vpop.permute.xlu0 %2399 }
 0x52f   :  { %v934_v25 = vmax.f32 %v932_v56, %v933_v42  ;;  %v2724_v7 = vrot.slane %v2723_v40, 1  ;;  %v2939_v56 = vmax.f32 %v2937_v31, %v2938_v13  ;;  %v1059_v8 = vsub.f32 %v5267_v17, %v1058_v41 }
 0x530   :  { %v2824_v43 = vmax.f32 %v2822_v47, %v2823_v38  ;;  %v3025_v17 = vsub.f32 %v5283_v54, %v3024_v61 }
 0x531   :  { %v935_v11 = vsub.f32 %v927_v9, %v934_v25  ;;  %v2725_v25 = vmax.f32 %v2723_v40, %v2724_v7  ;;  %v2940_v14 = vrot.slane %v2939_v56, 1  ;;  %v5296_v9 = vpop.permute.xlu1 %1376  ;;  %v1060_v32 = vmul.f32 1.442695, %v1059_v8 }
 0x532   :  { %6752 = vst [vmem:[#allocation28_spill] sm:$0xff] %v5296_v9  ;;  %v2825_v60 = vsub.f32 %v5275_v24, %v2824_v43  ;;  %v3026_v42 = vmul.f32 1.442695, %v3025_v17 }
 0x533   :  { %v936_v46 = vmul.f32 1.442695, %v935_v11  ;;  %v1143_v11 = vmul.f32 1.442695, %v1142_v48  ;;  %v2726_v36 = vsub.f32 %v5279_v6, %v2725_v25  ;;  %v2941_v23 = vmax.f32 %v2939_v56, %v2940_v14 }
 0x534   :  { %v2826_v38 = vmul.f32 1.442695, %v2825_v60 }
 0x535   :  { %3982 = vpow2.f32 %v936_v46  ;;  %v5301_v18 = vpop.permute.xlu1 %1380  ;;  %v2727_v40 = vmul.f32 1.442695, %v2726_v36  ;;  %v2942_v10 = vsub.f32 %v5287_v1, %v2941_v23 }
 0x536   :  { %3984 = vpow2.f32 %v836_v50  ;;  %6753 = vst [vmem:[#allocation21_spill] sm:$0xff] %v5301_v18 }
 0x537   :  { %3986 = vpow2.f32 %v1060_v32  ;;  %v2943_v24 = vmul.f32 1.442695, %v2942_v10 }
 0x538   :  { %3988 = vpow2.f32 %v1143_v11 }
 0x539   :  { %3990 = vpow2.f32 %v2826_v38  ;;  %v5306_v29 = vpop.permute.xlu1 %1414 }
 0x53a   :  { %3992 = vpow2.f32 %v2727_v40  ;;  %6754 = vst [vmem:[#allocation19_spill] sm:$0xff] %v5306_v29 }
 0x53b   :  { %3994 = vpow2.f32 %v3026_v42 }
 0x53c   :  { %3996 = vpow2.f32 %v2943_v24 }
 0x53d   :  { %v5314_v1 = vpop.permute.xlu1 %1445 }
 0x53e   :  { %6755 = vst [vmem:[#allocation23_spill] sm:$0xff] %v5314_v1 }
 0x541   :  { %v2372_v22 = vpop.permute.xlu1 %2371 }
 0x542   :  { %v5304_v34 = vpop.eup %3982 }
 0x543   :  { %v5308_v6 = vpop.eup %3984  ;;  %v939_v57 = vrot.slane %v5304_v34, 4 }
 0x544   :  { %v5311_v54 = vpop.eup %3986  ;;  %v839_v3 = vrot.slane %v5308_v6, 4 }
 0x545   :  { %v941_v31 = vsel %vm841_vm14, %v939_v57, 0.0  ;;  %v5317_v28 = vpop.eup %3988  ;;  %v1063_v47 = vrot.slane %v5311_v54, 6  ;;  %v2402_v36 = vpop.permute.xlu1 %2401 }
 0x546   :  { %v5320_v52 = vpop.eup %3990  ;;  %v942_v13 = vrot.slane %v941_v31, 4  ;;  %v842_v41 = vsel %vm841_vm14, %v839_v3, 0.0  ;;  %v1146_v4 = vrot.slane %v5317_v28, 6  ;;  %v5341_v57 = vpop.permute.xlu0 %2505 }
 0x547   :  { %v5324_v46 = vpop.eup %3992  ;;  %v843_v63 = vrot.slane %v842_v41, 4  ;;  %v1065_v7 = vsel %vm841_vm14, %v1063_v47, 0.0  ;;  %v2829_v56 = vrot.slane %v5320_v52, 4 }
 0x548   :  { %v5328_v8 = vpop.eup %3994  ;;  %v943_v43 = vadd.f32 %v942_v13, %v941_v31  ;;  %v1066_v50 = vrot.slane %v1065_v7, 4  ;;  %v1148_v48 = vsel %vm841_vm14, %v1146_v4, 0.0  ;;  %v2730_v25 = vrot.slane %v5324_v46, 4 }
 0x549   :  { %v5334_v14 = vpop.eup %3996  ;;  %v844_v32 = vadd.f32 %v843_v63, %v842_v41  ;;  %v2831_v60 = vsel %vm841_vm14, %v2829_v56, 0.0  ;;  %v3029_v61 = vrot.slane %v5328_v8, 6  ;;  %v1149_v23 = vrot.slane %v1148_v48, 4  ;;  %v2508_v56 = vpop.permute.xlu1 %2507 }
 0x54a   :  { %v944_v11 = vrot.slane %v943_v43, 2  ;;  %v1067_v38 = vadd.f32 %v1066_v50, %v1065_v7  ;;  %v2732_v17 = vsel %vm841_vm14, %v2730_v25, 0.0  ;;  %v2832_v40 = vrot.slane %v2831_v60, 4  ;;  %v2510_v18 = vpop.permute.xlu0 %2509 }
 0x54b   :  { %v2946_v10 = vrot.slane %v5334_v14, 6  ;;  %v845_v42 = vrot.slane %v844_v32, 2  ;;  %v3031_v24 = vsel %vm841_vm14, %v3029_v61, 0.0  ;;  %v1150_v31 = vadd.f32 %v1149_v23, %v1148_v48 }
 0x54c   :  { %v945_v3 = vadd.f32 %v944_v11, %v943_v43  ;;  %v2733_v47 = vrot.slane %v2732_v17, 4  ;;  %v1068_v13 = vrot.slane %v1067_v38, 2  ;;  %v2833_v41 = vadd.f32 %v2832_v40, %v2831_v60 }
 0x54d   :  { %v2948_v4 = vsel %vm841_vm14, %v2946_v10, 0.0  ;;  %v3032_v63 = vrot.slane %v3031_v24, 4  ;;  %v846_v7 = vadd.f32 %v845_v42, %v844_v32  ;;  %v1151_v25 = vrot.slane %v1150_v31, 2 }
 0x54e   :  { %v946_v50 = vrot.slane %v945_v3, 1  ;;  %v2734_v1 = vadd.f32 %v2733_v47, %v2732_v17  ;;  %v2949_v29 = vrot.slane %v2948_v4, 4  ;;  %v1069_v9 = vadd.f32 %v1068_v13, %v1067_v38 }
 0x54f   :  { %v2834_v59 = vrot.slane %v2833_v41, 2  ;;  %v3033_v61 = vadd.f32 %v3032_v63, %v3031_v24  ;;  %v847_v19 = vrot.slane %v846_v7, 1  ;;  %v1152_v48 = vadd.f32 %v1151_v25, %v1150_v31 }
 0x550   :  { %v947_v43 = vadd.f32 %v946_v50, %v945_v3  ;;  %v2735_v11 = vrot.slane %v2734_v1, 2  ;;  %v2950_v23 = vadd.f32 %v2949_v29, %v2948_v4  ;;  %v2356_v60 = vmul.f32 %v6736_v21, %v4325_v26 }
 0x551   :  { %v2835_v10 = vadd.f32 %v2834_v59, %v2833_v41  ;;  %v3034_v32 = vrot.slane %v3033_v61, 2  ;;  %v2384_v42 = vadd.f32 %v2370_v35, %v4852_v16  ;;  %v1070_v17 = vrot.slane %v1069_v9, 1 }
 0x552   :  { %v2355_v38 = vmul.f32 %v6734_v58, %v4325_v26  ;;  %v848_v47 = vadd.f32 %v847_v19, %v846_v7  ;;  %v2374_v24 = vsel %vm334_vm2, %v2370_v35, %v2372_v22  ;;  %v2386_v13 = vadd.f32 %v2372_v22, %v2356_v60 }
 0x553   :  { %v2416_v3 = vadd.f32 %v5330_v45, %v2384_v42  ;;  %3998 = vrcp.f32 %v947_v43  ;;  %v2736_v29 = vadd.f32 %v2735_v11, %v2734_v1  ;;  %v2951_v4 = vrot.slane %v2950_v23, 2 }
 0x554   :  { %v2406_v21 = vsel %vm381_vm1, %v2402_v36, %v6728_v5  ;;  %v1153_v16 = vrot.slane %v1152_v48, 1  ;;  %v3035_v41 = vadd.f32 %v3034_v32, %v3033_v61  ;;  %v1071_v26 = vadd.f32 %v1070_v17, %v1069_v9 }
 0x555   :  { %v2836_v58 = vrot.slane %v2835_v10, 1  ;;  %4000 = vrcp.f32 %v848_v47  ;;  %v2385_v35 = vadd.f32 %v2374_v24, %v2355_v38  ;;  %v2405_v22 = vsel %vm381_vm1, %v5330_v45, %v2402_v36 }
 0x556   :  { %v2418_v1 = vadd.f32 %v2406_v21, %v2386_v13  ;;  %v2524_v7 = vadd.f32 %v5341_v57, %v2416_v3  ;;  %v2952_v50 = vadd.f32 %v2951_v4, %v2950_v23  ;;  %v2514_v25 = vsel %vm550_vm5, %v2508_v56, %v2510_v18 }
 0x557   :  { %v1154_v61 = vadd.f32 %v1153_v16, %v1152_v48  ;;  %v2737_v9 = vrot.slane %v2736_v29, 1  ;;  %4002 = vrcp.f32 %v1071_v26  ;;  %v3036_v11 = vrot.slane %v3035_v41, 1 }
 0x558   :  { %v2417_v60 = vadd.f32 %v2405_v22, %v2385_v35  ;;  %v2526_v32 = vadd.f32 %v2514_v25, %v2418_v1  ;;  %v2513_v36 = vsel %vm550_vm5, %v5341_v57, %v2508_v56  ;;  %v2953_v23 = vrot.slane %v2952_v50, 1 }
 0x559   :  { %4004 = vrcp.f32 %v1154_v61  ;;  %v2738_v42 = vadd.f32 %v2737_v9, %v2736_v29  ;;  %v3037_v48 = vadd.f32 %v3036_v11, %v3035_v41 }
 0x55a   :  { %v2954_v13 = vadd.f32 %v2953_v23, %v2952_v50 }
 0x560   :  { %v3999_v47 = vpop.eup %3998 }
 0x562   :  { %v4001_v56 = vpop.eup %4000 }
 0x563   :  { %v850_v41 = vmul.f32 %v4001_v56, %v5308_v6  ;;  %v869_v56 = vsel %vm748_vm7, %v5012_v62, %v5029_v37 }
 0x588   :  { %v2614_v20 = vpop.permute.xlu1 %2613 }
 0x589   :  { %v2616_v40 = vpop.permute.xlu0 %2615 }
 0x58a   :  { %v2621_v19 = vsel %vm719_vm6, %v2614_v20, %v2616_v40  ;;  %v2837_v20 = vadd.f32 %v2836_v58, %v2835_v10  ;;  %v2525_v10 = vadd.f32 %v2513_v36, %v2417_v60 }
 0x58b   :  { %v2632_v43 = vadd.f32 %v2621_v19, %v2524_v7 }
 0x58c   :  { %v2618_v31 = vpop.permute.xlu1 %2617  ;;  %4006 = vrcp.f32 %v2837_v20 }
 0x58d   :  { %v2749_v17 = vrot.slane %v2632_v43, 4  ;;  %v2634_v18 = vadd.f32 %v2618_v31, %v2526_v32  ;;  %v2622_v38 = vsel %vm719_vm6, %v2616_v40, %v2618_v31  ;;  %4008 = vrcp.f32 %v2738_v42  ;;  %v4003_v31 = vpop.eup %4002 }
 0x58e   :  { %v2633_v3 = vadd.f32 %v2622_v38, %v2525_v10  ;;  %4010 = vrcp.f32 %v3037_v48  ;;  %v949_v40 = vmul.f32 %v3999_v47, %v5304_v34  ;;  %v4005_v21 = vpop.eup %4004  ;;  %v1073_v16 = vmul.f32 %v4003_v31, %v5311_v54 }
 0x58f   :  { %v2751_v4 = vrot.slane %v2634_v18, 4  ;;  %4012 = vrcp.f32 %v2954_v13  ;;  %v1156_v19 = vmul.f32 %v4005_v21, %v5317_v28  ;;  %v6756_v54 = vmov 6   ;;  %v4046_v28 = vld [vmem:[%s6590_s11] sm:$0xff] }
 0x590   :  { %v2750_v29 = vrot.slane %v2633_v3, 4 }
 0x596   :  { %v5353_v59 = vpop.permute.xlu0 %1498 }
 0x597   :  { %v1507_v63 = vmul.f32 0.0, %v5353_v59 }
 0x599   :  { %1521 = vrot.lane.b32.xlu1 %v1507_v63, %s4108_s2  ;;  %v5361_v5 = vpop.permute.xlu1 %1460  ;;  %v4007_v63 = vpop.eup %4006 }
 0x59a   :  { %v4009_v26 = vpop.eup %4008  ;;  %v2839_v58 = vmul.f32 %v4007_v63, %v5320_v52  ;;  %v6757_v52 = vmov 8  }
 0x59b   :  { %v4011_v35 = vpop.eup %4010  ;;  %v2740_v22 = vmul.f32 %v4009_v26, %v5324_v46  ;;  %v5397_v46 = vpop.permute.xlu0 %1284 }
 0x59c   :  { %v3039_v34 = vmul.f32 %v4011_v35, %v5328_v8  ;;  %v4013_v1 = vpop.eup %4012 }
 0x59d   :  { %1546 = vperm.xlu1 %3922, %v5181_v2   ;;  %v5365_v45 = vpop.permute.xlu1 %1464  ;;  %v2956_v6 = vmul.f32 %v4013_v1, %v5334_v14 }
 0x59f   :  { %v5399_v8 = vpop.permute.xlu0 %1315 }
 0x5a1   :  { %2752 = vrot.lane.b32.xlu1 %v2749_v17, %s4112_s20 }
 0x5a2   :  { %v5371_v24 = vpop.permute.xlu1 %1502 }
 0x5a3   :  { %v1510_v57 = vmul.f32 0.0, %v5371_v24 }
 0x5a5   :  { %2756 = vrot.lane.b32.xlu1 %v2751_v4, %s4112_s20  ;;  %1527 = vrot.lane.b32.xlu0 %v1510_v57, %s4108_s2  ;;  %v6761_v4 = vmov 5   ;;  %v868_v57 = vsel %vm748_vm7, %v5010_v12, %v5012_v62 }
 0x5a9   :  { %952 = vperm.xlu1 %3922, %v949_v40   ;;  %2754 = vrot.lane.b32.xlu0 %v2750_v29, %s4112_s20 }
 0x5ad   :  { %1076 = vperm.xlu1 %3922, %v1073_v16   ;;  %853 = vperm.xlu0 %3920, %v850_v41  }
 0x5b1   :  { %2842 = vperm.xlu1 %3922, %v2839_v58   ;;  %1159 = vperm.xlu0 %3920, %v1156_v19  }
 0x5b5   :  { %3042 = vperm.xlu1 %3922, %v3039_v34   ;;  %2743 = vperm.xlu0 %3920, %v2740_v22  }
 0x5b9   :  { %2959 = vperm.xlu0 %3920, %v2956_v6   ;;  %3924 = vset.pattern.permute.xlu1 %v6730_v27 }
 0x5ba   :  { %1560 = vperm.xlu1 %3924, %v5181_v2  }
 0x5bd   :  { %1550 = vperm.xlu0 %3920, %v5251_v30  }
 0x5be   :  { %3926 = vset.pattern.permute.xlu1 %v6756_v54 }
 0x5c1   :  { %3923 = vset.pattern.permute.xlu0 %v6730_v27 }
 0x5c2   :  { %1410 = vperm.xlu0 %3923, %v4046_v28  }
 0x5c6   :  { %1564 = vperm.xlu0 %3923, %v5251_v30  }
 0x5ca   :  { %3925 = vset.pattern.permute.xlu0 %v6756_v54 }
 0x5cb   :  { %1608 = vperm.xlu0 %3925, %v5181_v2  }
 0x5cf   :  { %3929 = vset.pattern.permute.xlu0 %v6757_v52 }
 0x60b   :  { %v5401_v14 = vpop.permute.xlu1 %1521 }
 0x60c   :  { %6758 = vst [vmem:[#allocation20_spill] sm:$0xff] %v5401_v14 }
 0x617   :  { %v5403_v7 = vpop.permute.xlu0 %1527 }
 0x618   :  { %6759 = vst [vmem:[#allocation26_spill] sm:$0xff] %v5403_v7  ;;  %v5405_v50 = vpop.permute.xlu1 %1546 }
 0x619   :  { %6760 = vst [vmem:[#allocation25_spill] sm:$0xff] %v5405_v50 }
 0x61b   :  { %v5407_v25 = vpop.permute.xlu0 %2754 }
 0x61c   :  { %v5409_v61 = vpop.permute.xlu1 %2752 }
 0x620   :  { %v5411_v43 = vpop.permute.xlu1 %2756 }
 0x624   :  { %v953_v11 = vpop.permute.xlu1 %952 }
 0x625   :  { %v955_v16 = vmul.f32 %v953_v11, %v868_v57  ;;  %v956_v41 = vmul.f32 %v953_v11, %v869_v56 }
 0x627   :  { %v959_v58 = vrot.slane %v955_v16, 4  ;;  %v960_v19 = vrot.slane %v956_v41, 4 }
 0x628   :  { %v854_v9 = vpop.permute.xlu0 %853  ;;  %v1077_v32 = vpop.permute.xlu1 %1076 }
 0x629   :  { %v872_v29 = vmul.f32 %v868_v57, %v854_v9  ;;  %v873_v40 = vmul.f32 %v869_v56, %v854_v9  ;;  %v1079_v35 = vmul.f32 %v1077_v32, %v868_v57  ;;  %v1080_v34 = vmul.f32 %v1077_v32, %v869_v56 }
 0x62a   :  { %v963_v1 = vsel %vm753_vm10, %v959_v58, 0.0  ;;  %v970_v62 = vsel %vm753_vm10, %v960_v19, 0.0 }
 0x62b   :  { %v876_v31 = vrot.slane %v872_v29, 4  ;;  %v877_v21 = vrot.slane %v873_v40, 4  ;;  %v1083_v37 = vrot.slane %v1079_v35, 6  ;;  %v1084_v6 = vrot.slane %v1080_v34, 6 }
 0x62c   :  { %v1160_v20 = vpop.permute.xlu0 %1159  ;;  %v5417_v42 = vpop.permute.xlu1 %2842 }
 0x62d   :  { %v880_v63 = vsel %vm753_vm10, %v876_v31, 0.0  ;;  %v887_v26 = vsel %vm753_vm10, %v877_v21, 0.0  ;;  %v1162_v28 = vmul.f32 %v1160_v20, %v868_v57  ;;  %v1094_v29 = vsel %vm753_vm10, %v1084_v6, 0.0 }
 0x62e   :  { %v881_v22 = vrot.slane %v880_v63, 4  ;;  %v888_v12 = vrot.slane %v887_v26, 4  ;;  %v1095_v19 = vrot.slane %v1094_v29, 4 }
 0x62f   :  { %v1166_v40 = vrot.slane %v1162_v28, 6 }
 0x630   :  { %v5413_v60 = vpop.permute.xlu0 %2743  ;;  %v5421_v17 = vpop.permute.xlu1 %3042  ;;  %v882_v9 = vadd.f32 %v881_v22, %v880_v63  ;;  %v889_v11 = vadd.f32 %v888_v12, %v887_v26  ;;  %v1096_v22 = vadd.f32 %v1095_v19, %v1094_v29 }
 0x631   :  { %v1170_v35 = vsel %vm753_vm10, %v1166_v40, 0.0 }
 0x632   :  { %v883_v31 = vrot.slane %v882_v9, 2  ;;  %v890_v21 = vrot.slane %v889_v11, 2  ;;  %v1171_v12 = vrot.slane %v1170_v35, 4 }
 0x634   :  { %v5415_v36 = vpop.permute.xlu0 %2959  ;;  %v884_v57 = vadd.f32 %v883_v31, %v882_v9 }
 0x635   :  { %v5425_v48 = vpop.permute.xlu1 %1560 }
 0x636   :  { %v1567_v10 = vmul.f32 0.0, %v5425_v48  ;;  %v885_v6 = vrot.slane %v884_v57, 1 }
 0x638   :  { %v5419_v23 = vpop.permute.xlu0 %1550  ;;  %1579 = vrot.lane.b32.xlu1 %v1567_v10, %s4109_s17  ;;  %v964_v10 = vrot.slane %v963_v1, 4  ;;  %v886_v14 = vadd.f32 %v885_v6, %v884_v57 }
 0x63a   :  { %v965_v16 = vadd.f32 %v964_v10, %v963_v1  ;;  %v1172_v10 = vadd.f32 %v1171_v12, %v1170_v35 }
 0x63c   :  { %v966_v63 = vrot.slane %v965_v16, 2  ;;  %v1173_v31 = vrot.slane %v1172_v10, 2 }
 0x63d   :  { %v5423_v18 = vpop.permute.xlu0 %1410 }
 0x641   :  { %v5427_v38 = vpop.permute.xlu0 %1564 }
 0x642   :  { %v1570_v47 = vmul.f32 0.0, %v5427_v38 }
 0x644   :  { %1585 = vrot.lane.b32.xlu1 %v1570_v47, %s4109_s17  ;;  %v971_v47 = vrot.slane %v970_v62, 4 }
 0x646   :  { %v5433_v13 = vpop.permute.xlu0 %1608  ;;  %v972_v41 = vadd.f32 %v971_v47, %v970_v62  ;;  %v1097_v62 = vrot.slane %v1096_v22, 2 }
 0x647   :  { %v1617_v3 = vmul.f32 0.0, %v5433_v13 }
 0x648   :  { %1612 = vperm.xlu1 %3926, %v5251_v30   ;;  %v973_v26 = vrot.slane %v972_v41, 2 }
 0x64a   :  { %v974_v7 = vadd.f32 %v973_v26, %v972_v41 }
 0x64c   :  { %1631 = vrot.lane.b32.xlu1 %v1617_v3, %s4108_s2  ;;  %v1087_v3 = vsel %vm753_vm10, %v1083_v37, 0.0 }
 0x64d   :  { %3927 = vset.pattern.permute.xlu1 %v6729_v39  ;;  %v1088_v58 = vrot.slane %v1087_v3, 4 }
 0x64f   :  { %v1089_v34 = vadd.f32 %v1088_v58, %v1087_v3  ;;  %v1189_v3 = vmul.f32 %v5057_v44, %v886_v14  ;;  %v4047_v14 = vld [vmem:[%s6579_s0] sm:$0xff] }
 0x650   :  { %1696 = vperm.xlu1 %3927, %v5181_v2  }
 0x651   :  { %v1090_v1 = vrot.slane %v1089_v34, 2 }
 0x653   :  { %v1091_v9 = vadd.f32 %v1090_v1, %v1089_v34 }
 0x654   :  { %3928 = vset.pattern.permute.xlu1 %v6761_v4 }
 0x655   :  { %1710 = vperm.xlu1 %3928, %v5181_v2  }
 0x659   :  { %1714 = vperm.xlu1 %3928, %v5251_v30  }
 0x65d   :  { %3931 = vset.pattern.permute.xlu1 %v6757_v52  ;;  %v1163_v52 = vmul.f32 %v1160_v20, %v869_v56  ;;  %v891_v56 = vadd.f32 %v890_v21, %v889_v11  ;;  %v1098_v11 = vadd.f32 %v1097_v62, %v1096_v22 }
 0x65f   :  { %v1167_v32 = vrot.slane %v1163_v52, 6  ;;  %v892_v28 = vrot.slane %v891_v56, 1  ;;  %v967_v52 = vadd.f32 %v966_v63, %v965_v16  ;;  %v1092_v16 = vrot.slane %v1091_v9, 1 }
 0x660   :  { %v1099_v41 = vrot.slane %v1098_v11, 1  ;;  %v1174_v63 = vadd.f32 %v1173_v31, %v1172_v10  ;;  %v2758_v10 = vsel %vm748_vm7, %v5409_v61, %v5407_v25 }
 0x661   :  { %v1177_v20 = vsel %vm753_vm10, %v1167_v32, 0.0  ;;  %v893_v40 = vadd.f32 %v892_v28, %v891_v56  ;;  %v968_v50 = vrot.slane %v967_v52, 1  ;;  %v975_v32 = vrot.slane %v974_v7, 1 }
 0x662   :  { %v1178_v37 = vrot.slane %v1177_v20, 4  ;;  %v1093_v34 = vadd.f32 %v1092_v16, %v1091_v9  ;;  %v1100_v22 = vadd.f32 %v1099_v41, %v1098_v11  ;;  %v1175_v12 = vrot.slane %v1174_v63, 1 }
 0x663   :  { %v1190_v29 = vmul.f32 %v5057_v44, %v893_v40  ;;  %v969_v58 = vadd.f32 %v968_v50, %v967_v52  ;;  %v976_v19 = vadd.f32 %v975_v32, %v974_v7  ;;  %v2759_v40 = vsel %vm748_vm7, %v5407_v25, %v5411_v43 }
 0x664   :  { %v1179_v47 = vadd.f32 %v1178_v37, %v1177_v20  ;;  %v1211_v6 = vmul.f32 %v5067_v53, %v1093_v34  ;;  %v1212_v28 = vmul.f32 %v5067_v53, %v1100_v22  ;;  %v1176_v52 = vadd.f32 %v1175_v12, %v1174_v63 }
 0x665   :  { %v1193_v35 = vcombine.low %v1189_v3, %v1190_v29  ;;  %v1200_v57 = vmul.f32 %v5119_v49, %v969_v58  ;;  %v1201_v56 = vmul.f32 %v5119_v49, %v976_v19  ;;  %v2762_v32 = vmul.f32 %v2758_v10, %v5413_v60 }
 0x666   :  { %v1180_v21 = vrot.slane %v1179_v47, 2  ;;  %v1215_v9 = vcombine.low %v1211_v6, %v1212_v28  ;;  %v1222_v11 = vmul.f32 %v5079_v55, %v1176_v52  ;;  %v2845_v43 = vmul.f32 %v5417_v42, %v2758_v10 }
 0x667   :  { %v1195_v7 = vadd.f32 %v4047_v14, %v1193_v35  ;;  %v1204_v50 = vcombine.low %v1200_v57, %v1201_v56  ;;  %v2766_v19 = vrot.slane %v2762_v32, 4  ;;  %v2846_v41 = vmul.f32 %v5417_v42, %v2759_v40 }
 0x668   :  { %v1181_v26 = vadd.f32 %v1180_v21, %v1179_v47  ;;  %v2763_v21 = vmul.f32 %v2759_v40, %v5413_v60  ;;  %v2962_v35 = vmul.f32 %v5415_v36, %v2758_v10  ;;  %v2963_v57 = vmul.f32 %v5415_v36, %v2759_v40 }
 0x669   :  { %v1206_v47 = vadd.f32 %v1204_v50, %v1195_v7  ;;  %v2770_v60 = vsel %vm753_vm10, %v2766_v19, 0.0  ;;  %v2849_v34 = vrot.slane %v2845_v43, 4  ;;  %v2850_v22 = vrot.slane %v2846_v41, 4 }
 0x66a   :  { %v1182_v37 = vrot.slane %v1181_v26, 1  ;;  %v2767_v16 = vrot.slane %v2763_v21, 4  ;;  %v2966_v42 = vrot.slane %v2962_v35, 6  ;;  %v2967_v7 = vrot.slane %v2963_v57, 6 }
 0x66b   :  { %v1217_v58 = vadd.f32 %v1215_v9, %v1206_v47  ;;  %v2853_v50 = vsel %vm753_vm10, %v2849_v34, 0.0  ;;  %v2860_v6 = vsel %vm753_vm10, %v2850_v22, 0.0  ;;  %v3045_v36 = vmul.f32 %v5421_v17, %v2758_v10 }
 0x66c   :  { %v1183_v1 = vadd.f32 %v1182_v37, %v1181_v26  ;;  %v2777_v26 = vsel %vm753_vm10, %v2767_v16, 0.0  ;;  %v2771_v37 = vrot.slane %v2770_v60, 4  ;;  %v2970_v21 = vsel %vm753_vm10, %v2966_v42, 0.0 }
 0x66d   :  { %v2778_v14 = vrot.slane %v2777_v26, 4 }
 0x66e   :  { %v1223_v31 = vmul.f32 %v5079_v55, %v1183_v1  ;;  %v3046_v1 = vmul.f32 %v5421_v17, %v2759_v40  ;;  %v2772_v9 = vadd.f32 %v2771_v37, %v2770_v60  ;;  %v3049_v17 = vrot.slane %v3045_v36, 6 }
 0x66f   :  { %v2971_v60 = vrot.slane %v2970_v21, 4 }
 0x670   :  { %v1226_v61 = vcombine.low %v1222_v11, %v1223_v31  ;;  %v2779_v11 = vadd.f32 %v2778_v14, %v2777_v26  ;;  %v2854_v31 = vrot.slane %v2853_v50, 4  ;;  %v3050_v40 = vrot.slane %v3046_v1, 6 }
 0x671   :  { %v2773_v43 = vrot.slane %v2772_v9, 2 }
 0x672   :  { %v5489_v63 = vadd.f32 %v1226_v61, %v1217_v58  ;;  %v2861_v61 = vrot.slane %v2860_v6, 4  ;;  %v2780_v41 = vrot.slane %v2779_v11, 2  ;;  %v2855_v35 = vadd.f32 %v2854_v31, %v2853_v50 }
 0x673   :  { %v3060_v37 = vsel %vm753_vm10, %v3050_v40, 0.0  ;;  %v2774_v14 = vadd.f32 %v2773_v43, %v2772_v9 }
 0x674   :  { %6764 = vst [vmem:[#allocation29_spill] sm:$0xff] %v5489_v63  ;;  %v1230_v12 = vcombine.high %v5489_v63, %v5489_v63  ;;  %v1232_v32 = vsel %vm81_vm0, %v5489_v63, 0.0  ;;  %v2862_v34 = vadd.f32 %v2861_v61, %v2860_v6  ;;  %v2781_v42 = vadd.f32 %v2780_v41, %v2779_v11  ;;  %v4048_v6 = vld [vmem:[%s6590_s11 + $0x8] sm:$0xff] }
 0x675   :  { %v1233_v10 = vrot.slane %v1232_v32, 4  ;;  %v2856_v1 = vrot.slane %v2855_v35, 2  ;;  %v3061_v31 = vrot.slane %v3060_v37, 4 }
 0x676   :  { %v1239_v52 = vsel %vm81_vm0, %v1230_v12, 0.0  ;;  %v3053_v12 = vsel %vm753_vm10, %v3049_v17, 0.0  ;;  %v2782_v9 = vrot.slane %v2781_v42, 1 }
 0x677   :  { %v1240_v58 = vrot.slane %v1239_v52, 4  ;;  %v1234_v22 = vadd.f32 %v1233_v10, %v1232_v32  ;;  %v2775_v32 = vrot.slane %v2774_v14, 1  ;;  %v3062_v10 = vadd.f32 %v3061_v31, %v3060_v37 }
 0x679   :  { %v1241_v57 = vadd.f32 %v1240_v58, %v1239_v52  ;;  %v1235_v52 = vrot.slane %v1234_v22, 2  ;;  %v2776_v40 = vadd.f32 %v2775_v32, %v2774_v14 }
 0x67b   :  { %v1242_v50 = vrot.slane %v1241_v57, 2  ;;  %v1236_v17 = vadd.f32 %v1235_v52, %v1234_v22 }
 0x6aa   :  { %v5460_v20 = vpop.permute.xlu1 %1579 }
 0x6ab   :  { %6762 = vst [vmem:[#allocation10_spill] sm:$0xff] %v5460_v20  ;;  %v3063_v20 = vrot.slane %v3062_v10, 2 }
 0x6ad   :  { %v3064_v14 = vadd.f32 %v3063_v20, %v3062_v10 }
 0x6af   :  { %v3065_v32 = vrot.slane %v3064_v14, 1 }
 0x6b6   :  { %v5469_v62 = vpop.permute.xlu1 %1585 }
 0x6b7   :  { %6763 = vst [vmem:[#allocation18_spill] sm:$0xff] %v5469_v62 }
 0x6c3   :  { %v5481_v3 = vpop.permute.xlu1 %1612 }
 0x6c4   :  { %v1620_v29 = vmul.f32 0.0, %v5481_v3 }
 0x6c6   :  { %1637 = vrot.lane.b32.xlu0 %v1620_v29, %s4108_s2  ;;  %v2977_v29 = vsel %vm753_vm10, %v2967_v7, 0.0  ;;  %v2972_v7 = vadd.f32 %v2971_v60, %v2970_v21 }
 0x6c7   :  { %v5485_v25 = vpop.permute.xlu1 %1631  ;;  %v2978_v26 = vrot.slane %v2977_v29, 4 }
 0x6c8   :  { %v2973_v11 = vrot.slane %v2972_v7, 2 }
 0x6c9   :  { %v2979_v36 = vadd.f32 %v2978_v26, %v2977_v29  ;;  %v2857_v29 = vadd.f32 %v2856_v1, %v2855_v35  ;;  %v3067_v35 = vmul.f32 %v2776_v40, %v5057_v44 }
 0x6ca   :  { %v2974_v43 = vadd.f32 %v2973_v11, %v2972_v7 }
 0x6cb   :  { %v5495_v56 = vpop.permute.xlu1 %1696  ;;  %v2980_v21 = vrot.slane %v2979_v36, 2  ;;  %v2858_v60 = vrot.slane %v2857_v29, 1 }
 0x6cc   :  { %6765 = vst [vmem:[#allocation33_spill] sm:$0xff] %v5495_v56  ;;  %v1237_v56 = vrot.slane %v1236_v17, 1 }
 0x6cd   :  { %v2981_v41 = vadd.f32 %v2980_v21, %v2979_v36  ;;  %v2859_v37 = vadd.f32 %v2858_v60, %v2857_v29 }
 0x6d0   :  { %v5501_v28 = vpop.permute.xlu1 %1710 }
 0x6d1   :  { %v1719_v47 = vmul.f32 0.0, %v5501_v28 }
 0x6d3   :  { %1733 = vrot.lane.b32.xlu0 %v1719_v47, %s4109_s17  ;;  %v3054_v47 = vrot.slane %v3053_v12, 4 }
 0x6d4   :  { %v5512_v19 = vpop.permute.xlu1 %1714 }
 0x6d5   :  { %v1722_v16 = vmul.f32 0.0, %v5512_v19  ;;  %v3055_v61 = vadd.f32 %v3054_v47, %v3053_v12  ;;  %v2982_v12 = vrot.slane %v2981_v41, 1 }
 0x6d7   :  { %1758 = vperm.xlu0 %3929, %v5181_v2   ;;  %1739 = vrot.lane.b32.xlu1 %v1722_v16, %s4109_s17  ;;  %v2863_v2 = vrot.slane %v2862_v34, 2  ;;  %v2783_v16 = vadd.f32 %v2782_v9, %v2781_v42  ;;  %v3056_v62 = vrot.slane %v3055_v61, 2  ;;  %v1238_v42 = vadd.f32 %v1237_v56, %v1236_v17 }
 0x6d9   :  { %v2864_v58 = vadd.f32 %v2863_v2, %v2862_v34  ;;  %v2975_v34 = vrot.slane %v2974_v43, 1  ;;  %v3057_v22 = vadd.f32 %v3056_v62, %v3055_v61  ;;  %v3074_v2 = vmul.f32 %v2859_v37, %v5119_v49 }
 0x6da   :  { %v1246_v9 = vmul.f32 0.25, %v1238_v42 }
 0x6db   :  { %3930 = vset.pattern.permute.xlu0 %v6732_v33  ;;  %1762 = vperm.xlu1 %3931, %v5251_v30   ;;  %v1243_v33 = vadd.f32 %v1242_v50, %v1241_v57  ;;  %v3068_v57 = vmul.f32 %v2783_v16, %v5057_v44  ;;  %v2976_v36 = vadd.f32 %v2975_v34, %v2974_v43  ;;  %v3058_v52 = vrot.slane %v3057_v22, 1  ;;  %v4049_v44 = vld [vmem:[%s6579_s0 + $0x8] sm:$0xff] }
 0x6dc   :  { %1346 = vperm.xlu0 %3930, %v4048_v6   ;;  %v2865_v6 = vrot.slane %v2864_v58, 1  ;;  %v2983_v50 = vadd.f32 %v2982_v12, %v2981_v41 }
 0x6dd   :  { %v1244_v26 = vrot.slane %v1243_v33, 1  ;;  %v3071_v7 = vcombine.low %v3067_v35, %v3068_v57  ;;  %v3081_v62 = vmul.f32 %v2976_v36, %v5067_v53  ;;  %v3059_v29 = vadd.f32 %v3058_v52, %v3057_v22 }
 0x6de   :  { %v3082_v20 = vmul.f32 %v2983_v50, %v5067_v53 }
 0x6df   :  { %3932 = vset.pattern.permute.xlu1 %v6731_v15  ;;  %v1245_v1 = vadd.f32 %v1244_v26, %v1243_v33  ;;  %v3073_v11 = vadd.f32 %v4049_v44, %v3071_v7  ;;  %v3066_v33 = vadd.f32 %v3065_v32, %v3064_v14  ;;  %v3088_v10 = vmul.f32 %v3059_v29, %v5079_v55 }
 0x6e0   :  { %1450 = vperm.xlu0 %3930, %v5251_v30   ;;  %v2866_v30 = vadd.f32 %v2865_v6, %v2864_v58  ;;  %v3085_v61 = vcombine.low %v3081_v62, %v3082_v20 }
 0x6e1   :  { %v1247_v47 = vmul.f32 0.25, %v1245_v1  ;;  %v3089_v17 = vmul.f32 %v3066_v33, %v5079_v55 }
 0x6e2   :  { %v3075_v31 = vmul.f32 %v2866_v30, %v5119_v49 }
 0x6e3   :  { %v1250_v56 = vcombine.low %v1246_v9, %v1247_v47  ;;  %v3092_v43 = vcombine.low %v3088_v10, %v3089_v17 }
 0x6e4   :  { %v3078_v21 = vcombine.low %v3074_v2, %v3075_v31 }
 0x6e5   :  { %v1252_v49 = vsub.f32 %v5489_v63, %v1250_v56 }
 0x6e6   :  { %v3080_v58 = vadd.f32 %v3078_v21, %v3073_v11 }
 0x6e7   :  { %v1253_v16 = vmul.f32 %v1252_v49, %v1252_v49 }
 0x6e8   :  { %v3087_v40 = vadd.f32 %v3085_v61, %v3080_v58 }
 0x6e9   :  { %v1255_v60 = vcombine.high %v1253_v16, %v1253_v16  ;;  %v1257_v6 = vsel %vm81_vm0, %v1253_v16, 0.0 }
 0x6ea   :  { %v5538_v41 = vadd.f32 %v3092_v43, %v3087_v40  ;;  %v1258_v55 = vrot.slane %v1257_v6, 4 }
 0x6eb   :  { %v1264_v26 = vsel %vm81_vm0, %v1255_v60, 0.0 }
 0x6ec   :  { %6766 = vst [vmem:[#allocation36_spill] sm:$0xff] %v5538_v41  ;;  %v3096_v53 = vcombine.high %v5538_v41, %v5538_v41  ;;  %v1265_v57 = vrot.slane %v1264_v26, 4  ;;  %v3098_v34 = vsel %vm81_vm0, %v5538_v41, 0.0  ;;  %v1259_v30 = vadd.f32 %v1258_v55, %v1257_v6 }
 0x6ed   :  { %v3099_v1 = vrot.slane %v3098_v34, 4 }
 0x6ee   :  { %v3105_v35 = vsel %vm81_vm0, %v3096_v53, 0.0  ;;  %v1266_v37 = vadd.f32 %v1265_v57, %v1264_v26  ;;  %v1260_v7 = vrot.slane %v1259_v30, 2 }
 0x6ef   :  { %v3106_v12 = vrot.slane %v3105_v35, 4  ;;  %v3100_v42 = vadd.f32 %v3099_v1, %v3098_v34  ;;  %v6767_v1 = vld [vmem:[#allocation11_spill] sm:$0xff] }
 0x6f0   :  { %v1267_v14 = vrot.slane %v1266_v37, 2  ;;  %v1261_v47 = vadd.f32 %v1260_v7, %v1259_v30  ;;  %v5556_v30 = vrot.slane %v5397_v46, %v6767_v1  ;;  %v5561_v7 = vrot.slane %v5086_v0, %v6767_v1  ;;  %v6776_v1 = vld [vmem:[#allocation28_spill] sm:$0xff] }
 0x6f1   :  { %v3107_v22 = vadd.f32 %v3106_v12, %v3105_v35  ;;  %v3101_v2 = vrot.slane %v3100_v42, 2 }
 0x6f2   :  { %v1268_v50 = vadd.f32 %v1267_v14, %v1266_v37  ;;  %v1262_v9 = vrot.slane %v1261_v47, 1 }
 0x6f3   :  { %v3108_v36 = vrot.slane %v3107_v22, 2  ;;  %v3102_v32 = vadd.f32 %v3101_v2, %v3100_v42 }
 0x6f4   :  { %v1269_v52 = vrot.slane %v1268_v50, 1  ;;  %v1263_v20 = vadd.f32 %v1262_v9, %v1261_v47 }
 0x6f5   :  { %v3109_v31 = vadd.f32 %v3108_v36, %v3107_v22  ;;  %v3103_v62 = vrot.slane %v3102_v32, 1 }
 0x6f6   :  { %v1270_v11 = vadd.f32 %v1269_v52, %v1268_v50  ;;  %v1271_v33 = vmul.f32 0.25, %v1263_v20  ;;  %v6769_v52 = vld [vmem:[#allocation15_spill] sm:$0xff] }
 0x6f7   :  { %v3110_v44 = vrot.slane %v3109_v31, 1  ;;  %v3104_v29 = vadd.f32 %v3103_v62, %v3102_v32 }
 0x6f8   :  { %v1272_v21 = vmul.f32 0.25, %v1270_v11  ;;  %v1273_v17 = vadd.f32 1e-05, %v1271_v33  ;;  %v6770_v11 = vld [vmem:[#allocation8_spill] sm:$0xff]  ;;  %v6772_v33 = vld [vmem:[#allocation30_spill] sm:$0xff] }
 0x6f9   :  { %v3111_v56 = vadd.f32 %v3110_v44, %v3109_v31  ;;  %v3112_v10 = vmul.f32 0.25, %v3104_v29  ;;  %v6768_v31 = vld [vmem:[#allocation12_spill] sm:$0xff] }
 0x6fa   :  { %v1274_v61 = vadd.f32 1e-05, %v1272_v21 }
 0x6fb   :  { %v3113_v58 = vmul.f32 0.25, %v3111_v56  ;;  %v6771_v56 = vld [vmem:[#allocation17_spill] sm:$0xff] }
 0x6fc   :  { %4014 = vrsqrt.f32 %v1274_v61  ;;  %v6773_v61 = vld [vmem:[#allocation31_spill] sm:$0xff] }
 0x6fd   :  { %v3116_v40 = vcombine.low %v3112_v10, %v3113_v58  ;;  %4016 = vrsqrt.f32 %v1273_v17 }
 0x6ff   :  { %v5548_v16 = vsub.f32 %v5538_v41, %v3116_v40 }
 0x701   :  { %v3119_v43 = vmul.f32 %v5548_v16, %v5548_v16 }
 0x703   :  { %v3121_v60 = vcombine.high %v3119_v43, %v3119_v43  ;;  %v3123_v57 = vsel %vm81_vm0, %v3119_v43, 0.0 }
 0x704   :  { %v3124_v55 = vrot.slane %v3123_v57, 4 }
 0x705   :  { %v3130_v26 = vsel %vm81_vm0, %v3121_v60, 0.0  ;;  %v6774_v60 = vld [vmem:[#allocation16_spill] sm:$0xff] }
 0x706   :  { %v3131_v34 = vrot.slane %v3130_v26, 4  ;;  %v3125_v22 = vadd.f32 %v3124_v55, %v3123_v57 }
 0x708   :  { %v3132_v37 = vadd.f32 %v3131_v34, %v3130_v26  ;;  %v3126_v36 = vrot.slane %v3125_v22, 2  ;;  %v6775_v26 = vld [vmem:[#allocation14_spill] sm:$0xff] }
 0x709   :  { %v4015_v53 = vpop.eup %4014 }
 0x70a   :  { %v4017_v6 = vpop.eup %4016  ;;  %v3133_v42 = vrot.slane %v3132_v37, 2  ;;  %v3127_v47 = vadd.f32 %v3126_v36, %v3125_v22 }
 0x70b   :  { %v1279_v35 = vcombine.low %v4017_v6, %v4015_v53 }
 0x70c   :  { %v3134_v2 = vadd.f32 %v3133_v42, %v3132_v37  ;;  %v3128_v46 = vrot.slane %v3127_v47, 1 }
 0x70d   :  { %v1281_v12 = vmul.f32 %v1279_v35, %v1252_v49 }
 0x70e   :  { %v3135_v9 = vrot.slane %v3134_v2, 1  ;;  %v3129_v0 = vadd.f32 %v3128_v46, %v3127_v47 }
 0x70f   :  { %v1294_v14 = vmul.f32 %v5556_v30, %v1281_v12 }
 0x710   :  { %v3136_v20 = vadd.f32 %v3135_v9, %v3134_v2  ;;  %v3137_v35 = vmul.f32 0.25, %v3129_v0 }
 0x711   :  { %v1307_v50 = vadd.f32 %v5561_v7, %v1294_v14  ;;  %v6777_v14 = vld [vmem:[#allocation13_spill] sm:$0xff] }
 0x712   :  { %v3138_v17 = vmul.f32 0.25, %v3136_v20  ;;  %v3139_v36 = vadd.f32 1e-05, %v3137_v35 }
 0x713   :  { %v1326_v49 = vrot.slane %v1307_v50, %v6768_v31  ;;  %v1356_v32 = vrot.slane %v1307_v50, %v6769_v52  ;;  %v1390_v21 = vrot.slane %v1307_v50, %v6771_v56  ;;  %v1322_v40 = vrot.slane %v1307_v50, %v6738_v51 }
 0x714   :  { %v1352_v43 = vrot.slane %v1307_v50, %v6770_v11  ;;  %v1424_v6 = vrot.slane %v1307_v50, %v6775_v26  ;;  %v3140_v55 = vadd.f32 1e-05, %v3138_v17  ;;  %v1386_v2 = vrot.slane %v1307_v50, %v6774_v60  ;;  %v5600_v17 = vld [vmem:[%s6592_s13] sm:$0xf] }
 0x715   :  { %v1336_v44 = vrot.slane %v1326_v49, %v6738_v51  ;;  %v1366_v62 = vrot.slane %v1356_v32, %v6770_v11  ;;  %v1400_v53 = vrot.slane %v1390_v21, %v6774_v60  ;;  %v1332_v12 = vrot.slane %v1322_v40, %v6738_v51 }
 0x716   :  { %v1362_v37 = vrot.slane %v1352_v43, %v6770_v11  ;;  %v1434_v42 = vrot.slane %v1424_v6, %v6777_v14  ;;  %4018 = vrsqrt.f32 %v3140_v55  ;;  %v1396_v0 = vrot.slane %v1386_v2, %v6774_v60 }
 0x717   :  { %v1338_v58 = vmul.f32 %v1336_v44, %v6772_v33  ;;  %v1368_v10 = vmul.f32 %v1366_v62, %v6773_v61  ;;  %v1402_v22 = vmul.f32 %v1400_v53, %v6776_v1  ;;  %v1337_v46 = vmul.f32 %v1332_v12, %v6772_v33 }
 0x718   :  { %v1367_v20 = vmul.f32 %v1362_v37, %v6773_v61  ;;  %v1436_v21 = vmul.f32 %v1434_v42, %v5423_v18  ;;  %4020 = vrsqrt.f32 %v3139_v36  ;;  %v6778_v36 = vld [vmem:[#allocation21_spill] sm:$0xff] }
 0x719   :  { %v1372_v34 = vadd.f32 %v1368_v10, %v1338_v58  ;;  %v1420_v58 = vrot.slane %v1307_v50, %v6777_v14  ;;  %v1401_v50 = vmul.f32 %v1396_v0, %v6776_v1  ;;  %v1404_v2 = vmul.f32 %v1400_v53, %v6778_v36 }
 0x71a   :  { %v1371_v35 = vadd.f32 %v1367_v20, %v1337_v46  ;;  %v6779_v46 = vld [vmem:[#allocation19_spill] sm:$0xff] }
 0x71b   :  { %v1406_v32 = vadd.f32 %v1402_v22, %v1372_v34  ;;  %v1340_v34 = vmul.f32 %v1336_v44, %v5399_v8  ;;  %v1430_v22 = vrot.slane %v1420_v58, %v6777_v14  ;;  %v1438_v20 = vmul.f32 %v1434_v42, %v6779_v46  ;;  %v4050_v42 = vld [vmem:[%s6591_s12 + $0x8] sm:$0xff]  ;;  %s4113_s12 = smov [#allocation5]  }
 0x71d   :  { %v5602_v40 = vadd.f32 %v1436_v21, %v1406_v32  ;;  %v1405_v21 = vadd.f32 %v1401_v50, %v1371_v35 }
 0x723   :  { %v4019_v58 = vpop.eup %4018 }
 0x725   :  { %v4021_v35 = vpop.eup %4020 }
 0x726   :  { %v3145_v50 = vcombine.low %v4021_v35, %v4019_v58 }
 0x738   :  { %v5569_v29 = vpop.permute.xlu0 %1637 }
 0x745   :  { %v5577_v57 = vpop.permute.xlu0 %1733 }
 0x749   :  { %v5584_v47 = vpop.permute.xlu1 %1739 }
 0x752   :  { %v5586_v49 = vpop.permute.xlu0 %1758 }
 0x753   :  { %v1767_v9 = vmul.f32 0.0, %v5586_v49 }
 0x755   :  { %1781 = vrot.lane.b32.xlu1 %v1767_v9, %s4108_s2  ;;  %v1468_v9 = vmul.f32 %v5361_v5, %v5602_v40 }
 0x756   :  { %v5595_v10 = vpop.permute.xlu1 %1762 }
 0x757   :  { %v5604_v43 = vpop.permute.xlu0 %1346  ;;  %v1770_v6 = vmul.f32 0.0, %v5595_v10 }
 0x758   :  { %v1370_v55 = vmul.f32 %v1366_v62, %v5604_v43  ;;  %v1435_v62 = vmul.f32 %v1430_v22, %v5423_v18 }
 0x759   :  { %1931 = vperm.xlu1 %3932, %v5600_v17   ;;  %1787 = vrot.lane.b32.xlu0 %v1770_v6, %s4108_s2 }
 0x75a   :  { %v1374_v32 = vadd.f32 %v1370_v55, %v1340_v34  ;;  %v5622_v41 = vadd.f32 %v1435_v62, %v1405_v21  ;;  %v1369_v34 = vmul.f32 %v1362_v37, %v5604_v43  ;;  %v1339_v55 = vmul.f32 %v1332_v12, %v5399_v8 }
 0x75b   :  { %v3147_v37 = vmul.f32 %v3145_v50, %v5548_v16  ;;  %v1437_v12 = vmul.f32 %v1430_v22, %v6779_v46  ;;  %v6780_v62 = vmov 4  }
 0x75c   :  { %v1408_v44 = vadd.f32 %v1404_v2, %v1374_v32  ;;  %v1505_v2 = vmul.f32 %v5353_v59, %v5622_v41  ;;  %v1373_v32 = vadd.f32 %v1369_v34, %v1339_v55  ;;  %v1467_v16 = vmul.f32 %v5361_v5, %v5622_v41 }
 0x75d   :  { %1477 = vrot.lane.b32.xlu1 %v1468_v9, %s4109_s17  ;;  %1964 = vperm.xlu0 %3930, %v5600_v17   ;;  %v1506_v34 = vmul.f32 %v5353_v59, %v5602_v40 }
 0x75e   :  { %v5620_v6 = vadd.f32 %v1438_v20, %v1408_v44  ;;  %v3148_v20 = vmul.f32 %v3147_v37, %v5556_v30  ;;  %v1568_v44 = vmul.f32 %v5425_v48, %v5622_v41  ;;  %v1718_v37 = vmul.f32 %v5501_v28, %v5602_v40 }
 0x760   :  { %v1470_v53 = vmul.f32 %v5365_v45, %v5620_v6  ;;  %v1509_v9 = vmul.f32 %v5371_v24, %v5620_v6  ;;  %v1572_v22 = vmul.f32 %v5427_v38, %v5620_v6  ;;  %v1619_v55 = vmul.f32 %v5481_v3, %v5620_v6 }
 0x761   :  { %3933 = vset.pattern.permute.xlu0 %v6729_v39  ;;  %v1403_v39 = vmul.f32 %v1396_v0, %v6778_v36 }
 0x762   :  { %1481 = vrot.lane.b32.xlu1 %v1470_v53, %s4109_s17  ;;  %1700 = vperm.xlu0 %3933, %v4050_v42  }
 0x763   :  { %v1407_v21 = vadd.f32 %v1403_v39, %v1373_v32 }
 0x765   :  { %v5648_v0 = vadd.f32 %v1437_v12, %v1407_v21 }
 0x766   :  { %1517 = vrot.lane.b32.xlu1 %v1505_v2, %s4108_s2  ;;  %1997 = vperm.xlu0 %3933, %v5600_v17  }
 0x767   :  { %v1469_v30 = vmul.f32 %v5365_v45, %v5648_v0  ;;  %v1508_v50 = vmul.f32 %v5371_v24, %v5648_v0 }
 0x76a   :  { %1525 = vrot.lane.b32.xlu1 %v1509_v9, %s4108_s2  ;;  %3934 = vset.pattern.permute.xlu0 %v6730_v27  ;;  %v5655_v27 = vadd.f32 %v3148_v20, %v5561_v7  ;;  %v1615_v7 = vmul.f32 %v5433_v13, %v5622_v41  ;;  %v1569_v9 = vmul.f32 %v5425_v48, %v5602_v40 }
 0x76b   :  { %2030 = vperm.xlu0 %3934, %v5600_v17  }
 0x76c   :  { %v3154_v53 = vrot.slane %v5655_v27, %v6738_v51  ;;  %v3176_v58 = vrot.slane %v5655_v27, %v6770_v11  ;;  %v3202_v2 = vrot.slane %v5655_v27, %v6774_v60  ;;  %v3228_v12 = vrot.slane %v5655_v27, %v6777_v14 }
 0x76e   :  { %1581 = vrot.lane.b32.xlu1 %v1568_v44, %s4109_s17  ;;  %v3164_v42 = vrot.slane %v3154_v53, %v6738_v51  ;;  %v3186_v35 = vrot.slane %v3176_v58, %v6770_v11  ;;  %v3212_v21 = vrot.slane %v3202_v2, %v6774_v60  ;;  %v1720_v44 = vmul.f32 %v5512_v19, %v5648_v0 }
 0x76f   :  { %1475 = vrot.lane.b32.xlu0 %v1467_v16, %s4109_s17  ;;  %v1571_v16 = vmul.f32 %v5427_v38, %v5648_v0  ;;  %v1765_v53 = vmul.f32 %v5586_v49, %v5622_v41  ;;  %v3158_v58 = vrot.slane %v5655_v27, %v6768_v31  ;;  %v1769_v2 = vmul.f32 %v5595_v10, %v5620_v6 }
 0x770   :  { %3935 = vset.pattern.permute.xlu0 %v6780_v62  ;;  %v3169_v32 = vmul.f32 %v3164_v42, %v6772_v33  ;;  %v3191_v39 = vmul.f32 %v3186_v35, %v6773_v61  ;;  %v3238_v62 = vrot.slane %v3228_v12, %v6777_v14  ;;  %v3193_v12 = vmul.f32 %v3186_v35, %v5604_v43 }
 0x772   :  { %1589 = vrot.lane.b32.xlu1 %v1572_v22, %s4109_s17  ;;  %v3195_v20 = vadd.f32 %v3191_v39, %v3169_v32  ;;  %v3217_v22 = vmul.f32 %v3212_v21, %v6776_v1  ;;  %v3168_v32 = vrot.slane %v3158_v58, %v6738_v51  ;;  %v3232_v58 = vrot.slane %v5655_v27, %v6775_v26 }
 0x773   :  { %1479 = vrot.lane.b32.xlu0 %v1469_v30, %s4109_s17 }
 0x774   :  { %v3221_v30 = vadd.f32 %v3217_v22, %v3195_v20  ;;  %v1717_v22 = vmul.f32 %v5501_v28, %v5622_v41 }
 0x776   :  { %1627 = vrot.lane.b32.xlu1 %v1615_v7, %s4108_s2  ;;  %v3180_v7 = vrot.slane %v5655_v27, %v6769_v52  ;;  %v6799_v52 = vld [vmem:[#allocation27_spill] sm:$0xff] }
 0x777   :  { %1519 = vrot.lane.b32.xlu0 %v1506_v34, %s4108_s2  ;;  %v1616_v34 = vmul.f32 %v5433_v13, %v5602_v40 }
 0x778   :  { %v3190_v39 = vrot.slane %v3180_v7, %v6770_v11 }
 0x77a   :  { %1635 = vrot.lane.b32.xlu1 %v1619_v55, %s4108_s2  ;;  %v3243_v55 = vmul.f32 %v3238_v62, %v5423_v18 }
 0x77b   :  { %1523 = vrot.lane.b32.xlu0 %v1508_v50, %s4108_s2 }
 0x77c   :  { %v5714_v50 = vadd.f32 %v3243_v55, %v3221_v30  ;;  %v3171_v30 = vmul.f32 %v3164_v42, %v5399_v8  ;;  %v3242_v55 = vrot.slane %v3232_v58, %v6777_v14 }
 0x77e   :  { %1731 = vrot.lane.b32.xlu1 %v1718_v37, %s4109_s17  ;;  %v1618_v37 = vmul.f32 %v5481_v3, %v5648_v0  ;;  %v3321_v20 = vmul.f32 %v5714_v50, %v5425_v48  ;;  %v3197_v35 = vadd.f32 %v3193_v12, %v3171_v30  ;;  %v3245_v12 = vmul.f32 %v3238_v62, %v6779_v46 }
 0x77f   :  { %1583 = vrot.lane.b32.xlu0 %v1569_v9, %s4109_s17  ;;  %v3206_v9 = vrot.slane %v5655_v27, %v6771_v56 }
 0x782   :  { %1735 = vrot.lane.b32.xlu1 %v1720_v44, %s4109_s17  ;;  %v3170_v44 = vmul.f32 %v3168_v32, %v6772_v33  ;;  %v3353_v33 = vmul.f32 %v5714_v50, %v5433_v13 }
 0x783   :  { %1587 = vrot.lane.b32.xlu0 %v1571_v16, %s4109_s17  ;;  %v3192_v16 = vmul.f32 %v3190_v39, %v6773_v61  ;;  %v1721_v61 = vmul.f32 %v5512_v19, %v5620_v6 }
 0x785   :  { %v3196_v7 = vadd.f32 %v3192_v16, %v3170_v44  ;;  %v1768_v16 = vmul.f32 %v5595_v10, %v5648_v0 }
 0x786   :  { %1777 = vrot.lane.b32.xlu1 %v1765_v53, %s4108_s2  ;;  %v3216_v53 = vrot.slane %v3206_v9, %v6774_v60  ;;  %v1766_v9 = vmul.f32 %v5586_v49, %v5602_v40 }
 0x787   :  { %1629 = vrot.lane.b32.xlu0 %v1616_v34, %s4108_s2  ;;  %v3219_v34 = vmul.f32 %v3212_v21, %v6778_v36  ;;  %v3244_v21 = vmul.f32 %v3242_v55, %v5423_v18 }
 0x788   :  { %v3218_v42 = vmul.f32 %v3216_v53, %v6776_v1 }
 0x789   :  { %v3223_v27 = vadd.f32 %v3219_v34, %v3197_v35 }
 0x78a   :  { %1785 = vrot.lane.b32.xlu1 %v1769_v2, %s4108_s2  ;;  %v3429_v2 = vmul.f32 %v5714_v50, %v5501_v28 }
 0x78b   :  { %1633 = vrot.lane.b32.xlu0 %v1618_v37, %s4108_s2  ;;  %v3222_v37 = vadd.f32 %v3218_v42, %v3196_v7  ;;  %v5756_v1 = vadd.f32 %v3245_v12, %v3223_v27  ;;  %v3172_v7 = vmul.f32 %v3168_v32, %v5399_v8  ;;  %v6781_v42 = vmov 7  }
 0x78c   :  { %v3255_v8 = vmul.f32 %v5714_v50, %v5361_v5 }
 0x78d   :  { %v5760_v44 = vadd.f32 %v3244_v21, %v3222_v37  ;;  %v3323_v62 = vmul.f32 %v5756_v1, %v5427_v38  ;;  %v3431_v58 = vmul.f32 %v5756_v1, %v5512_v19  ;;  %v3463_v35 = vmul.f32 %v5756_v1, %v5595_v10 }
 0x78e   :  { %3329 = vrot.lane.b32.xlu1 %v3321_v20, %s4109_s17  ;;  %v3461_v20 = vmul.f32 %v5714_v50, %v5586_v49 }
 0x78f   :  { %1729 = vrot.lane.b32.xlu0 %v1717_v22, %s4109_s17  ;;  %v3322_v18 = vmul.f32 %v5760_v44, %v5425_v48  ;;  %v3355_v22 = vmul.f32 %v5756_v1, %v5481_v3  ;;  %v3354_v30 = vmul.f32 %v5760_v44, %v5433_v13  ;;  %v3430_v48 = vmul.f32 %v5760_v44, %v5501_v28 }
 0x790   :  { %v3256_v13 = vmul.f32 %v5760_v44, %v5361_v5  ;;  %v3286_v28 = vmul.f32 %v5760_v44, %v5353_v59  ;;  %v3462_v34 = vmul.f32 %v5760_v44, %v5586_v49 }
 0x792   :  { %3361 = vrot.lane.b32.xlu1 %v3353_v33, %s4108_s2  ;;  %v3194_v33 = vmul.f32 %v3190_v39, %v5604_v43 }
 0x793   :  { %1737 = vrot.lane.b32.xlu0 %v1721_v61, %s4109_s17 }
 0x794   :  { %v3198_v61 = vadd.f32 %v3194_v33, %v3172_v7 }
 0x796   :  { %3437 = vrot.lane.b32.xlu1 %v3429_v2, %s4109_s17  ;;  %v3246_v2 = vmul.f32 %v3242_v55, %v6779_v46 }
 0x797   :  { %1779 = vrot.lane.b32.xlu0 %v1766_v9, %s4108_s2 }
 0x79a   :  { %3469 = vrot.lane.b32.xlu1 %v3461_v20, %s4108_s2 }
 0x79b   :  { %1783 = vrot.lane.b32.xlu0 %v1768_v16, %s4108_s2 }
 0x79e   :  { %3333 = vrot.lane.b32.xlu1 %v3323_v62, %s4109_s17  ;;  %v6791_v62 = vld [vmem:[#allocation23_spill] sm:$0xff] }
 0x79f   :  { %3331 = vrot.lane.b32.xlu0 %v3322_v18, %s4109_s17  ;;  %v1454_v18 = vmul.f32 %v6791_v62, %v5622_v41 }
 0x7a2   :  { %3365 = vrot.lane.b32.xlu1 %v3355_v22, %s4108_s2 }
 0x7a3   :  { %3363 = vrot.lane.b32.xlu0 %v3354_v30, %s4108_s2 }
 0x7a6   :  { %3441 = vrot.lane.b32.xlu1 %v3431_v58, %s4109_s17  ;;  %v1558_v58 = vmul.f32 %v5419_v23, %v5620_v6 }
 0x7a7   :  { %3439 = vrot.lane.b32.xlu0 %v3430_v48, %s4109_s17 }
 0x7aa   :  { %3473 = vrot.lane.b32.xlu1 %v3463_v35, %s4108_s2 }
 0x7ab   :  { %2063 = vperm.xlu0 %3935, %v5600_v17  }
 0x7ae   :  { %3265 = vrot.lane.b32.xlu1 %v3256_v13, %s4109_s17 }
 0x7af   :  { %3936 = vset.pattern.permute.xlu0 %v6761_v4  ;;  %v3220_v4 = vmul.f32 %v3216_v53, %v6778_v36  ;;  %v5824_v36 = vpop.permute.xlu0 %1450 }
 0x7b0   :  { %2096 = vperm.xlu0 %3936, %v5600_v17   ;;  %6782 = vst [vmem:[#allocation11_spill] sm:$0xff] %v5824_v36  ;;  %v5868_v35 = vmul.f32 0.0, %v5824_v36  ;;  %v1457_v7 = vmul.f32 %v5824_v36, %v5648_v0 }
 0x7b1   :  { %v3224_v27 = vadd.f32 %v3220_v4, %v3198_v61 }
 0x7b2   :  { %3295 = vrot.lane.b32.xlu1 %v3286_v28, %s4108_s2  ;;  %6792 = vst [vmem:[#allocation23_spill] sm:$0xff] %v5868_v35 }
 0x7b4   :  { %3937 = vset.pattern.permute.xlu0 %v6756_v54  ;;  %v5807_v54 = vadd.f32 %v3246_v2, %v3224_v27 }
 0x7b5   :  { %2129 = vperm.xlu0 %3937, %v5600_v17  }
 0x7b6   :  { %v3324_v49 = vmul.f32 %v5807_v54, %v5427_v38  ;;  %v3356_v43 = vmul.f32 %v5807_v54, %v5481_v3  ;;  %v3464_v5 = vmul.f32 %v5807_v54, %v5595_v10  ;;  %v3285_v38 = vmul.f32 %v5714_v50, %v5353_v59 }
 0x7b9   :  { %3471 = vrot.lane.b32.xlu0 %v3462_v34, %s4108_s2 }
 0x7ba   :  { %3938 = vset.pattern.permute.xlu0 %v6781_v42 }
 0x7bd   :  { %2162 = vperm.xlu0 %3938, %v5600_v17   ;;  %v3432_v17 = vmul.f32 %v5807_v54, %v5512_v19 }
 0x7c1   :  { %3263 = vrot.lane.b32.xlu0 %v3255_v8, %s4109_s17 }
 0x7c2   :  { %3939 = vset.pattern.permute.xlu0 %v6731_v15 }
 0x7c5   :  { %3335 = vrot.lane.b32.xlu0 %v3324_v49, %s4109_s17 }
 0x7c7   :  { %v5826_v15 = vpop.permute.xlu1 %1781 }
 0x7c9   :  { %3367 = vrot.lane.b32.xlu0 %v3356_v43, %s4108_s2 }
 0x7cb   :  { %v5831_v3 = vpop.permute.xlu0 %1787 }
 0x7cd   :  { %3443 = vrot.lane.b32.xlu0 %v3432_v17, %s4109_s17  ;;  %v6795_v17 = vld [vmem:[#allocation22_spill] sm:$0xff] }
 0x7d1   :  { %3475 = vrot.lane.b32.xlu0 %v3464_v5, %s4108_s2 }
 0x7d4   :  { %v5833_v46 = vpop.permute.xlu1 %1931 }
 0x7d5   :  { %6783 = vst [vmem:[#allocation30_spill] sm:$0xff] %v5833_v46  ;;  %3293 = vrot.lane.b32.xlu0 %v3285_v38, %s4108_s2 }
 0x7d8   :  { %v5836_v19 = vpop.permute.xlu0 %1964  ;;  %v5838_v32 = vpop.permute.xlu1 %1477 }
 0x7d9   :  { %6784 = vst [vmem:[#allocation31_spill] sm:$0xff] %v5836_v19 }
 0x7dc   :  { %v5840_v10 = vpop.permute.xlu1 %1481 }
 0x7dd   :  { %6785 = vst [vmem:[#allocation28_spill] sm:$0xff] %v5840_v10  ;;  %v5842_v39 = vpop.permute.xlu0 %1700 }
 0x7de   :  { %v5930_v60 = vmul.f32 0.0, %v5842_v39 }
 0x7e0   :  { %v5844_v53 = vpop.permute.xlu1 %1517 }
 0x7e1   :  { %6786 = vst [vmem:[#allocation21_spill] sm:$0xff] %v5844_v53  ;;  %v5846_v55 = vpop.permute.xlu0 %1997 }
 0x7e2   :  { %6787 = vst [vmem:[#allocation19_spill] sm:$0xff] %v5846_v55 }
 0x7e4   :  { %v5848_v37 = vpop.permute.xlu1 %1525 }
 0x7e5   :  { %6788 = vst [vmem:[#allocation37_spill] sm:$0xff] %v5848_v37 }
 0x7e6   :  { %v5850_v59 = vpop.permute.xlu0 %2030 }
 0x7e7   :  { %6789 = vst [vmem:[#allocation38_spill] sm:$0xff] %v5850_v59 }
 0x7e8   :  { %v5852_v9 = vpop.permute.xlu1 %1581 }
 0x7ea   :  { %v5854_v12 = vpop.permute.xlu0 %1475 }
 0x7eb   :  { %6790 = vst [vmem:[#allocation39_spill] sm:$0xff] %v5854_v12  ;;  %v1483_v16 = vsel %vm334_vm2, %v5854_v12, %v5838_v32 }
 0x7ec   :  { %v1590_v21 = vpop.permute.xlu1 %1589  ;;  %v1492_v30 = vadd.f32 %v1483_v16, %v1454_v18 }
 0x7ed   :  { %v1606_v33 = vadd.f32 %v1590_v21, %v1558_v58  ;;  %v6797_v58 = vld [vmem:[#allocation25_spill] sm:$0xff] }
 0x7ee   :  { %v1480_v20 = vpop.permute.xlu0 %1479  ;;  %v5927_v55 = vmul.f32 0.0, %v6797_v58 }
 0x7ef   :  { %v1484_v13 = vsel %vm334_vm2, %v1480_v20, %v5840_v10  ;;  %v1494_v4 = vadd.f32 %v1480_v20, %v5868_v35 }
 0x7f0   :  { %v5861_v22 = vpop.permute.xlu1 %1627  ;;  %v1495_v27 = vadd.f32 %v1484_v13, %v1457_v7  ;;  %v1555_v13 = vmul.f32 %v6797_v58, %v5602_v40 }
 0x7f2   :  { %v5865_v48 = vpop.permute.xlu0 %1519 }
 0x7f3   :  { %v1529_v28 = vsel %vm381_vm1, %v5844_v53, %v5865_v48 }
 0x7f4   :  { %v5877_v61 = vadd.f32 %v1529_v28, %v1492_v30  ;;  %v1636_v34 = vpop.permute.xlu1 %1635 }
 0x7f5   :  { %v1642_v42 = vsel %vm381_vm1, %v1636_v34, %v5569_v29 }
 0x7f6   :  { %6793 = vst [vmem:[#allocation40_spill] sm:$0xff] %v5877_v61  ;;  %v1654_v2 = vadd.f32 %v1642_v42, %v1606_v33  ;;  %v1524_v8 = vpop.permute.xlu0 %1523 }
 0x7f7   :  { %v1531_v49 = vsel %vm381_vm1, %v1524_v8, %v5848_v37  ;;  %v5884_v43 = vadd.f32 %v1524_v8, %v1494_v4 }
 0x7f8   :  { %v1660_v5 = vmul.f32 %v1654_v2, %v6795_v17  ;;  %v5887_v38 = vadd.f32 %v1531_v49, %v1495_v27  ;;  %v5889_v16 = vpop.permute.xlu1 %1731 }
 0x7f9   :  { %6794 = vst [vmem:[#allocation41_spill] sm:$0xff] %v5884_v43 }
 0x7fa   :  { %6796 = vst [vmem:[#allocation22_spill] sm:$0xff] %v5887_v38  ;;  %v1584_v18 = vpop.permute.xlu0 %1583  ;;  %1677 = vrot.lane.b32.xlu0 %v1660_v5, %s4110_s18  ;;  %v6798_v5 = vld [vmem:[#allocation33_spill] sm:$0xff]  ;;  %v1557_v38 = vmul.f32 %v5419_v23, %v5648_v0 }
 0x7fb   :  { %v1603_v33 = vadd.f32 %v1584_v18, %v1555_v13  ;;  %v1703_v63 = vmul.f32 0.0, %v6798_v5  ;;  %v1705_v53 = vmul.f32 %v6798_v5, %v5602_v40 }
 0x7fc   :  { %v1736_v20 = vpop.permute.xlu1 %1735 }
 0x7fe   :  { %v5892_v30 = vpop.permute.xlu0 %1587 }
 0x7ff   :  { %v1594_v11 = vsel %vm334_vm2, %v5892_v30, %v1590_v21  ;;  %v1742_v21 = vsel %vm334_vm2, %v5889_v16, %v5577_v57 }
 0x800   :  { %v5896_v28 = vpop.permute.xlu1 %1777 }
 0x802   :  { %v1630_v7 = vpop.permute.xlu0 %1629 }
 0x803   :  { %v1640_v4 = vsel %vm381_vm1, %v1630_v7, %v5485_v25 }
 0x804   :  { %v1651_v42 = vadd.f32 %v1640_v4, %v1603_v33  ;;  %v5900_v27 = vpop.permute.xlu1 %1785 }
 0x806   :  { %v1657_v2 = vmul.f32 %v1651_v42, %v6795_v17  ;;  %v5903_v8 = vpop.permute.xlu0 %1633 }
 0x807   :  { %v1641_v37 = vsel %vm381_vm1, %v5903_v8, %v1636_v34  ;;  %v1753_v34 = vadd.f32 %v1742_v21, %v1705_v53  ;;  %v6802_v53 = vld [vmem:[#allocation34_spill] sm:$0xff] }
 0x808   :  { %1671 = vrot.lane.b32.xlu1 %v1657_v2, %s4110_s18  ;;  %v5906_v49 = vpop.permute.xlu1 %3329  ;;  %v6800_v2 = vld [vmem:[#allocation10_spill] sm:$0xff] }
 0x809   :  { %v1591_v31 = vsel %vm334_vm2, %v6800_v2, %v5852_v9 }
 0x80a   :  { %v5909_v26 = vpop.permute.xlu0 %1729 }
 0x80b   :  { %v1751_v13 = vadd.f32 %v5909_v26, %v1703_v63 }
 0x80c   :  { %v5912_v56 = vpop.permute.xlu1 %3361 }
 0x80d   :  { %v1799_v33 = vadd.f32 %v5896_v28, %v1751_v13 }
 0x80e   :  { %v5915_v4 = vpop.permute.xlu0 %1737 }
 0x80f   :  { %v1805_v42 = vmul.f32 %v1799_v33, %v6799_v52  ;;  %v1601_v33 = vadd.f32 %v1591_v31, %v5927_v55  ;;  %v1605_v31 = vadd.f32 %v1594_v11, %v1557_v38  ;;  %v1592_v38 = vsel %vm334_vm2, %v5852_v9, %v1584_v18 }
 0x810   :  { %v5918_v59 = vpop.permute.xlu1 %3437 }
 0x811   :  { %1817 = vrot.lane.b32.xlu1 %v1805_v42, %s4111_s19  ;;  %v3455_v13 = vadd.f32 %v5918_v59, %v1703_v63  ;;  %v1754_v42 = vadd.f32 %v1736_v20, %v5930_v60  ;;  %v1649_v35 = vadd.f32 %v5861_v22, %v1601_v33  ;;  %v6801_v33 = vld [vmem:[#allocation24_spill] sm:$0xff] }
 0x812   :  { %v5924_v14 = vpop.permute.xlu0 %1779 }
 0x813   :  { %v1655_v61 = vmul.f32 %v1649_v35, %v6801_v33  ;;  %v1790_v11 = vsel %vm381_vm1, %v5924_v14, %v5826_v15  ;;  %v1554_v35 = vmul.f32 %v6797_v58, %v5622_v41 }
 0x814   :  { %v5933_v19 = vpop.permute.xlu1 %3469  ;;  %v1801_v43 = vadd.f32 %v1790_v11, %v1753_v34  ;;  %v6804_v34 = vld [vmem:[#allocation32_spill] sm:$0xff] }
 0x815   :  { %v3487_v46 = vadd.f32 %v5933_v19, %v3455_v13 }
 0x816   :  { %v1784_v51 = vpop.permute.xlu0 %1783 }
 0x817   :  { %v3493_v10 = vmul.f32 %v3487_v46, %v6799_v52  ;;  %v1802_v63 = vadd.f32 %v1784_v51, %v1754_v42  ;;  %v1653_v46 = vadd.f32 %v1641_v37, %v1605_v31  ;;  %v1707_v37 = vmul.f32 %v5842_v39, %v5648_v0  ;;  %v6803_v0 = vld [vmem:[#allocation18_spill] sm:$0xff] }
 0x818   :  { %v1639_v31 = vsel %vm381_vm1, %v5861_v22, %v1630_v7  ;;  %v1791_v18 = vsel %vm381_vm1, %v1784_v51, %v5900_v27  ;;  %v5981_v22 = vmul.f32 0.0, %v5419_v23  ;;  %v1807_v51 = vmul.f32 %v1801_v43, %v6804_v34 }
 0x819   :  { %v1808_v36 = vmul.f32 %v1802_v63, %v6799_v52  ;;  %3505 = vrot.lane.b32.xlu1 %v3493_v10, %s4111_s19  ;;  %v3318_v10 = vmul.f32 %v5760_v44, %v6797_v58  ;;  %v1659_v21 = vmul.f32 %v1653_v46, %v6802_v53 }
 0x81a   :  { %v3332_v13 = vpop.permute.xlu0 %3331 }
 0x81b   :  { %1823 = vrot.lane.b32.xlu0 %v1808_v36, %s4111_s19  ;;  %v1743_v36 = vsel %vm334_vm2, %v1736_v20, %v5915_v4  ;;  %v3349_v42 = vadd.f32 %v3332_v13, %v3318_v10  ;;  %v1593_v20 = vsel %vm334_vm2, %v6803_v0, %v5892_v30  ;;  %v3338_v46 = vsel %vm334_vm2, %v5906_v49, %v3332_v13 }
 0x81c   :  { %v1755_v10 = vadd.f32 %v1743_v36, %v1707_v37  ;;  %v1604_v30 = vadd.f32 %v1593_v20, %v5981_v22  ;;  %v1741_v13 = vsel %vm334_vm2, %v5909_v26, %v5889_v16  ;;  %v1789_v26 = vsel %vm381_vm1, %v5896_v28, %v5924_v14  ;;  %v6805_v16 = vld [vmem:[#allocation35_spill] sm:$0xff]  ;;  %v3334_v14 = vpop.permute.xlu1 %3333 }
 0x81d   :  { %1667 = vrot.lane.b32.xlu1 %v1655_v61, %s4110_s18  ;;  %v1602_v61 = vadd.f32 %v1592_v38, %v1554_v35  ;;  %v3317_v35 = vmul.f32 %v5714_v50, %v6797_v58  ;;  %v1704_v58 = vmul.f32 %v6798_v5, %v5622_v41 }
 0x81e   :  { %v3364_v63 = vpop.permute.xlu0 %3363  ;;  %v1803_v38 = vadd.f32 %v1791_v18, %v1755_v10  ;;  %v1652_v43 = vadd.f32 %v5903_v8, %v1604_v30  ;;  %v1708_v8 = vmul.f32 %v5842_v39, %v5620_v6  ;;  %v1792_v10 = vsel %vm381_vm1, %v5900_v27, %v5831_v3 }
 0x81f   :  { %v3370_v9 = vsel %vm381_vm1, %v3364_v63, %v5485_v25  ;;  %v1650_v7 = vadd.f32 %v1639_v31, %v1602_v61  ;;  %v3369_v37 = vsel %vm381_vm1, %v5912_v56, %v3364_v63  ;;  %v3348_v36 = vadd.f32 %v3338_v46, %v3317_v35 }
 0x820   :  { %v3381_v12 = vadd.f32 %v3370_v9, %v3349_v42  ;;  %v1744_v63 = vsel %vm334_vm2, %v5915_v4, %v5584_v47  ;;  %v1809_v31 = vmul.f32 %v1803_v38, %v6805_v16  ;;  %v1752_v9 = vadd.f32 %v1741_v13, %v1704_v58 }
 0x821   :  { %1675 = vrot.lane.b32.xlu1 %v1659_v21, %s4110_s18  ;;  %v3380_v21 = vadd.f32 %v3369_v37, %v3348_v36  ;;  %v1658_v41 = vmul.f32 %v1652_v43, %v6801_v33  ;;  %v1756_v61 = vadd.f32 %v1744_v63, %v1708_v8  ;;  %v3337_v4 = vsel %vm334_vm2, %v6800_v2, %v5906_v49  ;;  %v3366_v2 = vpop.permute.xlu1 %3365 }
 0x822   :  { %v3387_v25 = vmul.f32 %v3381_v12, %v6795_v17  ;;  %v3440_v11 = vpop.permute.xlu0 %3439  ;;  %v1656_v12 = vmul.f32 %v1650_v7, %v6802_v53  ;;  %v1800_v18 = vadd.f32 %v1789_v26, %v1752_v9  ;;  %v3347_v7 = vadd.f32 %v3337_v4, %v5927_v55 }
 0x823   :  { %v3386_v28 = vmul.f32 %v3380_v21, %v6802_v53  ;;  %v1804_v46 = vadd.f32 %v1792_v10, %v1756_v61  ;;  %v3446_v38 = vsel %vm334_vm2, %v3440_v11, %v5577_v57  ;;  %v3425_v55 = vmul.f32 %v5714_v50, %v6798_v5 }
 0x824   :  { %3401 = vrot.lane.b32.xlu0 %v3387_v25, %s4110_s18  ;;  %v1806_v25 = vmul.f32 %v1800_v18, %v6805_v16  ;;  %v3379_v27 = vadd.f32 %v5912_v56, %v3347_v7  ;;  %v3426_v30 = vmul.f32 %v5760_v44, %v6798_v5  ;;  %v3257_v21 = vmul.f32 %v5756_v1, %v5365_v45 }
 0x825   :  { %1821 = vrot.lane.b32.xlu1 %v1807_v51, %s4111_s19  ;;  %v3445_v51 = vsel %vm334_vm2, %v5918_v59, %v3440_v11  ;;  %v1810_v35 = vmul.f32 %v1804_v46, %v6804_v34  ;;  %v3442_v43 = vpop.permute.xlu1 %3441  ;;  %v3339_v61 = vsel %vm334_vm2, %v6803_v0, %v3334_v14  ;;  %v3320_v4 = vmul.f32 %v5807_v54, %v5419_v23 }
 0x826   :  { %v6001_v42 = vpop.permute.xlu0 %2063  ;;  %v3456_v37 = vadd.f32 %v3445_v51, %v3425_v55  ;;  %v3457_v13 = vadd.f32 %v3446_v38, %v3426_v30  ;;  %v3385_v56 = vmul.f32 %v3379_v27, %v6801_v33  ;;  %v3427_v55 = vmul.f32 %v5756_v1, %v5842_v39 }
 0x828   :  { %1669 = vrot.lane.b32.xlu0 %v1656_v12, %s4110_s18 }
 0x829   :  { %1825 = vrot.lane.b32.xlu1 %v1809_v31, %s4111_s19  ;;  %v3458_v31 = vadd.f32 %v3442_v43, %v5930_v60  ;;  %v3319_v60 = vmul.f32 %v5756_v1, %v5419_v23 }
 0x82b   :  { %v6019_v20 = vpop.permute.xlu0 %2096 }
 0x82c   :  { %1673 = vrot.lane.b32.xlu0 %v1658_v41, %s4110_s18  ;;  %v3288_v41 = vmul.f32 %v5807_v54, %v5371_v24 }
 0x82d   :  { %3399 = vrot.lane.b32.xlu1 %v3386_v28, %s4110_s18  ;;  %v3350_v28 = vadd.f32 %v3339_v61, %v5981_v22 }
 0x82f   :  { %v3382_v38 = vadd.f32 %v3366_v2, %v3350_v28 }
 0x830   :  { %1819 = vrot.lane.b32.xlu0 %v1806_v25, %s4111_s19  ;;  %v6029_v49 = vpop.permute.xlu0 %2129 }
 0x834   :  { %1827 = vrot.lane.b32.xlu0 %v1810_v35, %s4111_s19  ;;  %v3472_v36 = vpop.permute.xlu0 %3471 }
 0x835   :  { %v3477_v59 = vsel %vm381_vm1, %v5933_v19, %v3472_v36  ;;  %v3478_v57 = vsel %vm381_vm1, %v3472_v36, %v5826_v15  ;;  %v3258_v15 = vmul.f32 %v5807_v54, %v5365_v45  ;;  %v3474_v19 = vpop.permute.xlu1 %3473  ;;  %v3287_v45 = vmul.f32 %v5756_v1, %v5371_v24 }
 0x836   :  { %v3488_v11 = vadd.f32 %v3477_v59, %v3456_v37  ;;  %v3489_v12 = vadd.f32 %v3478_v57, %v3457_v13  ;;  %v3490_v9 = vadd.f32 %v3474_v19, %v3458_v31 }
 0x838   :  { %v3495_v58 = vmul.f32 %v3489_v12, %v6804_v34  ;;  %v6048_v63 = vpop.permute.xlu0 %2162  ;;  %3397 = vrot.lane.b32.xlu0 %v3385_v56, %s4110_s18  ;;  %v3494_v5 = vmul.f32 %v3488_v11, %v6805_v16  ;;  %v3496_v10 = vmul.f32 %v3490_v9, %v6799_v52 }
 0x83a   :  { %3509 = vrot.lane.b32.xlu1 %v3495_v58, %s4111_s19 }
 0x83c   :  { %v6053_v26 = vpop.permute.xlu0 %3263  ;;  %3507 = vrot.lane.b32.xlu0 %v3494_v5, %s4111_s19 }
 0x83e   :  { %3269 = vrot.lane.b32.xlu1 %v3258_v15, %s4109_s17 }
 0x840   :  { %v3336_v8 = vpop.permute.xlu0 %3335  ;;  %3267 = vrot.lane.b32.xlu0 %v3257_v21, %s4109_s17 }
 0x841   :  { %v3340_v18 = vsel %vm334_vm2, %v3334_v14, %v3336_v8  ;;  %v3352_v46 = vadd.f32 %v3336_v8, %v3320_v4  ;;  %v1453_v8 = vmul.f32 0.0, %v6791_v62 }
 0x842   :  { %3299 = vrot.lane.b32.xlu1 %v3288_v41, %s4108_s2  ;;  %v3351_v7 = vadd.f32 %v3340_v18, %v3319_v60  ;;  %v6807_v60 = vld [vmem:[#allocation39_spill] sm:$0xff] }
 0x843   :  { %v1491_v4 = vadd.f32 %v6807_v60, %v1453_v8 }
 0x844   :  { %v3368_v0 = vpop.permute.xlu0 %3367  ;;  %3297 = vrot.lane.b32.xlu0 %v3287_v45, %s4108_s2  ;;  %s3856_s2 = sshll.u32 %s4113_s12, 4  ;;  %s3857_s2 = int_to_ptr.vmem [resolvable:$true] %s3856_s2 }
 0x845   :  { %v3371_v14 = vsel %vm381_vm1, %v3366_v2, %v3368_v0  ;;  %v3372_v25 = vsel %vm381_vm1, %v3368_v0, %v5569_v29  ;;  %v3428_v29 = vmul.f32 %v5807_v54, %v5842_v39  ;;  %s4071_s17 = scalar_lea.vmem %s3857_s2, 256  ;;  %p4076_p6 = scmp.lt.s32.totalorder %s3857_s2, %s3857_s2 }
 0x846   :  { %v3383_v23 = vadd.f32 %v3371_v14, %v3351_v7  ;;  %v3384_v51 = vadd.f32 %v3372_v25, %v3352_v46  ;;  %3511 = vrot.lane.b32.xlu1 %v3496_v10, %s4111_s19  ;;  %v6808_v7 = vld [vmem:[#allocation41_spill] sm:$0xff]  ;;  %p4072_p5 = scmp.ne.s32.totalorder %s3857_s2, %s4071_s17  ;;  %p4077_p7 = scmp.lt.s32.totalorder %s4071_s17, %s4071_s17 }
 0x847   :  { %v6809_v46 = vld [vmem:[#allocation21_spill] sm:$0xff] }
 0x848   :  { %v3389_v24 = vmul.f32 %v3383_v23, %v6802_v53  ;;  %v3390_v22 = vmul.f32 %v3384_v51, %v6795_v17  ;;  %v3444_v52 = vpop.permute.xlu0 %3443  ;;  %v3388_v53 = vmul.f32 %v3382_v38, %v6801_v33  ;;  %v3266_v33 = vpop.permute.xlu1 %3265  ;;  %v1539_v0 = vadd.f32 %v6809_v46, %v1491_v4  ;;  %v6810_v38 = vld [vmem:[#allocation40_spill] sm:$0xff]  ;;  %p4078_p8 = por %p4077_p7, %p4076_p6 }
 0x849   :  { %v3447_v27 = vsel %vm334_vm2, %v3442_v43, %v3444_v52  ;;  %v3448_v35 = vsel %vm334_vm2, %v3444_v52, %v5584_v47 }
 0x84a   :  { %3407 = vrot.lane.b32.xlu0 %v3390_v22, %s4110_s18  ;;  %3405 = vrot.lane.b32.xlu1 %v3389_v24, %s4110_s18  ;;  %v3459_v2 = vadd.f32 %v3447_v27, %v3427_v55  ;;  %v3460_v17 = vadd.f32 %v3448_v35, %v3428_v29  ;;  %p4079_p9 = pnand %p4078_p8, %p4072_p5 }
 0x84c   :  { %v3476_v30 = vpop.permute.xlu0 %3475  ;;  %v3296_v57 = vpop.permute.xlu1 %3295 }
 0x84d   :  { %v3479_v37 = vsel %vm381_vm1, %v3474_v19, %v3476_v30  ;;  %v3480_v47 = vsel %vm381_vm1, %v3476_v30, %v5831_v3  ;;  %v6806_v19 = vld [vmem:[#allocation20_spill] sm:$0xff] }
 0x84e   :  { %v3491_v13 = vadd.f32 %v3479_v37, %v3459_v2  ;;  %v3492_v36 = vadd.f32 %v3480_v47, %v3460_v17  ;;  %3403 = vrot.lane.b32.xlu0 %v3388_v53, %s4110_s18  ;;  %v1530_v31 = vsel %vm381_vm1, %v5865_v48, %v6806_v19  ;;  %v3252_v2 = vmul.f32 %v5760_v44, %v6791_v62 }
 0x84f   :  { %v3302_v47 = vsel %vm381_vm1, %v3296_v57, %v6806_v19  ;;  %v3251_v44 = vmul.f32 %v5714_v50, %v6791_v62 }
 0x850   :  { %v3497_v39 = vmul.f32 %v3491_v13, %v6805_v16  ;;  %v3498_v59 = vmul.f32 %v3492_v36, %v6804_v34  ;;  %v3294_v12 = vpop.permute.xlu0 %3293  ;;  %v1455_v34 = vmul.f32 %v6791_v62, %v5602_v40 }
 0x852   :  { %3515 = vrot.lane.b32.xlu1 %v3498_v59, %s4111_s19  ;;  %3513 = vrot.lane.b32.xlu0 %v3497_v39, %s4111_s19  ;;  %v1493_v9 = vadd.f32 %v5838_v32, %v1455_v34  ;;  %v3281_v39 = vadd.f32 %v3266_v33, %v3252_v2  ;;  %v3271_v59 = vsel %vm334_vm2, %v6053_v26, %v3266_v33 }
 0x853   :  { %v3301_v34 = vsel %vm381_vm1, %v3294_v12, %v3296_v57 }
 0x854   :  { %v1541_v41 = vadd.f32 %v1530_v31, %v1493_v9  ;;  %v3279_v31 = vadd.f32 %v6053_v26, %v1453_v8 }
 0x856   :  { %v3311_v50 = vadd.f32 %v3294_v12, %v3279_v31 }
 0x86c   :  { %v6104_v3 = vpop.permute.xlu0 %1677 }
 0x87a   :  { %v1672_v56 = vpop.permute.xlu1 %1671 }
 0x883   :  { %v1818_v11 = vpop.permute.xlu1 %1817 }
 0x88b   :  { %v6102_v43 = vpop.permute.xlu1 %3505 }
 0x88d   :  { %v1824_v5 = vpop.permute.xlu0 %1823 }
 0x88f   :  { %v1668_v58 = vpop.permute.xlu1 %1667 }
 0x890   :  { %v1689_v51 = vadd.f32 %v1668_v58, %v1539_v0 }
 0x893   :  { %v6106_v15 = vpop.permute.xlu1 %1675 }
 0x896   :  { %v3402_v16 = vpop.permute.xlu0 %3401 }
 0x897   :  { %v1822_v21 = vpop.permute.xlu1 %1821 }
 0x89a   :  { %v1670_v61 = vpop.permute.xlu0 %1669 }
 0x89b   :  { %v1680_v18 = vsel %vm550_vm5, %v1670_v61, %v1672_v56  ;;  %v6117_v28 = vpop.permute.xlu1 %1825  ;;  %v1679_v48 = vsel %vm550_vm5, %v1668_v58, %v1670_v61 }
 0x89c   :  { %v1691_v45 = vadd.f32 %v1680_v18, %v1541_v41  ;;  %v1831_v25 = vsel %vm719_vm6, %v1824_v5, %v6117_v28  ;;  %v1690_v24 = vadd.f32 %v1679_v48, %v6810_v38  ;;  %v3313_v5 = vadd.f32 %v3302_v47, %v3281_v39 }
 0x89e   :  { %v6119_v40 = vadd.f32 %v1822_v21, %v1691_v45  ;;  %v6121_v10 = vpop.permute.xlu0 %1673 }
 0x89f   :  { %v1692_v32 = vadd.f32 %v6121_v10, %v6808_v7  ;;  %v3400_v30 = vpop.permute.xlu1 %3399 }
 0x8a0   :  { %v6128_v14 = vmul.f32 0.70710677, %v6119_v40  ;;  %v3410_v56 = vsel %vm550_vm5, %v3400_v30, %v3402_v16 }
 0x8a1   :  { %v6132_v23 = vadd.f32 %v1831_v25, %v1692_v32  ;;  %v3421_v33 = vadd.f32 %v3410_v56, %v3313_v5 }
 0x8a2   :  { %v1853_v22 = vand.u32 2147483647, %v6128_v14  ;;  %v1820_v52 = vpop.permute.xlu0 %1819  ;;  %vm1913_vm10 = vcmp.lt.f32.partialorder %v6128_v14, 0.0 }
 0x8a3   :  { %v1829_v27 = vsel %vm719_vm6, %v1818_v11, %v1820_v52  ;;  %v1830_v35 = vsel %vm719_vm6, %v1820_v52, %v1822_v21  ;;  %v3280_v21 = vadd.f32 %v3271_v59, %v3251_v44 }
 0x8a4   :  { %v1856_v55 = vmul.f32 0.3275911, %v1853_v22  ;;  %v6138_v29 = vadd.f32 %v1829_v27, %v1689_v51  ;;  %v6140_v53 = vadd.f32 %v1830_v35, %v1690_v24  ;;  %v1895_v4 = vsub.f32 0.0, %v1853_v22 }
 0x8a5   :  { %v3312_v62 = vadd.f32 %v3301_v34, %v3280_v21 }
 0x8a6   :  { %v1859_v17 = vadd.f32 1.0, %v1856_v55  ;;  %v6144_v37 = vpop.permute.xlu0 %1827  ;;  %v6149_v13 = vmul.f32 0.70710677, %v6138_v29  ;;  %v6152_v36 = vmul.f32 0.70710677, %v6140_v53  ;;  %v1898_v0 = vmul.f32 %v1895_v4, %v1853_v22 }
 0x8a8   :  { %4022 = vrcp.f32 %v1859_v17  ;;  %v1851_v11 = vand.u32 2147483647, %v6149_v13  ;;  %v1852_v58 = vand.u32 2147483647, %v6152_v36  ;;  %v1903_v55 = vmul.f32 1.442695, %v1898_v0 }
 0x8a9   :  { %vm1911_vm15 = vcmp.lt.f32.partialorder %v6149_v13, 0.0  ;;  %vm1912_vm3 = vcmp.lt.f32.partialorder %v6152_v36, 0.0 }
 0x8aa   :  { %v3398_v19 = vpop.permute.xlu0 %3397  ;;  %v1854_v9 = vmul.f32 0.3275911, %v1851_v11  ;;  %v1855_v41 = vmul.f32 0.3275911, %v1852_v58  ;;  %v1893_v52 = vsub.f32 0.0, %v1851_v11  ;;  %v1894_v2 = vsub.f32 0.0, %v1852_v58 }
 0x8ab   :  { %v3409_v61 = vsel %vm550_vm5, %v3398_v19, %v3400_v30  ;;  %v3419_v57 = vadd.f32 %v3398_v19, %v3311_v50  ;;  %v6811_v19 = vld [vmem:[#allocation11_spill] sm:$0xff] }
 0x8ac   :  { %v3510_v18 = vpop.permute.xlu1 %3509  ;;  %v1857_v16 = vadd.f32 1.0, %v1854_v9  ;;  %v1858_v60 = vadd.f32 1.0, %v1855_v41  ;;  %v3420_v7 = vadd.f32 %v3409_v61, %v3312_v62  ;;  %v1896_v59 = vmul.f32 %v1893_v52, %v1851_v11  ;;  %v6812_v9 = vld [vmem:[#allocation26_spill] sm:$0xff]  ;;  %v6813_v41 = vld [vmem:[#allocation37_spill] sm:$0xff]  ;;  %v6814_v11 = vld [vmem:[#allocation28_spill] sm:$0xff] }
 0x8ad   :  { %v6164_v45 = vadd.f32 %v3510_v18, %v3421_v33  ;;  %v1897_v5 = vmul.f32 %v1894_v2, %v1852_v58  ;;  %v1458_v31 = vmul.f32 %v6811_v19, %v5620_v6  ;;  %v1532_v33 = vsel %vm381_vm1, %v6813_v41, %v6812_v9 }
 0x8ae   :  { %v3508_v48 = vpop.permute.xlu0 %3507  ;;  %4024 = vrcp.f32 %v1857_v16  ;;  %v1899_v58 = vmul.f32 1.442695, %v1896_v59 }
 0x8af   :  { %v3517_v26 = vsel %vm719_vm6, %v6102_v43, %v3508_v48  ;;  %4026 = vrcp.f32 %v1858_v60  ;;  %v6169_v8 = vmul.f32 0.70710677, %v6164_v45  ;;  %v3518_v32 = vsel %vm719_vm6, %v3508_v48, %v3510_v18 }
 0x8b0   :  { %v6172_v12 = vadd.f32 %v3517_v26, %v3419_v57  ;;  %v6174_v46 = vadd.f32 %v3518_v32, %v3420_v7  ;;  %v1496_v50 = vadd.f32 %v6814_v11, %v1458_v31  ;;  %v1901_v16 = vmul.f32 1.442695, %v1897_v5 }
 0x8b1   :  { %v3541_v25 = vand.u32 2147483647, %v6169_v8  ;;  %v1682_v7 = vsel %vm550_vm5, %v6106_v15, %v6104_v3  ;;  %v1681_v26 = vsel %vm550_vm5, %v6121_v10, %v6106_v15  ;;  %v6211_v15 = vmul.f32 %v5756_v1, %v6811_v19 }
 0x8b2   :  { %v6178_v51 = vmul.f32 0.70710677, %v6172_v12  ;;  %v6181_v38 = vmul.f32 0.70710677, %v6174_v46  ;;  %v1544_v4 = vadd.f32 %v1532_v33, %v1496_v50  ;;  %v6214_v10 = vmul.f32 0.5, %v6119_v40 }
 0x8b3   :  { %v3544_v43 = vmul.f32 0.3275911, %v3541_v25  ;;  %v3583_v57 = vsub.f32 0.0, %v3541_v25  ;;  %v6227_v33 = vmul.f32 0.5, %v6140_v53  ;;  %v1832_v11 = vsel %vm719_vm6, %v6117_v28, %v6144_v37 }
 0x8b4   :  { %v3539_v27 = vand.u32 2147483647, %v6178_v51  ;;  %v3540_v35 = vand.u32 2147483647, %v6181_v38  ;;  %v1694_v3 = vadd.f32 %v1682_v7, %v1544_v4  ;;  %vm3599_vm4 = vcmp.lt.f32.partialorder %v6178_v51, 0.0 }
 0x8b5   :  { %v4023_v24 = vpop.eup %4022  ;;  %v3547_v30 = vadd.f32 1.0, %v3544_v43  ;;  %vm3600_vm8 = vcmp.lt.f32.partialorder %v6181_v38, 0.0 }
 0x8b6   :  { %v1868_v17 = vmul.f32 1.0614054, %v4023_v24  ;;  %v3542_v22 = vmul.f32 0.3275911, %v3539_v27  ;;  %v3543_v47 = vmul.f32 0.3275911, %v3540_v35 }
 0x8b7   :  { %4028 = vrcp.f32 %v3547_v30  ;;  %v3581_v52 = vsub.f32 0.0, %v3539_v27  ;;  %v6207_v30 = vmul.f32 %v5807_v54, %v6811_v19 }
 0x8b8   :  { %v1871_v39 = vadd.f32 -1.4531521, %v1868_v17  ;;  %v3545_v44 = vadd.f32 1.0, %v3542_v22  ;;  %v3546_v56 = vadd.f32 1.0, %v3543_v47  ;;  %4030 = vpow2.f32 %v1903_v55 }
 0x8b9   :  { %v3582_v55 = vsub.f32 0.0, %v3540_v35  ;;  %v3586_v47 = vmul.f32 %v3583_v57, %v3541_v25  ;;  %v6222_v25 = vmul.f32 0.5, %v6138_v29  ;;  %v1844_v29 = vadd.f32 %v6144_v37, %v1694_v3 }
 0x8ba   :  { %v1874_v34 = vmul.f32 %v4023_v24, %v1871_v39  ;;  %4032 = vrcp.f32 %v3545_v44  ;;  %v6815_v39 = vld [vmem:[#allocation22_spill] sm:$0xff] }
 0x8bb   :  { %v6187_v21 = vpop.eup %4024  ;;  %4034 = vrcp.f32 %v3546_v56  ;;  %v1693_v59 = vadd.f32 %v1681_v26, %v6815_v39  ;;  %v3585_v31 = vmul.f32 %v3582_v55, %v3540_v35  ;;  %v3591_v50 = vmul.f32 1.442695, %v3586_v47  ;;  %v3268_v35 = vpop.permute.xlu0 %3267 }
 0x8bc   :  { %v1877_v61 = vadd.f32 1.4214138, %v1874_v34  ;;  %v6192_v18 = vpop.eup %4026  ;;  %v1866_v62 = vmul.f32 1.0614054, %v6187_v21  ;;  %4036 = vpow2.f32 %v1899_v58  ;;  %v3584_v34 = vmul.f32 %v3581_v52, %v3539_v27  ;;  %v3270_v27 = vpop.permute.xlu1 %3269 }
 0x8bd   :  { %v1867_v60 = vmul.f32 1.0614054, %v6192_v18  ;;  %4038 = vpow2.f32 %v1901_v16  ;;  %v3589_v4 = vmul.f32 1.442695, %v3585_v31  ;;  %v6242_v37 = vadd.f32 %v1832_v11, %v1693_v59 }
 0x8be   :  { %v1880_v6 = vmul.f32 %v4023_v24, %v1877_v61  ;;  %v1869_v48 = vadd.f32 -1.4531521, %v1866_v62  ;;  %4040 = vpow2.f32 %v3591_v50 }
 0x8bf   :  { %v1870_v32 = vadd.f32 -1.4531521, %v1867_v60  ;;  %v6246_v3 = vpop.permute.xlu0 %3297 }
 0x8c0   :  { %v1883_v0 = vadd.f32 -0.28449672, %v1880_v6  ;;  %v1872_v43 = vmul.f32 %v6187_v21, %v1869_v48  ;;  %v3587_v6 = vmul.f32 1.442695, %v3584_v34 }
 0x8c1   :  { %v1873_v2 = vmul.f32 %v6192_v18, %v1870_v32 }
 0x8c2   :  { %v1886_v17 = vmul.f32 %v4023_v24, %v1883_v0  ;;  %v1875_v22 = vadd.f32 1.4214138, %v1872_v43  ;;  %4042 = vpow2.f32 %v3587_v6 }
 0x8c3   :  { %v1876_v44 = vadd.f32 1.4214138, %v1873_v2  ;;  %4044 = vpow2.f32 %v3589_v4 }
 0x8c4   :  { %v1889_v56 = vadd.f32 0.2548296, %v1886_v17  ;;  %v6217_v5 = vpop.eup %4028  ;;  %v1878_v54 = vmul.f32 %v6187_v21, %v1875_v22  ;;  %v3300_v17 = vpop.permute.xlu1 %3299 }
 0x8c5   :  { %v1879_v1 = vmul.f32 %v6192_v18, %v1876_v44  ;;  %v3556_v40 = vmul.f32 1.0614054, %v6217_v5  ;;  %v4031_v41 = vpop.eup %4030 }
 0x8c6   :  { %v1892_v19 = vmul.f32 %v4023_v24, %v1889_v56  ;;  %v1881_v61 = vadd.f32 -0.28449672, %v1878_v54 }
 0x8c7   :  { %v6232_v62 = vpop.eup %4032  ;;  %v1882_v58 = vadd.f32 -0.28449672, %v1879_v1  ;;  %v3559_v16 = vadd.f32 -1.4531521, %v3556_v40  ;;  %v6256_v40 = vadd.f32 %v3270_v27, %v6207_v30 }
 0x8c8   :  { %v1907_v24 = vmul.f32 %v4031_v41, %v1892_v19  ;;  %v6235_v60 = vpop.eup %4034  ;;  %v1884_v53 = vmul.f32 %v6187_v21, %v1881_v61  ;;  %v3554_v48 = vmul.f32 1.0614054, %v6232_v62  ;;  %v3408_v61 = vpop.permute.xlu0 %3407 }
 0x8c9   :  { %v1885_v28 = vmul.f32 %v6192_v18, %v1882_v58  ;;  %v3555_v7 = vmul.f32 1.0614054, %v6235_v60  ;;  %v3562_v26 = vmul.f32 %v6217_v5, %v3559_v16  ;;  %v4037_v39 = vpop.eup %4036  ;;  %v6264_v16 = vmul.f32 0.5, %v6174_v46  ;;  %v6269_v4 = vpop.permute.xlu1 %3511 }
 0x8ca   :  { %v1910_v57 = vsub.f32 1.0, %v1907_v24  ;;  %v1887_v32 = vadd.f32 0.2548296, %v1884_v53  ;;  %v3557_v0 = vadd.f32 -1.4531521, %v3554_v48  ;;  %v4039_v54 = vpop.eup %4038  ;;  %v6261_v24 = vmul.f32 0.5, %v6172_v12 }
 0x8cb   :  { %v1888_v43 = vadd.f32 0.2548296, %v1885_v28  ;;  %v3558_v55 = vadd.f32 -1.4531521, %v3555_v7  ;;  %v3565_v47 = vadd.f32 1.4214138, %v3562_v26 }
 0x8cc   :  { %v1916_v52 = vsub.f32 0.0, %v1910_v57  ;;  %v1890_v2 = vmul.f32 %v6187_v21, %v1887_v32  ;;  %v3560_v22 = vmul.f32 %v6232_v62, %v3557_v0  ;;  %v6816_v7 = vld [vmem:[#allocation23_spill] sm:$0xff]  ;;  %v3404_v13 = vpop.permute.xlu0 %3403 }
 0x8cd   :  { %v1891_v59 = vmul.f32 %v6192_v18, %v1888_v43  ;;  %v3561_v56 = vmul.f32 %v6235_v60, %v3558_v55  ;;  %v3568_v1 = vmul.f32 %v6217_v5, %v3565_v47  ;;  %v3282_v26 = vadd.f32 %v3268_v35, %v6816_v7  ;;  %v6817_v43 = vld [vmem:[#allocation9_spill] sm:$0xff] }
 0x8ce   :  { %v1919_v44 = vsel %vm1913_vm10, %v1916_v52, %v1910_v57  ;;  %v1905_v34 = vmul.f32 %v4037_v39, %v1890_v2  ;;  %v3563_v21 = vadd.f32 1.4214138, %v3560_v22  ;;  %v3272_v57 = vsel %vm334_vm2, %v3268_v35, %v3270_v27  ;;  %v6818_v22 = vld [vmem:[#allocation8_spill] sm:$0xff] }
 0x8cf   :  { %v1922_v31 = vadd.f32 1.0, %v1919_v44  ;;  %v1906_v19 = vmul.f32 %v4039_v54, %v1891_v59  ;;  %v3564_v41 = vadd.f32 1.4214138, %v3561_v56  ;;  %v3571_v50 = vadd.f32 -0.28449672, %v3568_v1  ;;  %v6819_v59 = vld [vmem:[#allocation30_spill] sm:$0xff]  ;;  %v4041_v56 = vpop.eup %4040  ;;  %v3406_v1 = vpop.permute.xlu1 %3405 }
 0x8d0   :  { %v1908_v18 = vsub.f32 1.0, %v1905_v34  ;;  %v3566_v11 = vmul.f32 %v6232_v62, %v3563_v21  ;;  %vm3601_vm2 = vcmp.lt.f32.partialorder %v6169_v8, 0.0  ;;  %v3283_v36 = vadd.f32 %v3272_v57, %v6211_v15  ;;  %v6824_v8 = vld [vmem:[#allocation12_spill] sm:$0xff] }
 0x8d1   :  { %v1925_v14 = vmul.f32 %v1922_v31, %v6214_v10  ;;  %v1909_v58 = vsub.f32 1.0, %v1906_v19  ;;  %v3567_v53 = vmul.f32 %v6235_v60, %v3564_v41  ;;  %v3574_v10 = vmul.f32 %v6217_v5, %v3571_v50 }
 0x8d2   :  { %v1914_v6 = vsub.f32 0.0, %v1908_v18  ;;  %v3569_v48 = vadd.f32 -0.28449672, %v3566_v11  ;;  %v3304_v34 = vsel %vm381_vm1, %v3300_v17, %v6812_v9  ;;  %v3411_v9 = vsel %vm550_vm5, %v3404_v13, %v3406_v1 }
 0x8d3   :  { %v6267_v30 = vmul.f32 %v1925_v14, %v1844_v29  ;;  %v1915_v28 = vsub.f32 0.0, %v1909_v58  ;;  %v3570_v12 = vadd.f32 -0.28449672, %v3567_v53  ;;  %v3577_v0 = vadd.f32 0.2548296, %v3574_v10 }
 0x8d4   :  { %v1917_v46 = vsel %vm1911_vm15, %v1914_v6, %v1908_v18  ;;  %v3572_v32 = vmul.f32 %v6232_v62, %v3569_v48  ;;  %v3314_v6 = vadd.f32 %v6246_v3, %v3282_v26 }
 0x8d5   :  { %v1945_v29 = vrot.slane %v6267_v30, %v6817_v43  ;;  %v1920_v52 = vadd.f32 1.0, %v1917_v46  ;;  %v1918_v55 = vsel %vm1912_vm3, %v1915_v28, %v1909_v58  ;;  %v3573_v2 = vmul.f32 %v6235_v60, %v3570_v12  ;;  %v3514_v28 = vpop.permute.xlu0 %3513 }
 0x8d6   :  { %v1978_v27 = vrot.slane %v6267_v30, %v6818_v22  ;;  %v1921_v35 = vadd.f32 1.0, %v1918_v55  ;;  %v3575_v47 = vadd.f32 0.2548296, %v3572_v32  ;;  %v3580_v39 = vmul.f32 %v6217_v5, %v3577_v0  ;;  %v3516_v0 = vpop.permute.xlu1 %3515 }
 0x8d7   :  { %v1948_v44 = vmul.f32 %v1945_v29, %v6819_v59  ;;  %v1923_v54 = vmul.f32 %v1920_v52, %v6222_v25  ;;  %v3576_v31 = vadd.f32 0.2548296, %v3573_v2  ;;  %v3303_v5 = vsel %vm381_vm1, %v6246_v3, %v3300_v17  ;;  %v4043_v25 = vpop.eup %4042  ;;  %v6822_v29 = vld [vmem:[#allocation19_spill] sm:$0xff] }
 0x8d8   :  { %v1924_v21 = vmul.f32 %v1921_v35, %v6227_v33  ;;  %v3578_v19 = vmul.f32 %v6232_v62, %v3575_v47  ;;  %v3595_v41 = vmul.f32 %v4041_v56, %v3580_v39  ;;  %v6820_v33 = vld [vmem:[#allocation31_spill] sm:$0xff]  ;;  %v4045_v11 = vpop.eup %4044  ;;  %v6821_v62 = vld [vmem:[#allocation16_spill] sm:$0xff]  ;;  %v3315_v48 = vadd.f32 %v3303_v5, %v3283_v36 }
 0x8d9   :  { %1955 = vrot.lane.b32.xlu1 %v1948_v44, %s4112_s20  ;;  %v6299_v15 = vmul.f32 %v1923_v54, %v6132_v23  ;;  %v3579_v18 = vmul.f32 %v6235_v60, %v3576_v31  ;;  %v1981_v14 = vmul.f32 %v1978_v27, %v6820_v33  ;;  %v2011_v53 = vrot.slane %v6267_v30, %v6821_v62 }
 0x8da   :  { %v6305_v50 = vmul.f32 %v1924_v21, %v6242_v37  ;;  %v3593_v17 = vmul.f32 %v4043_v25, %v3578_v19  ;;  %v3598_v58 = vsub.f32 1.0, %v3595_v41  ;;  %v3412_v60 = vsel %vm550_vm5, %v3406_v1, %v3408_v61  ;;  %v6823_v61 = vld [vmem:[#allocation13_spill] sm:$0xff]  ;;  %v6825_v1 = vld [vmem:[#allocation38_spill] sm:$0xff] }
 0x8db   :  { %v3594_v23 = vmul.f32 %v4045_v11, %v3579_v18  ;;  %v1937_v10 = vrot.slane %v6299_v15, %v6817_v43  ;;  %v3422_v12 = vadd.f32 %v3404_v13, %v3314_v6  ;;  %v3423_v46 = vadd.f32 %v3411_v9, %v3315_v48  ;;  %v6826_v6 = vld [vmem:[#allocation15_spill] sm:$0xff] }
 0x8dc   :  { %v3596_v57 = vsub.f32 1.0, %v3593_v17  ;;  %v3604_v7 = vsub.f32 0.0, %v3598_v58  ;;  %v1941_v37 = vrot.slane %v6305_v50, %v6817_v43  ;;  %v2014_v52 = vmul.f32 %v2011_v53, %v6822_v29 }
 0x8dd   :  { %1988 = vrot.lane.b32.xlu1 %v1981_v14, %s4112_s20  ;;  %v3597_v32 = vsub.f32 1.0, %v3594_v23  ;;  %v1946_v3 = vmul.f32 %v1937_v10, %v6819_v59  ;;  %v2044_v2 = vrot.slane %v6267_v30, %v6823_v61  ;;  %v3519_v27 = vsel %vm719_vm6, %v6269_v4, %v3514_v28  ;;  %v6827_v10 = vld [vmem:[#allocation17_spill] sm:$0xff] }
 0x8de   :  { %v3602_v26 = vsub.f32 0.0, %v3596_v57  ;;  %v1947_v55 = vmul.f32 %v1941_v37, %v6819_v59  ;;  %v3607_v13 = vsel %vm3601_vm2, %v3604_v7, %v3598_v58  ;;  %v1970_v47 = vrot.slane %v6299_v15, %v6818_v22 }
 0x8df   :  { %v3603_v35 = vsub.f32 0.0, %v3597_v32  ;;  %v3520_v44 = vsel %vm719_vm6, %v3514_v28, %v3516_v0  ;;  %v1974_v54 = vrot.slane %v6305_v50, %v6818_v22  ;;  %v2077_v31 = vrot.slane %v6267_v30, %v6824_v8 }
 0x8e0   :  { %v3605_v39 = vsel %vm3599_vm4, %v3602_v26, %v3596_v57  ;;  %v1952_v56 = vcombine.low %v1946_v3, %v1947_v55  ;;  %v6338_v21 = vmul.f32 %v1970_v47, %v6820_v33  ;;  %v3610_v5 = vadd.f32 1.0, %v3607_v13  ;;  %v6828_v47 = vld [vmem:[#allocation14_spill] sm:$0xff] }
 0x8e1   :  { %2021 = vrot.lane.b32.xlu1 %v2014_v52, %s4112_s20  ;;  %v3608_v36 = vadd.f32 1.0, %v3605_v39  ;;  %v3606_v4 = vsel %vm3600_vm8, %v3603_v35, %v3597_v32  ;;  %v2047_v19 = vmul.f32 %v2044_v2, %v6825_v1  ;;  %v6343_v41 = vmul.f32 %v1974_v54, %v6820_v33 }
 0x8e2   :  { %v3609_v51 = vadd.f32 1.0, %v3606_v4  ;;  %1953 = vrot.lane.b32.xlu0 %v1952_v56, %s4112_s20  ;;  %v3316_v25 = vadd.f32 %v3304_v34, %v6256_v40  ;;  %v3530_v9 = vadd.f32 %v3519_v27, %v3422_v12  ;;  %v3535_v18 = vmul.f32 0.5, %v6164_v45 }
 0x8e3   :  { %v3611_v38 = vmul.f32 %v3608_v36, %v6261_v24  ;;  %v3531_v11 = vadd.f32 %v3520_v44, %v3423_v46  ;;  %v1985_v17 = vcombine.low %v6338_v21, %v6343_v41  ;;  %v2110_v48 = vrot.slane %v6267_v30, %v6826_v6 }
 0x8e4   :  { %v3612_v14 = vmul.f32 %v3609_v51, %v6264_v16  ;;  %v3424_v58 = vadd.f32 %v3412_v60, %v3316_v25  ;;  %v3613_v40 = vmul.f32 %v3610_v5, %v3535_v18  ;;  %v2080_v24 = vmul.f32 %v2077_v31, %v6001_v42 }
 0x8e5   :  { %2054 = vrot.lane.b32.xlu1 %v2047_v19, %s4112_s20  ;;  %v6352_v53 = vmul.f32 %v3611_v38, %v3530_v9  ;;  %v2143_v60 = vrot.slane %v6267_v30, %v6827_v10  ;;  %v2113_v7 = vmul.f32 %v2110_v48, %v6019_v20  ;;  %v2003_v12 = vrot.slane %v6299_v15, %v6821_v62 }
 0x8e6   :  { %v6356_v34 = vmul.f32 %v3612_v14, %v3531_v11  ;;  %v3532_v45 = vadd.f32 %v3516_v0, %v3424_v58  ;;  %v2007_v46 = vrot.slane %v6305_v50, %v6821_v62  ;;  %v2176_v39 = vrot.slane %v6267_v30, %v6828_v47 }
 0x8e7   :  { %v3620_v16 = vrot.slane %v6352_v53, %v6817_v43  ;;  %v3649_v28 = vrot.slane %v6352_v53, %v6818_v22  ;;  %v3678_v3 = vrot.slane %v6352_v53, %v6821_v62  ;;  %v3707_v52 = vrot.slane %v6352_v53, %v6823_v61 }
 0x8e8   :  { %v3624_v23 = vrot.slane %v6356_v34, %v6817_v43  ;;  %v3653_v57 = vrot.slane %v6356_v34, %v6818_v22  ;;  %v6376_v32 = vmul.f32 %v3613_v40, %v3532_v45  ;;  %v3682_v26 = vrot.slane %v6356_v34, %v6821_v62 }
 0x8e9   :  { %2087 = vrot.lane.b32.xlu1 %v2080_v24, %s4112_s20  ;;  %v3629_v37 = vmul.f32 %v3620_v16, %v6819_v59  ;;  %v3711_v55 = vrot.slane %v6356_v34, %v6823_v61  ;;  %v3658_v27 = vmul.f32 %v3649_v28, %v6820_v33  ;;  %v2146_v13 = vmul.f32 %v2143_v60, %v6029_v49 }
 0x8ea   :  { %v3630_v0 = vmul.f32 %v3624_v23, %v6819_v59  ;;  %v3659_v35 = vmul.f32 %v3653_v57, %v6820_v33  ;;  %v6394_v44 = vmul.f32 %v2003_v12, %v6822_v29  ;;  %v6397_v56 = vmul.f32 %v2007_v46, %v6822_v29 }
 0x8eb   :  { %v3687_v54 = vmul.f32 %v3678_v3, %v6822_v29  ;;  %v3688_v36 = vmul.f32 %v3682_v26, %v6822_v29  ;;  %v3628_v4 = vrot.slane %v6376_v32, %v6817_v43  ;;  %v2036_v31 = vrot.slane %v6299_v15, %v6823_v61 }
 0x8ec   :  { %v3635_v2 = vcombine.low %v3629_v37, %v3630_v0  ;;  %v3716_v30 = vmul.f32 %v3707_v52, %v6825_v1  ;;  %v3717_v51 = vmul.f32 %v3711_v55, %v6825_v1  ;;  %v2040_v5 = vrot.slane %v6305_v50, %v6823_v61 }
 0x8ed   :  { %2120 = vrot.lane.b32.xlu1 %v2113_v7, %s4112_s20  ;;  %v2069_v19 = vrot.slane %v6299_v15, %v6824_v8  ;;  %v3664_v25 = vcombine.low %v3658_v27, %v3659_v35  ;;  %v3736_v9 = vrot.slane %v6352_v53, %v6824_v8  ;;  %v2179_v43 = vmul.f32 %v2176_v39, %v6048_v63 }
 0x8ee   :  { %3636 = vrot.lane.b32.xlu0 %v3635_v2, %s4112_s20  ;;  %v3657_v38 = vrot.slane %v6376_v32, %v6818_v22  ;;  %v2018_v18 = vcombine.low %v6394_v44, %v6397_v56  ;;  %v3693_v14 = vcombine.low %v3687_v54, %v3688_v36  ;;  %v3631_v11 = vmul.f32 %v3628_v4, %v6819_v59 }
 0x8ef   :  { %v3740_v58 = vrot.slane %v6356_v34, %v6824_v8  ;;  %v6425_v48 = vmul.f32 %v2036_v31, %v6825_v1  ;;  %v3722_v40 = vcombine.low %v3716_v30, %v3717_v51  ;;  %v6428_v24 = vmul.f32 %v2040_v5, %v6825_v1 }
 0x8f0   :  { %v2073_v22 = vrot.slane %v6305_v50, %v6824_v8  ;;  %v6433_v45 = vmul.f32 %v2069_v19, %v6001_v42  ;;  %v3745_v59 = vmul.f32 %v3736_v9, %v6001_v42  ;;  %v2102_v16 = vrot.slane %v6299_v15, %v6826_v6 }
 0x8f1   :  { %2153 = vrot.lane.b32.xlu1 %v2146_v13, %s4112_s20  ;;  %v2106_v23 = vrot.slane %v6305_v50, %v6826_v6  ;;  %v2135_v60 = vrot.slane %v6299_v15, %v6827_v10  ;;  %v2051_v28 = vcombine.low %v6425_v48, %v6428_v24  ;;  %v2139_v7 = vrot.slane %v6305_v50, %v6827_v10 }
 0x8f2   :  { %3665 = vrot.lane.b32.xlu0 %v3664_v25, %s4112_s20  ;;  %v2079_v57 = vmul.f32 %v2073_v22, %v6001_v42  ;;  %v2168_v37 = vrot.slane %v6299_v15, %v6828_v47  ;;  %v2111_v12 = vmul.f32 %v2102_v16, %v6019_v20  ;;  %v2172_v3 = vrot.slane %v6305_v50, %v6828_v47 }
 0x8f3   :  { %v2112_v46 = vmul.f32 %v2106_v23, %v6019_v20  ;;  %v2144_v0 = vmul.f32 %v2135_v60, %v6029_v49  ;;  %v3746_v26 = vmul.f32 %v3740_v58, %v6001_v42  ;;  %v2145_v55 = vmul.f32 %v2139_v7, %v6029_v49 }
 0x8f4   :  { %v2084_v52 = vcombine.low %v6433_v45, %v2079_v57  ;;  %v2177_v2 = vmul.f32 %v2168_v37, %v6048_v63  ;;  %v3765_v15 = vrot.slane %v6352_v53, %v6826_v6  ;;  %v3769_v27 = vrot.slane %v6356_v34, %v6826_v6 }
 0x8f5   :  { %2186 = vrot.lane.b32.xlu1 %v2179_v43, %s4112_s20  ;;  %v2117_v35 = vcombine.low %v2111_v12, %v2112_v46  ;;  %v2178_v13 = vmul.f32 %v2172_v3, %v6048_v63  ;;  %v2150_v50 = vcombine.low %v2144_v0, %v2145_v55  ;;  %v3660_v39 = vmul.f32 %v3657_v38, %v6820_v33 }
 0x8f6   :  { %3694 = vrot.lane.b32.xlu0 %v3693_v14, %s4112_s20  ;;  %v3686_v54 = vrot.slane %v6376_v32, %v6821_v62  ;;  %v3794_v4 = vrot.slane %v6352_v53, %v6827_v10  ;;  %v3751_v31 = vcombine.low %v3745_v59, %v3746_v26  ;;  %v3774_v30 = vmul.f32 %v3765_v15, %v6019_v20  ;;  %v6829_v26 = vld [vmem:[#allocation29_spill] sm:$0xff] }
 0x8f7   :  { %v2183_v36 = vcombine.low %v2177_v2, %v2178_v13  ;;  %v3775_v51 = vmul.f32 %v3769_v27, %v6019_v20  ;;  %v3798_v5 = vrot.slane %v6356_v34, %v6827_v10  ;;  %v3715_v62 = vrot.slane %v6376_v32, %v6823_v61 }
 0x8f8   :  { %v3689_v33 = vmul.f32 %v3686_v54, %v6822_v29  ;;  %v3823_v19 = vrot.slane %v6352_v53, %v6828_v47  ;;  %v3803_v9 = vmul.f32 %v3794_v4, %v6029_v49  ;;  %v3827_v38 = vrot.slane %v6356_v34, %v6828_v47 }
 0x8f9   :  { %3638 = vrot.lane.b32.xlu1 %v3631_v11, %s4112_s20  ;;  %v3780_v25 = vcombine.low %v3774_v30, %v3775_v51  ;;  %v3804_v43 = vmul.f32 %v3798_v5, %v6029_v49  ;;  %v3718_v29 = vmul.f32 %v3715_v62, %v6825_v1  ;;  %v3744_v61 = vrot.slane %v6376_v32, %v6824_v8 }
 0x8fa   :  { %3723 = vrot.lane.b32.xlu0 %v3722_v40, %s4112_s20  ;;  %v3832_v14 = vmul.f32 %v3823_v19, %v6048_v63  ;;  %v3833_v11 = vmul.f32 %v3827_v38, %v6048_v63  ;;  %v3773_v34 = vrot.slane %v6376_v32, %v6826_v6  ;;  %v3802_v48 = vrot.slane %v6376_v32, %v6827_v10 }
 0x8fb   :  { %v3809_v53 = vcombine.low %v3803_v9, %v3804_v43  ;;  %v3747_v58 = vmul.f32 %v3744_v61, %v6001_v42  ;;  %v3831_v42 = vrot.slane %v6376_v32, %v6828_v47 }
 0x8fc   :  { %v3838_v1 = vcombine.low %v3832_v14, %v3833_v11  ;;  %v3776_v8 = vmul.f32 %v3773_v34, %v6019_v20  ;;  %v3805_v40 = vmul.f32 %v3802_v48, %v6029_v49 }
 0x8fd   :  { %3667 = vrot.lane.b32.xlu1 %v3660_v39, %s4112_s20  ;;  %v3834_v20 = vmul.f32 %v3831_v42, %v6048_v63 }
 0x8fe   :  { %3752 = vrot.lane.b32.xlu0 %v3751_v31, %s4112_s20 }
 0x901   :  { %3696 = vrot.lane.b32.xlu1 %v3689_v33, %s4112_s20 }
 0x902   :  { %3781 = vrot.lane.b32.xlu0 %v3780_v25, %s4112_s20 }
 0x905   :  { %3725 = vrot.lane.b32.xlu1 %v3718_v29, %s4112_s20 }
 0x906   :  { %3810 = vrot.lane.b32.xlu0 %v3809_v53, %s4112_s20 }
 0x909   :  { %3754 = vrot.lane.b32.xlu1 %v3747_v58, %s4112_s20 }
 0x90a   :  { %3839 = vrot.lane.b32.xlu0 %v3838_v1, %s4112_s20 }
 0x90d   :  { %3783 = vrot.lane.b32.xlu1 %v3776_v8, %s4112_s20 }
 0x911   :  { %3812 = vrot.lane.b32.xlu1 %v3805_v40, %s4112_s20 }
 0x915   :  { %1986 = vrot.lane.b32.xlu1 %v1985_v17, %s4112_s20 }
 0x919   :  { %2019 = vrot.lane.b32.xlu1 %v2018_v18, %s4112_s20 }
 0x91d   :  { %2052 = vrot.lane.b32.xlu1 %v2051_v28, %s4112_s20 }
 0x921   :  { %2085 = vrot.lane.b32.xlu1 %v2084_v52, %s4112_s20 }
 0x925   :  { %2118 = vrot.lane.b32.xlu1 %v2117_v35, %s4112_s20 }
 0x929   :  { %2151 = vrot.lane.b32.xlu1 %v2150_v50, %s4112_s20 }
 0x92d   :  { %2184 = vrot.lane.b32.xlu1 %v2183_v36, %s4112_s20 }
 0x931   :  { %3841 = vrot.lane.b32.xlu1 %v3834_v20, %s4112_s20 }
 0x94b   :  { %v1956_v49 = vpop.permute.xlu1 %1955 }
 0x94c   :  { %v1958_v60 = vrot.slane %v1956_v49, 4 }
 0x94f   :  { %v1989_v21 = vpop.permute.xlu1 %1988 }
 0x950   :  { %v1991_v46 = vrot.slane %v1989_v21, 4 }
 0x953   :  { %v2022_v41 = vpop.permute.xlu1 %2021 }
 0x954   :  { %v1954_v32 = vpop.permute.xlu0 %1953  ;;  %v2024_v27 = vrot.slane %v2022_v41, 4 }
 0x955   :  { %v1957_v23 = vrot.slane %v1954_v32, 4 }
 0x957   :  { %v2055_v17 = vpop.permute.xlu1 %2054  ;;  %v1959_v7 = vsel %vm81_vm0, %v1957_v23, %v1958_v60 }
 0x958   :  { %v1960_v37 = vsel %vm748_vm7, %v1954_v32, %v1959_v7  ;;  %v2057_v31 = vrot.slane %v2055_v17, 4  ;;  %v6830_v17 = vld [vmem:[#allocation36_spill] sm:$0xff] }
 0x959   :  { %v1962_v52 = vadd.f32 %v1960_v37, %v6829_v26 }
 0x95b   :  { %v2088_v6 = vpop.permute.xlu1 %2087 }
 0x95c   :  { %v2090_v58 = vrot.slane %v2088_v6, 4 }
 0x95f   :  { %v6524_v10 = vpop.permute.xlu1 %2120 }
 0x960   :  { %v3637_v22 = vpop.permute.xlu0 %3636  ;;  %v2123_v8 = vrot.slane %v6524_v10, 4 }
 0x961   :  { %v3640_v5 = vrot.slane %v3637_v22, 4 }
 0x963   :  { %v6526_v44 = vpop.permute.xlu1 %2153 }
 0x964   :  { %v3666_v59 = vpop.permute.xlu0 %3665 }
 0x965   :  { %v3669_v19 = vrot.slane %v3666_v59, 4 }
 0x967   :  { %v6528_v56 = vpop.permute.xlu1 %2186 }
 0x968   :  { %v3695_v28 = vpop.permute.xlu0 %3694 }
 0x969   :  { %v3698_v53 = vrot.slane %v3695_v28, 4 }
 0x96b   :  { %v3639_v18 = vpop.permute.xlu1 %3638 }
 0x96c   :  { %v3724_v3 = vpop.permute.xlu0 %3723  ;;  %v3641_v39 = vrot.slane %v3639_v18, 4 }
 0x96d   :  { %v3727_v48 = vrot.slane %v3724_v3, 4 }
 0x96e   :  { %v3642_v25 = vsel %vm81_vm0, %v3640_v5, %v3641_v39 }
 0x96f   :  { %v3668_v24 = vpop.permute.xlu1 %3667  ;;  %v3643_v34 = vsel %vm748_vm7, %v3637_v22, %v3642_v25  ;;  %v2156_v22 = vrot.slane %v6526_v44, 4 }
 0x970   :  { %v3753_v54 = vpop.permute.xlu0 %3752  ;;  %v3670_v33 = vrot.slane %v3668_v24, 4  ;;  %v3645_v18 = vadd.f32 %v3643_v34, %v6830_v17 }
 0x971   :  { %v3756_v24 = vrot.slane %v3753_v54, 4 }
 0x972   :  { %v3671_v14 = vsel %vm81_vm0, %v3669_v19, %v3670_v33 }
 0x973   :  { %v3697_v47 = vpop.permute.xlu1 %3696  ;;  %v3672_v20 = vsel %vm748_vm7, %v3666_v59, %v3671_v14 }
 0x974   :  { %v3699_v9 = vrot.slane %v3697_v47, 4  ;;  %v3782_v11 = vpop.permute.xlu0 %3781 }
 0x975   :  { %v3785_v60 = vrot.slane %v3782_v11, 4 }
 0x976   :  { %v3700_v40 = vsel %vm81_vm0, %v3698_v53, %v3699_v9 }
 0x977   :  { %v3726_v45 = vpop.permute.xlu1 %3725  ;;  %v3701_v6 = vsel %vm748_vm7, %v3695_v28, %v3700_v40 }
 0x978   :  { %v3728_v1 = vrot.slane %v3726_v45, 4  ;;  %v3674_v45 = vadd.f32 %v3672_v20, %v3645_v18  ;;  %v3811_v59 = vpop.permute.xlu0 %3810 }
 0x97a   :  { %v3729_v32 = vsel %vm81_vm0, %v3727_v48, %v3728_v1  ;;  %v3703_v28 = vadd.f32 %v3701_v6, %v3674_v45 }
 0x97b   :  { %v6530_v63 = vpop.permute.xlu1 %3754 }
 0x97c   :  { %v3757_v49 = vrot.slane %v6530_v63, 4 }
 0x97e   :  { %v3758_v7 = vsel %vm81_vm0, %v3756_v24, %v3757_v49 }
 0x97f   :  { %v6532_v16 = vpop.permute.xlu1 %3783 }
 0x980   :  { %v3786_v10 = vrot.slane %v6532_v16, 4 }
 0x982   :  { %v3787_v26 = vsel %vm81_vm0, %v3785_v60, %v3786_v10 }
 0x983   :  { %v6534_v57 = vpop.permute.xlu1 %3812  ;;  %v3788_v39 = vsel %vm748_vm7, %v3782_v11, %v3787_v26 }
 0x984   :  { %v3815_v37 = vrot.slane %v6534_v57, 4 }
 0x987   :  { %v1987_v12 = vpop.permute.xlu1 %1986 }
 0x988   :  { %v1990_v0 = vrot.slane %v1987_v12, 4 }
 0x98a   :  { %v1992_v55 = vsel %vm81_vm0, %v1990_v0, %v1991_v46  ;;  %v3730_v46 = vsel %vm748_vm7, %v3724_v3, %v3729_v32  ;;  %v3814_v0 = vrot.slane %v3811_v59, 4 }
 0x98b   :  { %v1993_v2 = vsel %vm748_vm7, %v1987_v12, %v1992_v55  ;;  %v2020_v15 = vpop.permute.xlu1 %2019  ;;  %v2189_v55 = vrot.slane %v6528_v56, 4  ;;  %v3732_v57 = vadd.f32 %v3730_v46, %v3703_v28 }
 0x98c   :  { %v1995_v35 = vadd.f32 %v1993_v2, %v1962_v52  ;;  %v2023_v13 = vrot.slane %v2020_v15, 4  ;;  %v3759_v2 = vsel %vm748_vm7, %v3753_v54, %v3758_v7 }
 0x98e   :  { %v2025_v50 = vsel %vm81_vm0, %v2023_v13, %v2024_v27 }
 0x98f   :  { %v2026_v36 = vsel %vm748_vm7, %v2020_v15, %v2025_v50  ;;  %v2053_v4 = vpop.permute.xlu1 %2052  ;;  %v3840_v50 = vpop.permute.xlu0 %3839 }
 0x990   :  { %v2028_v30 = vadd.f32 %v2026_v36, %v1995_v35  ;;  %v2056_v51 = vrot.slane %v2053_v4, 4  ;;  %v3816_v35 = vsel %vm81_vm0, %v3814_v0, %v3815_v37  ;;  %v3761_v36 = vadd.f32 %v3759_v2, %v3732_v57 }
 0x992   :  { %v2058_v62 = vsel %vm81_vm0, %v2056_v51, %v2057_v31  ;;  %v3843_v51 = vrot.slane %v3840_v50, 4  ;;  %v3790_v5 = vadd.f32 %v3788_v39, %v3761_v36 }
 0x993   :  { %v2059_v43 = vsel %vm748_vm7, %v2053_v4, %v2058_v62  ;;  %v2086_v38 = vpop.permute.xlu1 %2085 }
 0x994   :  { %v2061_v29 = vadd.f32 %v2059_v43, %v2028_v30  ;;  %v2089_v61 = vrot.slane %v2086_v38, 4  ;;  %v3817_v30 = vsel %vm748_vm7, %v3811_v59, %v3816_v35 }
 0x995   :  { %v3819_v19 = vadd.f32 %v3817_v30, %v3790_v5 }
 0x996   :  { %v2091_v21 = vsel %vm81_vm0, %v2089_v61, %v2090_v58 }
 0x997   :  { %v2119_v42 = vpop.permute.xlu1 %2118  ;;  %v2092_v63 = vsel %vm748_vm7, %v2086_v38, %v2091_v21 }
 0x998   :  { %v2122_v41 = vrot.slane %v2119_v42, 4  ;;  %v2094_v44 = vadd.f32 %v2092_v63, %v2061_v29 }
 0x99a   :  { %v2124_v47 = vsel %vm81_vm0, %v2122_v41, %v2123_v8 }
 0x99b   :  { %v2152_v23 = vpop.permute.xlu1 %2151  ;;  %v2125_v16 = vsel %vm748_vm7, %v2119_v42, %v2124_v47 }
 0x99c   :  { %v2155_v12 = vrot.slane %v2152_v23, 4  ;;  %v2127_v13 = vadd.f32 %v2125_v16, %v2094_v44 }
 0x99e   :  { %v2157_v52 = vsel %vm81_vm0, %v2155_v12, %v2156_v22 }
 0x99f   :  { %v2158_v15 = vsel %vm748_vm7, %v2152_v23, %v2157_v52  ;;  %v2185_v27 = vpop.permute.xlu1 %2184 }
 0x9a0   :  { %v2188_v3 = vrot.slane %v2185_v27, 4  ;;  %v2160_v4 = vadd.f32 %v2158_v15, %v2127_v13 }
 0x9a2   :  { %v2190_v31 = vsel %vm81_vm0, %v2188_v3, %v2189_v55 }
 0x9a3   :  { %v2191_v56 = vsel %vm748_vm7, %v2185_v27, %v2190_v31  ;;  %v3842_v54 = vpop.permute.xlu1 %3841 }
 0x9a4   :  { %v2193_v33 = vadd.f32 %v2191_v56, %v2160_v4  ;;  %v3844_v62 = vrot.slane %v3842_v54, 4 }
 0x9a6   :  { %2194 = vst [vmem:[#allocation5] sm:$0xff] %v2193_v33  ;;  %v3845_v25 = vsel %vm81_vm0, %v3843_v51, %v3844_v62 }
 0x9a7   :  { %v3846_v9 = vsel %vm748_vm7, %v3840_v50, %v3845_v25 }
 0x9a8   :  { %v3848_v43 = vadd.f32 %v3846_v9, %v3819_v19 }
 0x9aa   :  { %3850 = vst [vmem:[#allocation5 + $0x8] sm:$0xff] %v3848_v43 }
 0x9ab   :  { %4082 = shalt.err (!%p4079_p9)
}
 0x9ac   :  { %s4114_s18 = smov 128   ;;  %s4115_s19 = smov 8  }
 0x9ad   :  { %3862 = dma.vmem_to_hbm [thread:$0]  %s3857_s2, 256, %s6593_s14, [#allocation4], %s4114_s18, %s4114_s18, %s4115_s19  }
 0x9ae   :  { %4093 = dma.done.wait [#allocation4], 256  }
 0x9af   :  { %4094 = vsyncadd [#allocation4], 4294967040 }
 0x9b0   :  { %3866 = vsyncpa [#allocation3], 1 }
 0x9b1   :  { %3867 = vsyncpa [#allocation4], 1 }

</bundles_post_ra>
